<compile_context>
chip_gen: v5e
topology: v5e:2x2
jax: 0.10.0
libtpu: 0.0.40
codegen_flags: <defaults>
</compile_context>

<pallas_src>
import functools
import math

import jax
import jax.numpy as jnp
from jax import lax
from jax.experimental import pallas as pl
from jax.experimental.pallas import tpu as pltpu


# ----------------------------- fused kernel -------------------------------- #

def basic_block_kernel(nq, H, W, C, P,
                       x_ref, w1_ref, sh1_ref, inv1_ref, st1_ref,
                       w2_ref, sh2_ref, inv2_ref, st2_ref, mask_ref,
                       o_ref):
    """One image per grid step, channels-on-sublane / spatial-on-lane layout.

    x_ref    : (1, C, H*W)     image in native (flattened) NCHW, lane-dense
    w*_ref   : (9, P, C)       per-tap conv weights with BN scale folded in
    sh*_ref  : (P, 1)          folded BN shift
    inv*/st* : (P, H*W)        precomputed n/alpha and alpha/n (PACT quantizer), f32
    mask_ref : (9, 1, H*W)     per-tap zero-padding edge masks
    o_ref    : (1, P, H*W)     lane-dense output block (native NCHW flattened)
    """
    HW = H * W

    def conv_bn(src, w_ref, sh_ref):
        # 3x3 conv as nine K=C MXU dots; taps via static lane roll (XLU) + edge mask.
        acc = jnp.zeros((P, HW), jnp.float32)
        for kh in range(3):
            for kw in range(3):
                t = kh * 3 + kw
                s = (kh - 1) * W + (kw - 1)
                if s == 0:
                    tap = src                                  # center tap: no shift, no mask
                else:
                    tap = pltpu.roll(src, shift=(-s) % HW, axis=1) * mask_ref[t]
                acc = acc + jnp.dot(w_ref[t], tap,
                                    preferred_element_type=jnp.float32)
        return acc + sh_ref[...]                               # folded-BN shift only

    def quant(y, inv_ref, st_ref):
        # PACT: round(clip(y, 0, alpha) * n/alpha) * alpha/n  (divides precomputed, f32)
        return jnp.round(jnp.clip(y * inv_ref[...], 0.0, nq)) * st_ref[...]

    x_img = x_ref[0]                                           # (C, HW), lane-dense

    # ---- stage 1: conv1 + bn1 + act1 (intermediate stays on-chip) ----
    a1 = quant(conv_bn(x_img, w1_ref, sh1_ref), inv1_ref, st1_ref)

    # ---- stage 2: conv2 + bn2 + identity residual + act2 ----
    y2 = conv_bn(a1.astype(x_img.dtype), w2_ref, sh2_ref) + x_img.astype(jnp.float32)
    o_ref[0] = quant(y2, inv2_ref, st2_ref).astype(o_ref.dtype)


# ----------------------------- glue / wrapper ------------------------------ #

def _fold_bn(gamma, beta, mean, var, eps=1e-5):
    scale = gamma / jnp.sqrt(var + eps)
    shift = beta - mean * scale
    return scale.astype(jnp.float32), shift.reshape(-1, 1).astype(jnp.float32)


def basic_block_forward(x_nchw, params, precision, compute_dtype=jnp.float32):
    """Pallas implementation of BasicBlock.forward (stride=1, in_planes==planes)."""
    n, c, h, w = x_nchw.shape
    planes = params["w1"].shape[0]
    assert c == planes, "only the identity-shortcut case is implemented"
    hw = h * w
    nq = float(2 ** precision - 1)

    # Native NCHW, spatial flattened onto the lane axis -- no transpose, no pad.
    x = x_nchw.reshape(n, c, hw).astype(compute_dtype)

    s1, sh1 = _fold_bn(params["bn1_gamma"], params["bn1_beta"],
                       params["bn1_mean"], params["bn1_var"])
    s2, sh2 = _fold_bn(params["bn2_gamma"], params["bn2_beta"],
                       params["bn2_mean"], params["bn2_var"])

    def fold_w(wt, scale):
        # torch (Cout, Cin, 3, 3) -> (9, Cout, Cin), BN scale folded on Cout
        ws = jnp.transpose(wt, (2, 3, 0, 1)).reshape(9, wt.shape[0], wt.shape[1])
        return (ws * scale.reshape(1, -1, 1)).astype(compute_dtype)

    w1 = fold_w(params["w1"], s1)
    w2 = fold_w(params["w2"], s2)

    def alpha_maps(alpha):
        # torch (1, C, H, W) -> (C, H*W); return n/alpha and alpha/n (kept f32)
        a = alpha[0].reshape(planes, hw).astype(jnp.float32)
        return nq / a, a / nq

    inv1, st1 = alpha_maps(params["alpha1"])
    inv2, st2 = alpha_maps(params["alpha2"])

    # Per-tap zero-padding edge masks for the rolled taps (precomputed once).
    hh = jnp.arange(h).reshape(h, 1)
    ww = jnp.arange(w).reshape(1, w)
    mrows = []
    for kh in range(3):
        for kw in range(3):
            dh, dw = kh - 1, kw - 1
            valid = ((hh + dh >= 0) & (hh + dh < h) &
                     (ww + dw >= 0) & (ww + dw < w))
            mrows.append(valid.reshape(1, hw))
    mask = jnp.stack(mrows, axis=0).astype(compute_dtype)          # (9, 1, hw)

    kernel = functools.partial(basic_block_kernel, nq, h, w, c, planes)

    out = pl.pallas_call(
        kernel,
        out_shape=jax.ShapeDtypeStruct((n, planes, hw), jnp.float32),
        grid=(n,),
        in_specs=[
            pl.BlockSpec((1, c, hw), lambda i: (i, 0, 0)),          # image (C, HW)
            pl.BlockSpec((9, planes, c), lambda i: (0, 0, 0)),      # w1 (BN folded)
            pl.BlockSpec((planes, 1), lambda i: (0, 0)),            # shift1
            pl.BlockSpec((planes, hw), lambda i: (0, 0)),           # n/alpha1
            pl.BlockSpec((planes, hw), lambda i: (0, 0)),           # alpha1/n
            pl.BlockSpec((9, planes, planes), lambda i: (0, 0, 0)), # w2 (BN folded)
            pl.BlockSpec((planes, 1), lambda i: (0, 0)),            # shift2
            pl.BlockSpec((planes, hw), lambda i: (0, 0)),           # n/alpha2
            pl.BlockSpec((planes, hw), lambda i: (0, 0)),           # alpha2/n
            pl.BlockSpec((9, 1, hw), lambda i: (0, 0, 0)),          # edge masks
        ],
        out_specs=pl.BlockSpec((1, planes, hw), lambda i: (i, 0, 0)),
        compiler_params=pltpu.CompilerParams(dimension_semantics=("parallel",)),
    )(x, w1, sh1, inv1, st1, w2, sh2, inv2, st2, mask)

    return out.reshape(n, planes, h, w)                            # already NCHW


# ----------------------------- pure-JAX reference --------------------------- #

def reference_forward(x, params, precision, eps=1e-5):
    def conv(x, w):
        return lax.conv_general_dilated(
            x, w, (1, 1), ((1, 1), (1, 1)),
            dimension_numbers=("NCHW", "OIHW", "NCHW"))

    def bn(x, g, b, m, v):
        rs = lambda t: t.reshape(1, -1, 1, 1)
        return (x - rs(m)) / jnp.sqrt(rs(v) + eps) * rs(g) + rs(b)

    def act(x, alpha):
        n = float(2 ** precision - 1)
        y = jnp.clip(x, 0.0, alpha)
        return jnp.round(y * (n / alpha)) * (alpha / n)

    out = act(bn(conv(x, params["w1"]), params["bn1_gamma"], params["bn1_beta"],
                 params["bn1_mean"], params["bn1_var"]), params["alpha1"])
    out = bn(conv(out, params["w2"]), params["bn2_gamma"], params["bn2_beta"],
             params["bn2_mean"], params["bn2_var"])
    out = out + x                                # identity shortcut
    return act(out, params["alpha2"])


# ----------------------------- main ----------------------------------------- #

if __name__ == "__main__":
    N, in_planes, planes = 2, 16, 16
    H = W = 32 // (planes // 16)                 # matches qact shape formula
    precision = 4
    alpha_init = 6.0

    key = jax.random.PRNGKey(0)
    ks = jax.random.split(key, 12)

    def conv_init(k, shape):
        fan_in = shape[1] * shape[2] * shape[3]
        return jax.random.normal(k, shape, jnp.float32) * math.sqrt(2.0 / fan_in)

    params = {
        "w1": conv_init(ks[0], (planes, in_planes, 3, 3)),
        "w2": conv_init(ks[1], (planes, planes, 3, 3)),
        "bn1_gamma": 1.0 + 0.1 * jax.random.normal(ks[2], (planes,), jnp.float32),
        "bn1_beta": 0.1 * jax.random.normal(ks[3], (planes,), jnp.float32),
        "bn1_mean": 0.1 * jax.random.normal(ks[4], (planes,), jnp.float32),
        "bn1_var": 1.0 + 0.1 * jnp.abs(jax.random.normal(ks[5], (planes,), jnp.float32)),
        "bn2_gamma": 1.0 + 0.1 * jax.random.normal(ks[6], (planes,), jnp.float32),
        "bn2_beta": 0.1 * jax.random.normal(ks[7], (planes,), jnp.float32),
        "bn2_mean": 0.1 * jax.random.normal(ks[8], (planes,), jnp.float32),
        "bn2_var": 1.0 + 0.1 * jnp.abs(jax.random.normal(ks[9], (planes,), jnp.float32)),
        "alpha1": jnp.full((1, planes, H, W), alpha_init, jnp.float32),
        "alpha2": jnp.full((1, planes, H, W), alpha_init, jnp.float32),
    }

    x = jax.random.normal(ks[10], (N, in_planes, H, W), jnp.float32)

    out = jax.jit(functools.partial(basic_block_forward, precision=precision))(x, params)
    out = jax.block_until_ready(out)

    ref = jax.block_until_ready(reference_forward(x, params, precision))

    assert out.shape == ref.shape == (N, planes, H, W)
    step = alpha_init / (2 ** precision - 1)
    # quantization means a ~1e-5 fp difference at a rounding boundary flips by one
    # full step; require that such flips are rare and everything else matches.
    mismatch_frac = float(jnp.mean((jnp.abs(out - ref) > 0.5 * step).astype(jnp.float32)))
    assert mismatch_frac < 0.01, f"mismatch fraction too high: {mismatch_frac}"

    print("KERNEL_OK")
</pallas_src>

<mosaic_0001>
module attributes {stable_mosaic.version = 11 : i64} {
  func.func @basic_block_kernel(%arg0: i32, %arg1: memref<1x16x1024xf32, #tpu.memory_space<vmem>>, %arg2: memref<9x16x16xf32, #tpu.memory_space<vmem>>, %arg3: memref<16x1xf32, #tpu.memory_space<vmem>>, %arg4: memref<16x1024xf32, #tpu.memory_space<vmem>>, %arg5: memref<16x1024xf32, #tpu.memory_space<vmem>>, %arg6: memref<9x16x16xf32, #tpu.memory_space<vmem>>, %arg7: memref<16x1xf32, #tpu.memory_space<vmem>>, %arg8: memref<16x1024xf32, #tpu.memory_space<vmem>>, %arg9: memref<16x1024xf32, #tpu.memory_space<vmem>>, %arg10: memref<9x1x1024xf32, #tpu.memory_space<vmem>>, %arg11: memref<1x16x1024xf32, #tpu.memory_space<vmem>>) attributes {dimension_semantics = [#tpu.dimension_semantics<parallel>], iteration_bounds = array<i64: 2>, scalar_prefetch = 0 : i64, scratch_operands = 0 : i64, tpu.core_type = #tpu.core_type<tc>, window_params = [{transform_indices = @transform_0, window_bounds = array<i64: 1, 16, 1024>}, {pipeline_mode = #tpu.pipeline_mode<synchronous>, transform_indices = @transform_1, window_bounds = array<i64: 9, 16, 16>}, {pipeline_mode = #tpu.pipeline_mode<synchronous>, transform_indices = @transform_2, window_bounds = array<i64: 16, 1>}, {pipeline_mode = #tpu.pipeline_mode<synchronous>, transform_indices = @transform_3, window_bounds = array<i64: 16, 1024>}, {pipeline_mode = #tpu.pipeline_mode<synchronous>, transform_indices = @transform_4, window_bounds = array<i64: 16, 1024>}, {pipeline_mode = #tpu.pipeline_mode<synchronous>, transform_indices = @transform_5, window_bounds = array<i64: 9, 16, 16>}, {pipeline_mode = #tpu.pipeline_mode<synchronous>, transform_indices = @transform_6, window_bounds = array<i64: 16, 1>}, {pipeline_mode = #tpu.pipeline_mode<synchronous>, transform_indices = @transform_7, window_bounds = array<i64: 16, 1024>}, {pipeline_mode = #tpu.pipeline_mode<synchronous>, transform_indices = @transform_8, window_bounds = array<i64: 16, 1024>}, {pipeline_mode = #tpu.pipeline_mode<synchronous>, transform_indices = @transform_9, window_bounds = array<i64: 9, 1, 1024>}, {transform_indices = @transform_10, window_bounds = array<i64: 1, 16, 1024>}]} {
    %c0 = arith.constant 0 : index
    %c0_0 = arith.constant 0 : index
    %c0_1 = arith.constant 0 : index
    %0 = vector.load %arg1[%c0, %c0_0, %c0_1] : memref<1x16x1024xf32, #tpu.memory_space<vmem>>, vector<1x16x1024xf32>
    %1 = vector.shape_cast %0 : vector<1x16x1024xf32> to vector<16x1024xf32>
    %cst = arith.constant 0.000000e+00 : f32
    %2 = vector.broadcast %cst : f32 to vector<16x1024xf32>
    %c33_i32 = arith.constant 33 : i32
    %3 = tpu.dynamic_rotate %1 by %c33_i32 dim 1 : vector<16x1024xf32>, i32 -> vector<16x1024xf32>
    %c0_2 = arith.constant 0 : index
    %c0_3 = arith.constant 0 : index
    %c0_4 = arith.constant 0 : index
    %4 = vector.load %arg10[%c0_2, %c0_3, %c0_4] : memref<9x1x1024xf32, #tpu.memory_space<vmem>>, vector<1x1x1024xf32>
    %5 = vector.shape_cast %4 : vector<1x1x1024xf32> to vector<1x1024xf32>
    %6 = vector.broadcast %5 : vector<1x1024xf32> to vector<16x1024xf32>
    %7 = arith.mulf %3, %6 : vector<16x1024xf32>
    %c0_5 = arith.constant 0 : index
    %c0_6 = arith.constant 0 : index
    %c0_7 = arith.constant 0 : index
    %8 = vector.load %arg2[%c0_5, %c0_6, %c0_7] : memref<9x16x16xf32, #tpu.memory_space<vmem>>, vector<1x16x16xf32>
    %9 = vector.shape_cast %8 : vector<1x16x16xf32> to vector<16x16xf32>
    %cst_8 = arith.constant dense<0.000000e+00> : vector<16x1024xf32>
    %10 = tpu.matmul %9, %7, %cst_8 {dimension_numbers = #tpu.dot_dimension_numbers<[1], [0], [0], [1], [0, 0, 1, 1], [], []>} : vector<16x16xf32>, vector<16x1024xf32>, vector<16x1024xf32> -> vector<16x1024xf32>
    %11 = arith.addf %2, %10 : vector<16x1024xf32>
    %c32_i32 = arith.constant 32 : i32
    %12 = tpu.dynamic_rotate %1 by %c32_i32 dim 1 : vector<16x1024xf32>, i32 -> vector<16x1024xf32>
    %c1 = arith.constant 1 : index
    %c0_9 = arith.constant 0 : index
    %c0_10 = arith.constant 0 : index
    %13 = vector.load %arg10[%c1, %c0_9, %c0_10] : memref<9x1x1024xf32, #tpu.memory_space<vmem>>, vector<1x1x1024xf32>
    %14 = vector.shape_cast %13 : vector<1x1x1024xf32> to vector<1x1024xf32>
    %15 = vector.broadcast %14 : vector<1x1024xf32> to vector<16x1024xf32>
    %16 = arith.mulf %12, %15 : vector<16x1024xf32>
    %c1_11 = arith.constant 1 : index
    %c0_12 = arith.constant 0 : index
    %c0_13 = arith.constant 0 : index
    %17 = vector.load %arg2[%c1_11, %c0_12, %c0_13] : memref<9x16x16xf32, #tpu.memory_space<vmem>>, vector<1x16x16xf32>
    %18 = vector.shape_cast %17 : vector<1x16x16xf32> to vector<16x16xf32>
    %cst_14 = arith.constant dense<0.000000e+00> : vector<16x1024xf32>
    %19 = tpu.matmul %18, %16, %cst_14 {dimension_numbers = #tpu.dot_dimension_numbers<[1], [0], [0], [1], [0, 0, 1, 1], [], []>} : vector<16x16xf32>, vector<16x1024xf32>, vector<16x1024xf32> -> vector<16x1024xf32>
    %20 = arith.addf %11, %19 : vector<16x1024xf32>
    %c31_i32 = arith.constant 31 : i32
    %21 = tpu.dynamic_rotate %1 by %c31_i32 dim 1 : vector<16x1024xf32>, i32 -> vector<16x1024xf32>
    %c2 = arith.constant 2 : index
    %c0_15 = arith.constant 0 : index
    %c0_16 = arith.constant 0 : index
    %22 = vector.load %arg10[%c2, %c0_15, %c0_16] : memref<9x1x1024xf32, #tpu.memory_space<vmem>>, vector<1x1x1024xf32>
    %23 = vector.shape_cast %22 : vector<1x1x1024xf32> to vector<1x1024xf32>
    %24 = vector.broadcast %23 : vector<1x1024xf32> to vector<16x1024xf32>
    %25 = arith.mulf %21, %24 : vector<16x1024xf32>
    %c2_17 = arith.constant 2 : index
    %c0_18 = arith.constant 0 : index
    %c0_19 = arith.constant 0 : index
    %26 = vector.load %arg2[%c2_17, %c0_18, %c0_19] : memref<9x16x16xf32, #tpu.memory_space<vmem>>, vector<1x16x16xf32>
    %27 = vector.shape_cast %26 : vector<1x16x16xf32> to vector<16x16xf32>
    %cst_20 = arith.constant dense<0.000000e+00> : vector<16x1024xf32>
    %28 = tpu.matmul %27, %25, %cst_20 {dimension_numbers = #tpu.dot_dimension_numbers<[1], [0], [0], [1], [0, 0, 1, 1], [], []>} : vector<16x16xf32>, vector<16x1024xf32>, vector<16x1024xf32> -> vector<16x1024xf32>
    %29 = arith.addf %20, %28 : vector<16x1024xf32>
    %c1_i32 = arith.constant 1 : i32
    %30 = tpu.dynamic_rotate %1 by %c1_i32 dim 1 : vector<16x1024xf32>, i32 -> vector<16x1024xf32>
    %c3 = arith.constant 3 : index
    %c0_21 = arith.constant 0 : index
    %c0_22 = arith.constant 0 : index
    %31 = vector.load %arg10[%c3, %c0_21, %c0_22] : memref<9x1x1024xf32, #tpu.memory_space<vmem>>, vector<1x1x1024xf32>
    %32 = vector.shape_cast %31 : vector<1x1x1024xf32> to vector<1x1024xf32>
    %33 = vector.broadcast %32 : vector<1x1024xf32> to vector<16x1024xf32>
    %34 = arith.mulf %30, %33 : vector<16x1024xf32>
    %c3_23 = arith.constant 3 : index
    %c0_24 = arith.constant 0 : index
    %c0_25 = arith.constant 0 : index
    %35 = vector.load %arg2[%c3_23, %c0_24, %c0_25] : memref<9x16x16xf32, #tpu.memory_space<vmem>>, vector<1x16x16xf32>
    %36 = vector.shape_cast %35 : vector<1x16x16xf32> to vector<16x16xf32>
    %cst_26 = arith.constant dense<0.000000e+00> : vector<16x1024xf32>
    %37 = tpu.matmul %36, %34, %cst_26 {dimension_numbers = #tpu.dot_dimension_numbers<[1], [0], [0], [1], [0, 0, 1, 1], [], []>} : vector<16x16xf32>, vector<16x1024xf32>, vector<16x1024xf32> -> vector<16x1024xf32>
    %38 = arith.addf %29, %37 : vector<16x1024xf32>
    %c4 = arith.constant 4 : index
    %c0_27 = arith.constant 0 : index
    %c0_28 = arith.constant 0 : index
    %39 = vector.load %arg2[%c4, %c0_27, %c0_28] : memref<9x16x16xf32, #tpu.memory_space<vmem>>, vector<1x16x16xf32>
    %40 = vector.shape_cast %39 : vector<1x16x16xf32> to vector<16x16xf32>
    %cst_29 = arith.constant dense<0.000000e+00> : vector<16x1024xf32>
    %41 = tpu.matmul %40, %1, %cst_29 {dimension_numbers = #tpu.dot_dimension_numbers<[1], [0], [0], [1], [0, 0, 1, 1], [], []>} : vector<16x16xf32>, vector<16x1024xf32>, vector<16x1024xf32> -> vector<16x1024xf32>
    %42 = arith.addf %38, %41 : vector<16x1024xf32>
    %c1023_i32 = arith.constant 1023 : i32
    %43 = tpu.dynamic_rotate %1 by %c1023_i32 dim 1 : vector<16x1024xf32>, i32 -> vector<16x1024xf32>
    %c5 = arith.constant 5 : index
    %c0_30 = arith.constant 0 : index
    %c0_31 = arith.constant 0 : index
    %44 = vector.load %arg10[%c5, %c0_30, %c0_31] : memref<9x1x1024xf32, #tpu.memory_space<vmem>>, vector<1x1x1024xf32>
    %45 = vector.shape_cast %44 : vector<1x1x1024xf32> to vector<1x1024xf32>
    %46 = vector.broadcast %45 : vector<1x1024xf32> to vector<16x1024xf32>
    %47 = arith.mulf %43, %46 : vector<16x1024xf32>
    %c5_32 = arith.constant 5 : index
    %c0_33 = arith.constant 0 : index
    %c0_34 = arith.constant 0 : index
    %48 = vector.load %arg2[%c5_32, %c0_33, %c0_34] : memref<9x16x16xf32, #tpu.memory_space<vmem>>, vector<1x16x16xf32>
    %49 = vector.shape_cast %48 : vector<1x16x16xf32> to vector<16x16xf32>
    %cst_35 = arith.constant dense<0.000000e+00> : vector<16x1024xf32>
    %50 = tpu.matmul %49, %47, %cst_35 {dimension_numbers = #tpu.dot_dimension_numbers<[1], [0], [0], [1], [0, 0, 1, 1], [], []>} : vector<16x16xf32>, vector<16x1024xf32>, vector<16x1024xf32> -> vector<16x1024xf32>
    %51 = arith.addf %42, %50 : vector<16x1024xf32>
    %c993_i32 = arith.constant 993 : i32
    %52 = tpu.dynamic_rotate %1 by %c993_i32 dim 1 : vector<16x1024xf32>, i32 -> vector<16x1024xf32>
    %c6 = arith.constant 6 : index
    %c0_36 = arith.constant 0 : index
    %c0_37 = arith.constant 0 : index
    %53 = vector.load %arg10[%c6, %c0_36, %c0_37] : memref<9x1x1024xf32, #tpu.memory_space<vmem>>, vector<1x1x1024xf32>
    %54 = vector.shape_cast %53 : vector<1x1x1024xf32> to vector<1x1024xf32>
    %55 = vector.broadcast %54 : vector<1x1024xf32> to vector<16x1024xf32>
    %56 = arith.mulf %52, %55 : vector<16x1024xf32>
    %c6_38 = arith.constant 6 : index
    %c0_39 = arith.constant 0 : index
    %c0_40 = arith.constant 0 : index
    %57 = vector.load %arg2[%c6_38, %c0_39, %c0_40] : memref<9x16x16xf32, #tpu.memory_space<vmem>>, vector<1x16x16xf32>
    %58 = vector.shape_cast %57 : vector<1x16x16xf32> to vector<16x16xf32>
    %cst_41 = arith.constant dense<0.000000e+00> : vector<16x1024xf32>
    %59 = tpu.matmul %58, %56, %cst_41 {dimension_numbers = #tpu.dot_dimension_numbers<[1], [0], [0], [1], [0, 0, 1, 1], [], []>} : vector<16x16xf32>, vector<16x1024xf32>, vector<16x1024xf32> -> vector<16x1024xf32>
    %60 = arith.addf %51, %59 : vector<16x1024xf32>
    %c992_i32 = arith.constant 992 : i32
    %61 = tpu.dynamic_rotate %1 by %c992_i32 dim 1 : vector<16x1024xf32>, i32 -> vector<16x1024xf32>
    %c7 = arith.constant 7 : index
    %c0_42 = arith.constant 0 : index
    %c0_43 = arith.constant 0 : index
    %62 = vector.load %arg10[%c7, %c0_42, %c0_43] : memref<9x1x1024xf32, #tpu.memory_space<vmem>>, vector<1x1x1024xf32>
    %63 = vector.shape_cast %62 : vector<1x1x1024xf32> to vector<1x1024xf32>
    %64 = vector.broadcast %63 : vector<1x1024xf32> to vector<16x1024xf32>
    %65 = arith.mulf %61, %64 : vector<16x1024xf32>
    %c7_44 = arith.constant 7 : index
    %c0_45 = arith.constant 0 : index
    %c0_46 = arith.constant 0 : index
    %66 = vector.load %arg2[%c7_44, %c0_45, %c0_46] : memref<9x16x16xf32, #tpu.memory_space<vmem>>, vector<1x16x16xf32>
    %67 = vector.shape_cast %66 : vector<1x16x16xf32> to vector<16x16xf32>
    %cst_47 = arith.constant dense<0.000000e+00> : vector<16x1024xf32>
    %68 = tpu.matmul %67, %65, %cst_47 {dimension_numbers = #tpu.dot_dimension_numbers<[1], [0], [0], [1], [0, 0, 1, 1], [], []>} : vector<16x16xf32>, vector<16x1024xf32>, vector<16x1024xf32> -> vector<16x1024xf32>
    %69 = arith.addf %60, %68 : vector<16x1024xf32>
    %c991_i32 = arith.constant 991 : i32
    %70 = tpu.dynamic_rotate %1 by %c991_i32 dim 1 : vector<16x1024xf32>, i32 -> vector<16x1024xf32>
    %c8 = arith.constant 8 : index
    %c0_48 = arith.constant 0 : index
    %c0_49 = arith.constant 0 : index
    %71 = vector.load %arg10[%c8, %c0_48, %c0_49] : memref<9x1x1024xf32, #tpu.memory_space<vmem>>, vector<1x1x1024xf32>
    %72 = vector.shape_cast %71 : vector<1x1x1024xf32> to vector<1x1024xf32>
    %73 = vector.broadcast %72 : vector<1x1024xf32> to vector<16x1024xf32>
    %74 = arith.mulf %70, %73 : vector<16x1024xf32>
    %c8_50 = arith.constant 8 : index
    %c0_51 = arith.constant 0 : index
    %c0_52 = arith.constant 0 : index
    %75 = vector.load %arg2[%c8_50, %c0_51, %c0_52] : memref<9x16x16xf32, #tpu.memory_space<vmem>>, vector<1x16x16xf32>
    %76 = vector.shape_cast %75 : vector<1x16x16xf32> to vector<16x16xf32>
    %cst_53 = arith.constant dense<0.000000e+00> : vector<16x1024xf32>
    %77 = tpu.matmul %76, %74, %cst_53 {dimension_numbers = #tpu.dot_dimension_numbers<[1], [0], [0], [1], [0, 0, 1, 1], [], []>} : vector<16x16xf32>, vector<16x1024xf32>, vector<16x1024xf32> -> vector<16x1024xf32>
    %78 = arith.addf %69, %77 : vector<16x1024xf32>
    %c0_54 = arith.constant 0 : index
    %c0_55 = arith.constant 0 : index
    %79 = vector.load %arg3[%c0_54, %c0_55] : memref<16x1xf32, #tpu.memory_space<vmem>>, vector<16x1xf32>
    %80 = vector.broadcast %79 : vector<16x1xf32> to vector<16x1024xf32>
    %81 = arith.addf %78, %80 : vector<16x1024xf32>
    %c0_56 = arith.constant 0 : index
    %c0_57 = arith.constant 0 : index
    %82 = vector.load %arg4[%c0_56, %c0_57] : memref<16x1024xf32, #tpu.memory_space<vmem>>, vector<16x1024xf32>
    %83 = arith.mulf %81, %82 : vector<16x1024xf32>
    %cst_58 = arith.constant 0.000000e+00 : f32
    %cst_59 = arith.constant 1.500000e+01 : f32
    %84 = vector.broadcast %cst_58 : f32 to vector<16x1024xf32>
    %85 = arith.maximumf %84, %83 : vector<16x1024xf32>
    %86 = vector.broadcast %cst_59 : f32 to vector<16x1024xf32>
    %87 = arith.minimumf %86, %85 : vector<16x1024xf32>
    %88 = math.roundeven %87 : vector<16x1024xf32>
    %c0_60 = arith.constant 0 : index
    %c0_61 = arith.constant 0 : index
    %89 = vector.load %arg5[%c0_60, %c0_61] : memref<16x1024xf32, #tpu.memory_space<vmem>>, vector<16x1024xf32>
    %90 = arith.mulf %88, %89 : vector<16x1024xf32>
    %cst_62 = arith.constant 0.000000e+00 : f32
    %91 = vector.broadcast %cst_62 : f32 to vector<16x1024xf32>
    %c33_i32_63 = arith.constant 33 : i32
    %92 = tpu.dynamic_rotate %90 by %c33_i32_63 dim 1 : vector<16x1024xf32>, i32 -> vector<16x1024xf32>
    %c0_64 = arith.constant 0 : index
    %c0_65 = arith.constant 0 : index
    %c0_66 = arith.constant 0 : index
    %93 = vector.load %arg10[%c0_64, %c0_65, %c0_66] : memref<9x1x1024xf32, #tpu.memory_space<vmem>>, vector<1x1x1024xf32>
    %94 = vector.shape_cast %93 : vector<1x1x1024xf32> to vector<1x1024xf32>
    %95 = vector.broadcast %94 : vector<1x1024xf32> to vector<16x1024xf32>
    %96 = arith.mulf %92, %95 : vector<16x1024xf32>
    %c0_67 = arith.constant 0 : index
    %c0_68 = arith.constant 0 : index
    %c0_69 = arith.constant 0 : index
    %97 = vector.load %arg6[%c0_67, %c0_68, %c0_69] : memref<9x16x16xf32, #tpu.memory_space<vmem>>, vector<1x16x16xf32>
    %98 = vector.shape_cast %97 : vector<1x16x16xf32> to vector<16x16xf32>
    %cst_70 = arith.constant dense<0.000000e+00> : vector<16x1024xf32>
    %99 = tpu.matmul %98, %96, %cst_70 {dimension_numbers = #tpu.dot_dimension_numbers<[1], [0], [0], [1], [0, 0, 1, 1], [], []>} : vector<16x16xf32>, vector<16x1024xf32>, vector<16x1024xf32> -> vector<16x1024xf32>
    %100 = arith.addf %91, %99 : vector<16x1024xf32>
    %c32_i32_71 = arith.constant 32 : i32
    %101 = tpu.dynamic_rotate %90 by %c32_i32_71 dim 1 : vector<16x1024xf32>, i32 -> vector<16x1024xf32>
    %c1_72 = arith.constant 1 : index
    %c0_73 = arith.constant 0 : index
    %c0_74 = arith.constant 0 : index
    %102 = vector.load %arg10[%c1_72, %c0_73, %c0_74] : memref<9x1x1024xf32, #tpu.memory_space<vmem>>, vector<1x1x1024xf32>
    %103 = vector.shape_cast %102 : vector<1x1x1024xf32> to vector<1x1024xf32>
    %104 = vector.broadcast %103 : vector<1x1024xf32> to vector<16x1024xf32>
    %105 = arith.mulf %101, %104 : vector<16x1024xf32>
    %c1_75 = arith.constant 1 : index
    %c0_76 = arith.constant 0 : index
    %c0_77 = arith.constant 0 : index
    %106 = vector.load %arg6[%c1_75, %c0_76, %c0_77] : memref<9x16x16xf32, #tpu.memory_space<vmem>>, vector<1x16x16xf32>
    %107 = vector.shape_cast %106 : vector<1x16x16xf32> to vector<16x16xf32>
    %cst_78 = arith.constant dense<0.000000e+00> : vector<16x1024xf32>
    %108 = tpu.matmul %107, %105, %cst_78 {dimension_numbers = #tpu.dot_dimension_numbers<[1], [0], [0], [1], [0, 0, 1, 1], [], []>} : vector<16x16xf32>, vector<16x1024xf32>, vector<16x1024xf32> -> vector<16x1024xf32>
    %109 = arith.addf %100, %108 : vector<16x1024xf32>
    %c31_i32_79 = arith.constant 31 : i32
    %110 = tpu.dynamic_rotate %90 by %c31_i32_79 dim 1 : vector<16x1024xf32>, i32 -> vector<16x1024xf32>
    %c2_80 = arith.constant 2 : index
    %c0_81 = arith.constant 0 : index
    %c0_82 = arith.constant 0 : index
    %111 = vector.load %arg10[%c2_80, %c0_81, %c0_82] : memref<9x1x1024xf32, #tpu.memory_space<vmem>>, vector<1x1x1024xf32>
    %112 = vector.shape_cast %111 : vector<1x1x1024xf32> to vector<1x1024xf32>
    %113 = vector.broadcast %112 : vector<1x1024xf32> to vector<16x1024xf32>
    %114 = arith.mulf %110, %113 : vector<16x1024xf32>
    %c2_83 = arith.constant 2 : index
    %c0_84 = arith.constant 0 : index
    %c0_85 = arith.constant 0 : index
    %115 = vector.load %arg6[%c2_83, %c0_84, %c0_85] : memref<9x16x16xf32, #tpu.memory_space<vmem>>, vector<1x16x16xf32>
    %116 = vector.shape_cast %115 : vector<1x16x16xf32> to vector<16x16xf32>
    %cst_86 = arith.constant dense<0.000000e+00> : vector<16x1024xf32>
    %117 = tpu.matmul %116, %114, %cst_86 {dimension_numbers = #tpu.dot_dimension_numbers<[1], [0], [0], [1], [0, 0, 1, 1], [], []>} : vector<16x16xf32>, vector<16x1024xf32>, vector<16x1024xf32> -> vector<16x1024xf32>
    %118 = arith.addf %109, %117 : vector<16x1024xf32>
    %c1_i32_87 = arith.constant 1 : i32
    %119 = tpu.dynamic_rotate %90 by %c1_i32_87 dim 1 : vector<16x1024xf32>, i32 -> vector<16x1024xf32>
    %c3_88 = arith.constant 3 : index
    %c0_89 = arith.constant 0 : index
    %c0_90 = arith.constant 0 : index
    %120 = vector.load %arg10[%c3_88, %c0_89, %c0_90] : memref<9x1x1024xf32, #tpu.memory_space<vmem>>, vector<1x1x1024xf32>
    %121 = vector.shape_cast %120 : vector<1x1x1024xf32> to vector<1x1024xf32>
    %122 = vector.broadcast %121 : vector<1x1024xf32> to vector<16x1024xf32>
    %123 = arith.mulf %119, %122 : vector<16x1024xf32>
    %c3_91 = arith.constant 3 : index
    %c0_92 = arith.constant 0 : index
    %c0_93 = arith.constant 0 : index
    %124 = vector.load %arg6[%c3_91, %c0_92, %c0_93] : memref<9x16x16xf32, #tpu.memory_space<vmem>>, vector<1x16x16xf32>
    %125 = vector.shape_cast %124 : vector<1x16x16xf32> to vector<16x16xf32>
    %cst_94 = arith.constant dense<0.000000e+00> : vector<16x1024xf32>
    %126 = tpu.matmul %125, %123, %cst_94 {dimension_numbers = #tpu.dot_dimension_numbers<[1], [0], [0], [1], [0, 0, 1, 1], [], []>} : vector<16x16xf32>, vector<16x1024xf32>, vector<16x1024xf32> -> vector<16x1024xf32>
    %127 = arith.addf %118, %126 : vector<16x1024xf32>
    %c4_95 = arith.constant 4 : index
    %c0_96 = arith.constant 0 : index
    %c0_97 = arith.constant 0 : index
    %128 = vector.load %arg6[%c4_95, %c0_96, %c0_97] : memref<9x16x16xf32, #tpu.memory_space<vmem>>, vector<1x16x16xf32>
    %129 = vector.shape_cast %128 : vector<1x16x16xf32> to vector<16x16xf32>
    %cst_98 = arith.constant dense<0.000000e+00> : vector<16x1024xf32>
    %130 = tpu.matmul %129, %90, %cst_98 {dimension_numbers = #tpu.dot_dimension_numbers<[1], [0], [0], [1], [0, 0, 1, 1], [], []>} : vector<16x16xf32>, vector<16x1024xf32>, vector<16x1024xf32> -> vector<16x1024xf32>
    %131 = arith.addf %127, %130 : vector<16x1024xf32>
    %c1023_i32_99 = arith.constant 1023 : i32
    %132 = tpu.dynamic_rotate %90 by %c1023_i32_99 dim 1 : vector<16x1024xf32>, i32 -> vector<16x1024xf32>
    %c5_100 = arith.constant 5 : index
    %c0_101 = arith.constant 0 : index
    %c0_102 = arith.constant 0 : index
    %133 = vector.load %arg10[%c5_100, %c0_101, %c0_102] : memref<9x1x1024xf32, #tpu.memory_space<vmem>>, vector<1x1x1024xf32>
    %134 = vector.shape_cast %133 : vector<1x1x1024xf32> to vector<1x1024xf32>
    %135 = vector.broadcast %134 : vector<1x1024xf32> to vector<16x1024xf32>
    %136 = arith.mulf %132, %135 : vector<16x1024xf32>
    %c5_103 = arith.constant 5 : index
    %c0_104 = arith.constant 0 : index
    %c0_105 = arith.constant 0 : index
    %137 = vector.load %arg6[%c5_103, %c0_104, %c0_105] : memref<9x16x16xf32, #tpu.memory_space<vmem>>, vector<1x16x16xf32>
    %138 = vector.shape_cast %137 : vector<1x16x16xf32> to vector<16x16xf32>
    %cst_106 = arith.constant dense<0.000000e+00> : vector<16x1024xf32>
    %139 = tpu.matmul %138, %136, %cst_106 {dimension_numbers = #tpu.dot_dimension_numbers<[1], [0], [0], [1], [0, 0, 1, 1], [], []>} : vector<16x16xf32>, vector<16x1024xf32>, vector<16x1024xf32> -> vector<16x1024xf32>
    %140 = arith.addf %131, %139 : vector<16x1024xf32>
    %c993_i32_107 = arith.constant 993 : i32
    %141 = tpu.dynamic_rotate %90 by %c993_i32_107 dim 1 : vector<16x1024xf32>, i32 -> vector<16x1024xf32>
    %c6_108 = arith.constant 6 : index
    %c0_109 = arith.constant 0 : index
    %c0_110 = arith.constant 0 : index
    %142 = vector.load %arg10[%c6_108, %c0_109, %c0_110] : memref<9x1x1024xf32, #tpu.memory_space<vmem>>, vector<1x1x1024xf32>
    %143 = vector.shape_cast %142 : vector<1x1x1024xf32> to vector<1x1024xf32>
    %144 = vector.broadcast %143 : vector<1x1024xf32> to vector<16x1024xf32>
    %145 = arith.mulf %141, %144 : vector<16x1024xf32>
    %c6_111 = arith.constant 6 : index
    %c0_112 = arith.constant 0 : index
    %c0_113 = arith.constant 0 : index
    %146 = vector.load %arg6[%c6_111, %c0_112, %c0_113] : memref<9x16x16xf32, #tpu.memory_space<vmem>>, vector<1x16x16xf32>
    %147 = vector.shape_cast %146 : vector<1x16x16xf32> to vector<16x16xf32>
    %cst_114 = arith.constant dense<0.000000e+00> : vector<16x1024xf32>
    %148 = tpu.matmul %147, %145, %cst_114 {dimension_numbers = #tpu.dot_dimension_numbers<[1], [0], [0], [1], [0, 0, 1, 1], [], []>} : vector<16x16xf32>, vector<16x1024xf32>, vector<16x1024xf32> -> vector<16x1024xf32>
    %149 = arith.addf %140, %148 : vector<16x1024xf32>
    %c992_i32_115 = arith.constant 992 : i32
    %150 = tpu.dynamic_rotate %90 by %c992_i32_115 dim 1 : vector<16x1024xf32>, i32 -> vector<16x1024xf32>
    %c7_116 = arith.constant 7 : index
    %c0_117 = arith.constant 0 : index
    %c0_118 = arith.constant 0 : index
    %151 = vector.load %arg10[%c7_116, %c0_117, %c0_118] : memref<9x1x1024xf32, #tpu.memory_space<vmem>>, vector<1x1x1024xf32>
    %152 = vector.shape_cast %151 : vector<1x1x1024xf32> to vector<1x1024xf32>
    %153 = vector.broadcast %152 : vector<1x1024xf32> to vector<16x1024xf32>
    %154 = arith.mulf %150, %153 : vector<16x1024xf32>
    %c7_119 = arith.constant 7 : index
    %c0_120 = arith.constant 0 : index
    %c0_121 = arith.constant 0 : index
    %155 = vector.load %arg6[%c7_119, %c0_120, %c0_121] : memref<9x16x16xf32, #tpu.memory_space<vmem>>, vector<1x16x16xf32>
    %156 = vector.shape_cast %155 : vector<1x16x16xf32> to vector<16x16xf32>
    %cst_122 = arith.constant dense<0.000000e+00> : vector<16x1024xf32>
    %157 = tpu.matmul %156, %154, %cst_122 {dimension_numbers = #tpu.dot_dimension_numbers<[1], [0], [0], [1], [0, 0, 1, 1], [], []>} : vector<16x16xf32>, vector<16x1024xf32>, vector<16x1024xf32> -> vector<16x1024xf32>
    %158 = arith.addf %149, %157 : vector<16x1024xf32>
    %c991_i32_123 = arith.constant 991 : i32
    %159 = tpu.dynamic_rotate %90 by %c991_i32_123 dim 1 : vector<16x1024xf32>, i32 -> vector<16x1024xf32>
    %c8_124 = arith.constant 8 : index
    %c0_125 = arith.constant 0 : index
    %c0_126 = arith.constant 0 : index
    %160 = vector.load %arg10[%c8_124, %c0_125, %c0_126] : memref<9x1x1024xf32, #tpu.memory_space<vmem>>, vector<1x1x1024xf32>
    %161 = vector.shape_cast %160 : vector<1x1x1024xf32> to vector<1x1024xf32>
    %162 = vector.broadcast %161 : vector<1x1024xf32> to vector<16x1024xf32>
    %163 = arith.mulf %159, %162 : vector<16x1024xf32>
    %c8_127 = arith.constant 8 : index
    %c0_128 = arith.constant 0 : index
    %c0_129 = arith.constant 0 : index
    %164 = vector.load %arg6[%c8_127, %c0_128, %c0_129] : memref<9x16x16xf32, #tpu.memory_space<vmem>>, vector<1x16x16xf32>
    %165 = vector.shape_cast %164 : vector<1x16x16xf32> to vector<16x16xf32>
    %cst_130 = arith.constant dense<0.000000e+00> : vector<16x1024xf32>
    %166 = tpu.matmul %165, %163, %cst_130 {dimension_numbers = #tpu.dot_dimension_numbers<[1], [0], [0], [1], [0, 0, 1, 1], [], []>} : vector<16x16xf32>, vector<16x1024xf32>, vector<16x1024xf32> -> vector<16x1024xf32>
    %167 = arith.addf %158, %166 : vector<16x1024xf32>
    %c0_131 = arith.constant 0 : index
    %c0_132 = arith.constant 0 : index
    %168 = vector.load %arg7[%c0_131, %c0_132] : memref<16x1xf32, #tpu.memory_space<vmem>>, vector<16x1xf32>
    %169 = vector.broadcast %168 : vector<16x1xf32> to vector<16x1024xf32>
    %170 = arith.addf %167, %169 : vector<16x1024xf32>
    %171 = arith.addf %170, %1 : vector<16x1024xf32>
    %c0_133 = arith.constant 0 : index
    %c0_134 = arith.constant 0 : index
    %172 = vector.load %arg8[%c0_133, %c0_134] : memref<16x1024xf32, #tpu.memory_space<vmem>>, vector<16x1024xf32>
    %173 = arith.mulf %171, %172 : vector<16x1024xf32>
    %cst_135 = arith.constant 0.000000e+00 : f32
    %cst_136 = arith.constant 1.500000e+01 : f32
    %174 = vector.broadcast %cst_135 : f32 to vector<16x1024xf32>
    %175 = arith.maximumf %174, %173 : vector<16x1024xf32>
    %176 = vector.broadcast %cst_136 : f32 to vector<16x1024xf32>
    %177 = arith.minimumf %176, %175 : vector<16x1024xf32>
    %178 = math.roundeven %177 : vector<16x1024xf32>
    %c0_137 = arith.constant 0 : index
    %c0_138 = arith.constant 0 : index
    %179 = vector.load %arg9[%c0_137, %c0_138] : memref<16x1024xf32, #tpu.memory_space<vmem>>, vector<16x1024xf32>
    %180 = arith.mulf %178, %179 : vector<16x1024xf32>
    %c0_139 = arith.constant 0 : index
    %c0_140 = arith.constant 0 : index
    %c0_141 = arith.constant 0 : index
    %181 = vector.load %arg11[%c0_139, %c0_140, %c0_141] : memref<1x16x1024xf32, #tpu.memory_space<vmem>>, vector<1x16x1024xf32>
    %182 = vector.shape_cast %181 : vector<1x16x1024xf32> to vector<16x1024xf32>
    %183 = vector.shape_cast %180 : vector<16x1024xf32> to vector<1x16x1024xf32>
    tpu.vector_store %arg11[%c0_139, %c0_140, %c0_141], %183 {strides = array<i32>} : memref<1x16x1024xf32, #tpu.memory_space<vmem>>, vector<1x16x1024xf32>,
    return
  }
  func.func @transform_0(%arg0: i32) -> (i32, i32, i32) {
    %c0_i32 = arith.constant 0 : i32
    %c0_i32_0 = arith.constant 0 : i32
    %c0_i32_1 = arith.constant 0 : i32
    return %arg0, %c0_i32, %c0_i32_0 : i32, i32, i32
  }
  func.func @transform_1(%arg0: i32) -> (i32, i32, i32) {
    %c0_i32 = arith.constant 0 : i32
    %c0_i32_0 = arith.constant 0 : i32
    %c0_i32_1 = arith.constant 0 : i32
    %c0_i32_2 = arith.constant 0 : i32
    return %c0_i32, %c0_i32_0, %c0_i32_1 : i32, i32, i32
  }
  func.func @transform_2(%arg0: i32) -> (i32, i32) {
    %c0_i32 = arith.constant 0 : i32
    %c0_i32_0 = arith.constant 0 : i32
    %c0_i32_1 = arith.constant 0 : i32
    return %c0_i32, %c0_i32_0 : i32, i32
  }
  func.func @transform_3(%arg0: i32) -> (i32, i32) {
    %c0_i32 = arith.constant 0 : i32
    %c0_i32_0 = arith.constant 0 : i32
    %c0_i32_1 = arith.constant 0 : i32
    return %c0_i32, %c0_i32_0 : i32, i32
  }
  func.func @transform_4(%arg0: i32) -> (i32, i32) {
    %c0_i32 = arith.constant 0 : i32
    %c0_i32_0 = arith.constant 0 : i32
    %c0_i32_1 = arith.constant 0 : i32
    return %c0_i32, %c0_i32_0 : i32, i32
  }
  func.func @transform_5(%arg0: i32) -> (i32, i32, i32) {
    %c0_i32 = arith.constant 0 : i32
    %c0_i32_0 = arith.constant 0 : i32
    %c0_i32_1 = arith.constant 0 : i32
    %c0_i32_2 = arith.constant 0 : i32
    return %c0_i32, %c0_i32_0, %c0_i32_1 : i32, i32, i32
  }
  func.func @transform_6(%arg0: i32) -> (i32, i32) {
    %c0_i32 = arith.constant 0 : i32
    %c0_i32_0 = arith.constant 0 : i32
    %c0_i32_1 = arith.constant 0 : i32
    return %c0_i32, %c0_i32_0 : i32, i32
  }
  func.func @transform_7(%arg0: i32) -> (i32, i32) {
    %c0_i32 = arith.constant 0 : i32
    %c0_i32_0 = arith.constant 0 : i32
    %c0_i32_1 = arith.constant 0 : i32
    return %c0_i32, %c0_i32_0 : i32, i32
  }
  func.func @transform_8(%arg0: i32) -> (i32, i32) {
    %c0_i32 = arith.constant 0 : i32
    %c0_i32_0 = arith.constant 0 : i32
    %c0_i32_1 = arith.constant 0 : i32
    return %c0_i32, %c0_i32_0 : i32, i32
  }
  func.func @transform_9(%arg0: i32) -> (i32, i32, i32) {
    %c0_i32 = arith.constant 0 : i32
    %c0_i32_0 = arith.constant 0 : i32
    %c0_i32_1 = arith.constant 0 : i32
    %c0_i32_2 = arith.constant 0 : i32
    return %c0_i32, %c0_i32_0, %c0_i32_1 : i32, i32, i32
  }
  func.func @transform_10(%arg0: i32) -> (i32, i32, i32) {
    %c0_i32 = arith.constant 0 : i32
    %c0_i32_0 = arith.constant 0 : i32
    %c0_i32_1 = arith.constant 0 : i32
    return %arg0, %c0_i32, %c0_i32_0 : i32, i32, i32
  }
}

</mosaic_0001>

<bundles_post_ra>
// kernel: basic_block_forward.1
= control target key start
LH: loop header
LB: loop body
LE: loop exit
PB: predicated region body
PF: predicated region fallthrough
CT: control target
= control target key end

     0   :  { %s6345_s13 = smov 0   ;;  %s10328_s0 = inlined_call_operand.vmem [shape: f32[2,16,1024], index: 0, kind: input, shape index: {}]   ;;  %s10329_s1 = inlined_call_operand.vmem [shape: f32[9,16,16], index: 1, kind: input, shape index: {}]   ;;  %s10330_s2 = inlined_call_operand.vmem [shape: f32[16,1], index: 2, kind: input, shape index: {}]   ;;  %s10331_s3 = inlined_call_operand.vmem [shape: f32[16,1024], index: 3, kind: input, shape index: {}]   ;;  %s10332_s4 = inlined_call_operand.vmem [shape: f32[16,1024], index: 4, kind: input, shape index: {}]   ;;  %s10333_s5 = inlined_call_operand.vmem [shape: f32[9,16,16], index: 5, kind: input, shape index: {}]   ;;  %s10334_s6 = inlined_call_operand.vmem [shape: f32[16,1], index: 6, kind: input, shape index: {}]   ;;  %s10335_s7 = inlined_call_operand.vmem [shape: f32[16,1024], index: 7, kind: input, shape index: {}]   ;;  %s10336_s8 = inlined_call_operand.vmem [shape: f32[16,1024], index: 8, kind: input, shape index: {}]   ;;  %s10337_s9 = inlined_call_operand.vmem [shape: f32[9,1,1024], index: 9, kind: input, shape index: {}]   ;;  %s10338_s10 = inlined_call_operand.vmem [shape: f32[2,16,1024], index: 10, kind: output, shape index: {}]  }
   0x1 LB: > { %s5625_s14 = sadd.s32 4294967295, %s6279_s13   ;;  %p5629_p0 = scmp.ge.s32.totalorder %s6279_s13, 1  ;;  %s6279_s13 = sphi %s6345_s13, %s20_s13  }
   0x2   : > { %p312_p1 = scmp.lt.s32.totalorder %s6279_s13, 3 }
   0x4   : > { %p313_p2 = pnand %p5629_p0, %p312_p1 }
   0x6   : > { %316 = sbr.rel (%p313_p2) target bundleno = 1252 (0x4e4), region = 60 }
   0xb   : > { %p350_p3 = scmp.lt.s32.totalorder %s5625_s14, 1  ;;  %s6281_s19 = smov 32   ;;  %v408_v18 = vlaneseq  ;;  %v6502_v21 = vld [vmem:[%s10337_s9 + $0x8] sm:$0xff]  ;;  %v6533_v31 = vld [vmem:[%s10329_s1 + $0x10] sm:$0xff]  ;;  %vm550_vm1 = vcmask 130048   ;;  %v6569_v42 = vld [vmem:[%s10329_s1 + $0x18] sm:$0xff] }
   0xc   : > { %s6282_s20 = smov 33   ;;  %s6283_s21 = smov 31   ;;  %v6510_v22 = vperm.slane %v6502_v21, 2  ;;  %v6524_v30 = vperm.slane %v6502_v21, 3  ;;  %v6554_v39 = vperm.slane %v6502_v21, 0  ;;  %v6557_v40 = vperm.slane %v6502_v21, 1 }
   0xd   : > { %s10768_s14 = smov (!%p350_p3, %s5625_s14), 1  ;;  %v6497_v20 = vand.u32 127, %v408_v18  ;;  %s6284_s24 = smov 1   ;;  %v6564_v41 = vperm.slane %v6502_v21, 7  ;;  %v6611_v61 = vperm.slane %v6502_v21, 6  ;;  %v6618_v62 = vld [vmem:[%s10337_s9] sm:$0xff] }
   0xe   : > { %s5963_s15 = sshll.u32 %s10768_s14, 7  ;;  %10470 = vst [vmem:[#allocation3_spill] sm:$0xff] %v6510_v22  ;;  %s6285_s16 = smov 127  }
   0xf   : > { %s6361_s18 = scalar_lea.vmem %s10328_s0, %s5963_s15  ;;  %10469 = vst [vmem:[#allocation2_spill] sm:$0xff] %v6497_v20  ;;  %vm495_vm0 = vcmp.lt.s32.totalorder %v6497_v20, 32  ;;  %vm410_vm2 = vcmp.lt.s32.totalorder %v6497_v20, 33  ;;  %vm963_vm3 = vcmp.lt.s32.totalorder %v6497_v20, 31  ;;  %s6286_s28 = smov 97   ;;  %vm1256_vm4 = vcmp.lt.s32.totalorder %v6497_v20, 1 }
  0x10   : > { %v6364_v0 = vld [vmem:[%s6361_s18 + $0x50] sm:$0xff]  ;;  %v6367_v1 = vld [vmem:[%s6361_s18 + $0x48] sm:$0xff]  ;;  %v6379_v3 = vld [vmem:[%s6361_s18 + $0x58] sm:$0xff]  ;;  %10471 = vst [vmem:[#allocation4_spill] sm:$0xff] %v6524_v30  ;;  %s6287_s17 = smov 96   ;;  %vm1758_vm5 = vcmp.lt.s32.totalorder %v6497_v20, 127 }
  0x11   : > { %v6370_v2 = vld [vmem:[%s6361_s18 + $0x10] sm:$0xff]  ;;  %473 = vrot.lane.b32.xlu0 %v6364_v0, %s6281_s19  ;;  %469 = vrot.lane.b32.xlu2 %v6367_v1, %s6281_s19  ;;  %v6382_v4 = vld [vmem:[%s6361_s18 + $0x8] sm:$0xff]  ;;  %10472 = vst [vmem:[#allocation5_spill] sm:$0xff] %v6554_v39  ;;  %s6288_s23 = smov 95   ;;  %vm2051_vm6 = vcmp.lt.s32.totalorder %v6497_v20, 97  ;;  %vm2344_vm7 = vcmp.lt.s32.totalorder %v6497_v20, 96 }
  0x12   : > { %471 = vrot.lane.b32.xlu1 %v6370_v2, %s6281_s19  ;;  %v6385_v5 = vld [vmem:[%s6361_s18 + $0x18] sm:$0xff]  ;;  %v6394_v6 = vld [vmem:[%s6361_s18 + $0x40] sm:$0xff]  ;;  %v6400_v8 = vld [vmem:[%s6361_s18 + $0x70] sm:$0xff]  ;;  %10473 = vst [vmem:[#allocation6_spill] sm:$0xff] %v6557_v40  ;;  %vm2637_vm8 = vcmp.lt.s32.totalorder %v6497_v20, 95 }
  0x13   : > { %v6397_v7 = vld [vmem:[%s6361_s18 + $0x78] sm:$0xff]  ;;  %v6412_v10 = vld [vmem:[%s6361_s18] sm:$0xff]  ;;  %v6415_v11 = vld [vmem:[%s6361_s18 + $0x30] sm:$0xff]  ;;  %10474 = vst [vmem:[#allocation7_spill] sm:$0xff] %v6564_v41 }
  0x14   : > { %v6409_v9 = vld [vmem:[%s6361_s18 + $0x38] sm:$0xff]  ;;  %v6424_v12 = vld [vmem:[%s6361_s18 + $0x68] sm:$0xff]  ;;  %v6436_v14 = vld [vmem:[%s6361_s18 + $0x60] sm:$0xff]  ;;  %10475 = vst [vmem:[#allocation8_spill] sm:$0xff] %v6611_v61 }
  0x15   : > { %v6427_v13 = vld [vmem:[%s6361_s18 + $0x28] sm:$0xff]  ;;  %v6445_v15 = vld [vmem:[%s6361_s18 + $0x20] sm:$0xff] }
  0x19   : > { %477 = vrot.lane.b32.xlu0 %v6379_v3, %s6281_s19  ;;  %467 = vrot.lane.b32.xlu2 %v6382_v4, %s6281_s19 }
  0x1a   : > { %475 = vrot.lane.b32.xlu1 %v6385_v5, %s6281_s19 }
  0x21   : > { %465 = vrot.lane.b32.xlu0 %v6394_v6, %s6281_s19  ;;  %493 = vrot.lane.b32.xlu2 %v6397_v7, %s6281_s19 }
  0x22   : > { %489 = vrot.lane.b32.xlu1 %v6400_v8, %s6281_s19 }
  0x29   : > { %491 = vrot.lane.b32.xlu2 %v6409_v9, %s6281_s19  ;;  %463 = vrot.lane.b32.xlu0 %v6412_v10, %s6281_s19 }
  0x2a   : > { %487 = vrot.lane.b32.xlu1 %v6415_v11, %s6281_s19 }
  0x31   : > { %386 = vrot.lane.b32.xlu2 %v6364_v0, %s6282_s20  ;;  %485 = vrot.lane.b32.xlu0 %v6424_v12, %s6281_s19 }
  0x32   : > { %483 = vrot.lane.b32.xlu1 %v6427_v13, %s6281_s19 }
  0x39   : > { %384 = vrot.lane.b32.xlu2 %v6370_v2, %s6282_s20  ;;  %390 = vrot.lane.b32.xlu0 %v6379_v3, %s6282_s20 }
  0x3a   : > { %481 = vrot.lane.b32.xlu1 %v6436_v14, %s6281_s19 }
  0x41   : > { %382 = vrot.lane.b32.xlu2 %v6367_v1, %s6282_s20  ;;  %388 = vrot.lane.b32.xlu0 %v6385_v5, %s6282_s20 }
  0x42   : > { %479 = vrot.lane.b32.xlu1 %v6445_v15, %s6281_s19 }
  0x49   : > { %402 = vrot.lane.b32.xlu2 %v6400_v8, %s6282_s20  ;;  %380 = vrot.lane.b32.xlu0 %v6382_v4, %s6282_s20 }
  0x4a   : > { %378 = vrot.lane.b32.xlu1 %v6394_v6, %s6282_s20 }
  0x51   : > { %400 = vrot.lane.b32.xlu2 %v6415_v11, %s6282_s20  ;;  %406 = vrot.lane.b32.xlu0 %v6397_v7, %s6282_s20 }
  0x52   : > { %376 = vrot.lane.b32.xlu1 %v6412_v10, %s6282_s20 }
  0x59   : > { %396 = vrot.lane.b32.xlu2 %v6427_v13, %s6282_s20  ;;  %404 = vrot.lane.b32.xlu0 %v6409_v9, %s6282_s20 }
  0x5a   : > { %398 = vrot.lane.b32.xlu1 %v6424_v12, %s6282_s20 }
  0x61   : > { %945 = vrot.lane.b32.xlu2 %v6379_v3, %s6283_s21  ;;  %394 = vrot.lane.b32.xlu0 %v6436_v14, %s6282_s20 }
  0x62   : > { %941 = vrot.lane.b32.xlu1 %v6364_v0, %s6283_s21 }
  0x69   : > { %943 = vrot.lane.b32.xlu2 %v6385_v5, %s6283_s21  ;;  %392 = vrot.lane.b32.xlu0 %v6445_v15, %s6282_s20 }
  0x6a   : > { %939 = vrot.lane.b32.xlu1 %v6370_v2, %s6283_s21 }
  0x6b   : > { %v470_v16 = vpop.permute.xlu2 %469 }
  0x71   : > { %933 = vrot.lane.b32.xlu2 %v6394_v6, %s6283_s21  ;;  %937 = vrot.lane.b32.xlu0 %v6367_v1, %s6283_s21 }
  0x72   : > { %935 = vrot.lane.b32.xlu1 %v6382_v4, %s6283_s21 }
  0x73   : > { %v6489_v17 = vpop.permute.xlu2 %467 }
  0x79   : > { %931 = vrot.lane.b32.xlu2 %v6412_v10, %s6283_s21  ;;  %957 = vrot.lane.b32.xlu0 %v6400_v8, %s6283_s21 }
  0x7a   : > { %961 = vrot.lane.b32.xlu1 %v6397_v7, %s6283_s21 }
  0x7b   : > { %v494_v19 = vpop.permute.xlu2 %493 }
  0x81   : > { %953 = vrot.lane.b32.xlu2 %v6424_v12, %s6283_s21  ;;  %955 = vrot.lane.b32.xlu0 %v6415_v11, %s6283_s21 }
  0x82   : > { %959 = vrot.lane.b32.xlu1 %v6409_v9, %s6283_s21 }
  0x83   : > { %v474_v23 = vpop.permute.xlu0 %473  ;;  %v492_v24 = vpop.permute.xlu2 %491 }
  0x84   : > { %v472_v25 = vpop.permute.xlu1 %471  ;;  %v507_v26 = vsel %vm495_vm0, %v470_v16, %v474_v23 }
  0x85   : > { %v541_v27 = vmul.f32 %v6510_v22, %v507_v26  ;;  %v506_v28 = vsel %vm495_vm0, %v6489_v17, %v472_v25 }
  0x86   : > { %v533_v29 = vmul.f32 %v6510_v22, %v506_v28  ;;  %v6648_v28 = vperm.slane %v6618_v62, 3 }
  0x87   : > { %617 = vmatpush.msra.mxu2 %v541_v27 }
  0x88   : > { %10477 = vst [vmem:[#allocation10_spill] sm:$0xff] %v6648_v28 }
  0x89   : > { %618 = vmatpush.msra.mxu2 %v533_v29  ;;  %1234 = vrot.lane.b32.xlu2 %v6364_v0, %s6284_s24  ;;  %v6655_v29 = vperm.slane %v6502_v21, 4 }
  0x8a   : > { %949 = vrot.lane.b32.xlu1 %v6436_v14, %s6283_s21  ;;  %951 = vrot.lane.b32.xlu0 %v6427_v13, %s6283_s21 }
  0x8b   : > { %v6535_v32 = vpop.permute.xlu0 %477  ;;  %v6537_v33 = vpop.permute.xlu2 %386  ;;  %5641 = vmatmul.msk.f32.vlgmr.msra.gmra.mxu2 %vm550_vm1, %v6533_v31  ;;  %10478 = vst [vmem:[#allocation11_spill] sm:$0xff] %v6655_v29 }
  0x8c   : > { %v6541_v34 = vpop.permute.xlu1 %475  ;;  %v505_v35 = vsel %vm495_vm0, %v474_v23, %v6535_v32 }
  0x8d   : > { %v542_v36 = vmul.f32 %v6524_v30, %v505_v35  ;;  %v504_v37 = vsel %vm495_vm0, %v472_v25, %v6541_v34  ;;  %v6658_v35 = vperm.slane %v6502_v21, 5 }
  0x8e   : > { %v534_v38 = vmul.f32 %v6524_v30, %v504_v37 }
  0x8f   : > { %640 = vmatpush.msra.mxu3 %v542_v36  ;;  %10479 = vst [vmem:[#allocation12_spill] sm:$0xff] %v6658_v35 }
  0x91   : > { %641 = vmatpush.msra.mxu3 %v534_v38  ;;  %1232 = vrot.lane.b32.xlu2 %v6370_v2, %s6284_s24 }
  0x92   : > { %947 = vrot.lane.b32.xlu1 %v6445_v15, %s6283_s21  ;;  %1238 = vrot.lane.b32.xlu0 %v6379_v3, %s6284_s24 }
  0x93   : > { %v466_v43 = vpop.permute.xlu0 %465  ;;  %v6571_v44 = vpop.permute.xlu2 %384  ;;  %5643 = vmatmul.msk.f32.vlgmr.msra.gmra.mxu3 %vm550_vm1, %v6533_v31  ;;  %5642 = vmatmul.msk.f32.gmra.mxu2 %vm550_vm1, %v6569_v42 }
  0x94   : > { %v490_v45 = vpop.permute.xlu1 %489  ;;  %v511_v46 = vsel %vm495_vm0, %v494_v19, %v466_v43  ;;  %v509_v47 = vsel %vm495_vm0, %v466_v43, %v470_v16 }
  0x95   : > { %v539_v48 = vmul.f32 %v6554_v39, %v511_v46  ;;  %v540_v49 = vmul.f32 %v6557_v40, %v509_v47  ;;  %v497_v50 = vsel %vm495_vm0, %v490_v45, %v494_v19  ;;  %v6632_v19 = vperm.slane %v6618_v62, 2 }
  0x96   : > { %v546_v51 = vmul.f32 %v6564_v41, %v497_v50 }
  0x97   : > { %571 = vmatpush.msra.mxu0 %v539_v48  ;;  %594 = vmatpush.msra.mxu1 %v540_v49  ;;  %10476 = vst [vmem:[#allocation9_spill] sm:$0xff] %v6632_v19 }
  0x98   : > { %732 = vmatpush.msrb.mxu3 %v546_v51 }
  0x99   : > { %1228 = vrot.lane.b32.xlu2 %v6382_v4, %s6284_s24 }
  0x9a   : > { %1230 = vrot.lane.b32.xlu1 %v6367_v1, %s6284_s24  ;;  %1236 = vrot.lane.b32.xlu0 %v6385_v5, %s6284_s24 }
  0x9b   : > { %v6592_v52 = vpop.permute.xlu2 %382  ;;  %v464_v53 = vpop.permute.xlu0 %463  ;;  %5644 = vmatmul.msk.f32.gmra.mxu3 %vm550_vm1, %v6569_v42 }
  0x9c   : > { %v488_v54 = vpop.permute.xlu1 %487  ;;  %v510_v55 = vsel %vm495_vm0, %v492_v24, %v464_v53  ;;  %v508_v56 = vsel %vm495_vm0, %v464_v53, %v6489_v17  ;;  %v422_v25 = vsel %vm410_vm2, %v6592_v52, %v6537_v33 }
  0x9d   : > { %v531_v57 = vmul.f32 %v6554_v39, %v510_v55  ;;  %v532_v58 = vmul.f32 %v6557_v40, %v508_v56  ;;  %v496_v59 = vsel %vm495_vm0, %v488_v54, %v492_v24  ;;  %v455_v27 = vmul.f32 %v6632_v19, %v422_v25  ;;  %v7631_v39 = vld [vmem:[%s10329_s1 + $0x68] sm:$0xff] }
  0x9e   : > { %v538_v60 = vmul.f32 %v6564_v41, %v496_v59 }
  0x9f   : > { %572 = vmatpush.msra.mxu0 %v531_v57  ;;  %595 = vmatpush.msra.mxu1 %v532_v58  ;;  %v6709_v57 = vld [vmem:[%s10329_s1] sm:$0xff] }
  0xa0   : > { %733 = vmatpush.msrb.mxu3 %v538_v60  ;;  %5637 = vmatmul.msk.f32.vlgmr.msra.gmra.mxu0 %vm550_vm1, %v6533_v31 }
  0xa1   : > { %1254 = vrot.lane.b32.xlu2 %v6397_v7, %s6284_s24  ;;  %5639 = vmatmul.msk.f32.vlgmr.msra.gmra.mxu1 %vm550_vm1, %v6533_v31 }
  0xa2   : > { %1250 = vrot.lane.b32.xlu1 %v6400_v8, %s6284_s24  ;;  %1226 = vrot.lane.b32.xlu0 %v6394_v6, %s6284_s24 }
  0xa3   : > { %v6625_v63 = vpop.permute.xlu2 %402  ;;  %v486_v16 = vpop.permute.xlu0 %485  ;;  %5651 = vmatmul.msk.f32.vlgmr.msrb.gmra.mxu3 %vm550_vm1, %v6533_v31 }
  0xa4   : > { %v484_v17 = vpop.permute.xlu1 %483  ;;  %v499_v18 = vsel %vm495_vm0, %v486_v16, %v490_v45 }
  0xa5   : > { %v545_v23 = vmul.f32 %v6611_v61, %v499_v18  ;;  %v498_v24 = vsel %vm495_vm0, %v484_v17, %v488_v54 }
  0xa6   : > { %v537_v26 = vmul.f32 %v6611_v61, %v498_v24 }
  0xa7   : > { %709 = vmatpush.msrb.mxu2 %v545_v23 }
  0xa8   : > { %5638 = vmatmul.msk.f32.gmra.mxu0 %vm550_vm1, %v6569_v42 }
  0xa9   : > { %1252 = vrot.lane.b32.xlu2 %v6409_v9, %s6284_s24  ;;  %710 = vmatpush.msrb.mxu2 %v537_v26 }
  0xaa   : > { %1248 = vrot.lane.b32.xlu1 %v6415_v11, %s6284_s24  ;;  %1224 = vrot.lane.b32.xlu0 %v6412_v10, %s6284_s24 }
  0xab   : > { %807 = vmatpush.msra.mxu2 %v455_v27  ;;  %v6660_v36 = vpop.permute.xlu2 %400  ;;  %v6662_v37 = vpop.permute.xlu0 %390  ;;  %5640 = vmatmul.msk.f32.gmra.mxu1 %vm550_vm1, %v6569_v42 }
  0xac   : > { %v482_v38 = vpop.permute.xlu1 %481  ;;  %v420_v43 = vsel %vm410_vm2, %v6537_v33, %v6662_v37  ;;  %5652 = vmatmul.msk.f32.gmra.mxu3 %vm550_vm1, %v6569_v42  ;;  %5649 = vmatmul.msk.f32.vlgmr.msrb.gmra.mxu2 %vm550_vm1, %v6533_v31 }
  0xad   : > { %v456_v21 = vmul.f32 %v6648_v28, %v420_v43  ;;  %v503_v45 = vsel %vm495_vm0, %v6535_v32, %v482_v38  ;;  %v501_v46 = vsel %vm495_vm0, %v482_v38, %v486_v16 }
  0xae   : > { %v543_v47 = vmul.f32 %v6655_v29, %v503_v45  ;;  %v544_v48 = vmul.f32 %v6658_v35, %v501_v46 }
  0xaf   : > { %830 = vmatpush.msra.mxu3 %v456_v21 }
  0xb0   : > { %663 = vmatpush.msrb.mxu0 %v543_v47  ;;  %686 = vmatpush.msrb.mxu1 %v544_v48  ;;  %v6786_v48 = vperm.slane %v6618_v62, 6 }
  0xb1   : > { %1242 = vrot.lane.b32.xlu2 %v6436_v14, %s6284_s24 }
  0xb2   : > { %1244 = vrot.lane.b32.xlu1 %v6427_v13, %s6284_s24  ;;  %1246 = vrot.lane.b32.xlu0 %v6424_v12, %s6284_s24  ;;  %10483 = vst [vmem:[#allocation16_spill] sm:$0xff] %v6786_v48 }
  0xb3   : > { %v6688_v32 = vpop.permute.xlu2 %396  ;;  %v6690_v33 = vpop.permute.xlu0 %388 }
  0xb4   : > { %v480_v49 = vpop.permute.xlu1 %479  ;;  %v419_v50 = vsel %vm410_vm2, %v6571_v44, %v6690_v33  ;;  %5650 = vmatmul.msk.f32.gmra.mxu2 %vm550_vm1, %v6569_v42 }
  0xb5   : > { %v502_v51 = vsel %vm495_vm0, %v6541_v34, %v480_v49  ;;  %v500_v53 = vsel %vm495_vm0, %v480_v49, %v484_v17  ;;  %v448_v54 = vmul.f32 %v6648_v28, %v419_v50  ;;  %v6720_v34 = vperm.slane %v6618_v62, 1 }
  0xb6   : > { %v535_v55 = vmul.f32 %v6655_v29, %v502_v51  ;;  %v536_v56 = vmul.f32 %v6658_v35, %v500_v53 }
  0xb7   : > { %831 = vmatpush.msra.mxu3 %v448_v54  ;;  %10480 = vst [vmem:[#allocation13_spill] sm:$0xff] %v6720_v34 }
  0xb8   : > { %664 = vmatpush.msrb.mxu0 %v535_v55  ;;  %687 = vmatpush.msrb.mxu1 %v536_v56  ;;  %v413_v56 = vsel %vm410_vm2, %v6688_v32, %v6660_v36 }
  0xb9   : > { %1744 = vrot.lane.b32.xlu2 %v6436_v14, %s6285_s16  ;;  %5645 = vmatmul.msk.f32.vlgmr.msrb.gmra.mxu0 %vm550_vm1, %v6533_v31 }
  0xba   : > { %1740 = vrot.lane.b32.xlu1 %v6379_v3, %s6285_s16  ;;  %1240 = vrot.lane.b32.xlu0 %v6445_v15, %s6284_s24 }
  0xbb   : > { %v6722_v58 = vpop.permute.xlu2 %945  ;;  %v381_v59 = vpop.permute.xlu0 %380  ;;  %5647 = vmatmul.msk.f32.vlgmr.msrb.gmra.mxu1 %vm550_vm1, %v6533_v31  ;;  %5659 = vmatmul.msk.f32.vlgmr.msra.gmra.mxu3 %vm550_vm1, %v6709_v57  ;;  %v6739_v31 = vld [vmem:[%s10329_s1 + $0x8] sm:$0xff] }
  0xbc   : > { %v379_v60 = vpop.permute.xlu1 %378  ;;  %v421_v16 = vsel %vm410_vm2, %v381_v59, %v6571_v44  ;;  %v6746_v44 = vperm.slane %v6618_v62, 0 }
  0xbd   : > { %v424_v17 = vsel %vm410_vm2, %v379_v60, %v6592_v52  ;;  %v447_v18 = vmul.f32 %v6632_v19, %v421_v16  ;;  %v6749_v52 = vperm.slane %v6618_v62, 7  ;;  %v6819_v16 = vperm.slane %v6618_v62, 5 }
  0xbe   : > { %v454_v23 = vmul.f32 %v6720_v34, %v424_v17  ;;  %10481 = vst [vmem:[#allocation14_spill] sm:$0xff] %v6746_v44 }
  0xbf   : > { %808 = vmatpush.msra.mxu2 %v447_v18  ;;  %10482 = vst [vmem:[#allocation15_spill] sm:$0xff] %v6749_v52 }
  0xc0   : > { %784 = vmatpush.msra.mxu1 %v454_v23  ;;  %5657 = vmatmul.msk.f32.vlgmr.msra.gmra.mxu2 %vm550_vm1, %v6709_v57  ;;  %10485 = vst [vmem:[#allocation18_spill] sm:$0xff] %v6819_v16 }
  0xc1   : > { %1736 = vrot.lane.b32.xlu2 %v6364_v0, %s6285_s16  ;;  %5646 = vmatmul.msk.f32.gmra.mxu0 %vm550_vm1, %v6569_v42 }
  0xc2   : > { %1742 = vrot.lane.b32.xlu1 %v6445_v15, %s6285_s16  ;;  %1738 = vrot.lane.b32.xlu0 %v6385_v5, %s6285_s16 }
  0xc3   : > { %v6757_v24 = vpop.permute.xlu2 %943  ;;  %v407_v25 = vpop.permute.xlu0 %406  ;;  %5648 = vmatmul.msk.f32.gmra.mxu1 %vm550_vm1, %v6569_v42  ;;  %5660 = vmatmul.msk.f32.gmra.mxu3 %vm550_vm1, %v6739_v31 }
  0xc4   : > { %v377_v26 = vpop.permute.xlu1 %376  ;;  %v412_v27 = vsel %vm410_vm2, %v6625_v63, %v407_v25  ;;  %v426_v38 = vsel %vm410_vm2, %v407_v25, %v379_v60  ;;  %v6806_v60 = vld [vmem:[%s10337_s9 + $0x10] sm:$0xff] }
  0xc5   : > { %v423_v43 = vsel %vm410_vm2, %v377_v26, %v381_v59  ;;  %v453_v21 = vmul.f32 %v6746_v44, %v426_v38  ;;  %v460_v45 = vmul.f32 %v6749_v52, %v412_v27  ;;  %v6827_v17 = vperm.slane %v6806_v60, 3 }
  0xc6   : > { %v446_v42 = vmul.f32 %v6720_v34, %v423_v43 }
  0xc7   : > { %761 = vmatpush.msra.mxu0 %v453_v21  ;;  %922 = vmatpush.msrb.mxu3 %v460_v45  ;;  %10486 = vst [vmem:[#allocation19_spill] sm:$0xff] %v6827_v17 }
  0xc8   : > { %785 = vmatpush.msra.mxu1 %v446_v42  ;;  %5658 = vmatmul.msk.f32.gmra.mxu2 %vm550_vm1, %v6739_v31 }
  0xc9   : > { %1732 = vrot.lane.b32.xlu2 %v6367_v1, %s6285_s16 }
  0xca   : > { %1728 = vrot.lane.b32.xlu1 %v6394_v6, %s6285_s16  ;;  %1734 = vrot.lane.b32.xlu0 %v6370_v2, %s6285_s16 }
  0xcb   : > { %v6781_v46 = vpop.permute.xlu2 %933  ;;  %v405_v47 = vpop.permute.xlu0 %404  ;;  %5655 = vmatmul.msk.f32.vlgmr.msra.gmra.mxu1 %vm550_vm1, %v6709_v57 }
  0xcc   : > { %v399_v49 = vpop.permute.xlu1 %398  ;;  %v411_v50 = vsel %vm410_vm2, %v6660_v36, %v405_v47  ;;  %v425_v51 = vsel %vm410_vm2, %v405_v47, %v377_v26  ;;  %v6816_v36 = vperm.slane %v6618_v62, 4 }
  0xcd   : > { %v414_v53 = vsel %vm410_vm2, %v399_v49, %v6625_v63  ;;  %v445_v54 = vmul.f32 %v6746_v44, %v425_v51  ;;  %v452_v55 = vmul.f32 %v6749_v52, %v411_v50  ;;  %v451_v63 = vmul.f32 %v6786_v48, %v413_v56  ;;  %v7486_v44 = vld [vmem:[%s10329_s1 + $0x58] sm:$0xff] }
  0xce   : > { %v459_v59 = vmul.f32 %v6786_v48, %v414_v53  ;;  %10484 = vst [vmem:[#allocation17_spill] sm:$0xff] %v6816_v36 }
  0xcf   : > { %762 = vmatpush.msra.mxu0 %v445_v54  ;;  %923 = vmatpush.msrb.mxu3 %v452_v55  ;;  %v6887_v55 = vperm.slane %v6806_v60, 2 }
  0xd0   : > { %899 = vmatpush.msrb.mxu2 %v459_v59  ;;  %5653 = vmatmul.msk.f32.vlgmr.msra.gmra.mxu0 %vm550_vm1, %v6709_v57 }
  0xd1   : > { %5667 = vmatmul.msk.f32.vlgmr.msrb.gmra.mxu3 %vm550_vm1, %v6709_v57  ;;  %1730 = vrot.lane.b32.xlu2 %v6382_v4, %s6285_s16  ;;  %10488 = vst [vmem:[#allocation21_spill] sm:$0xff] %v6887_v55 }
  0xd2   : > { %1726 = vrot.lane.b32.xlu1 %v6412_v10, %s6285_s16  ;;  %1756 = vrot.lane.b32.xlu0 %v6397_v7, %s6285_s16 }
  0xd3   : > { %900 = vmatpush.msrb.mxu2 %v451_v63  ;;  %v6829_v18 = vpop.permute.xlu2 %931  ;;  %v395_v23 = vpop.permute.xlu0 %394  ;;  %5656 = vmatmul.msk.f32.gmra.mxu1 %vm550_vm1, %v6739_v31 }
  0xd4   : > { %v942_v62 = vpop.permute.xlu1 %941  ;;  %v416_v25 = vsel %vm410_vm2, %v395_v23, %v399_v49  ;;  %v418_v26 = vsel %vm410_vm2, %v6662_v37, %v395_v23  ;;  %5665 = vmatmul.msk.f32.vlgmr.msrb.gmra.mxu2 %vm550_vm1, %v6709_v57 }
  0xd5   : > { %v973_v27 = vsel %vm963_vm3, %v942_v62, %v6722_v58  ;;  %v457_v38 = vmul.f32 %v6816_v36, %v418_v26  ;;  %v458_v43 = vmul.f32 %v6819_v16, %v416_v25 }
  0xd6   : > { %v1010_v21 = vmul.f32 %v6827_v17, %v973_v27 }
  0xd7   : > { %853 = vmatpush.msrb.mxu0 %v457_v38  ;;  %876 = vmatpush.msrb.mxu1 %v458_v43  ;;  %v6910_v38 = vld [vmem:[%s10329_s1 + $0x28] sm:$0xff] }
  0xd8   : > { %1107 = vmatpush.msra.mxu3 %v1010_v21  ;;  %5654 = vmatmul.msk.f32.gmra.mxu0 %vm550_vm1, %v6739_v31  ;;  %v6922_v21 = vperm.slane %v6806_v60, 6 }
  0xd9   : > { %5668 = vmatmul.msk.f32.gmra.mxu3 %vm550_vm1, %v6739_v31  ;;  %1750 = vrot.lane.b32.xlu2 %v6415_v11, %s6285_s16 }
  0xda   : > { %1752 = vrot.lane.b32.xlu1 %v6400_v8, %s6285_s16  ;;  %1754 = vrot.lane.b32.xlu0 %v6409_v9, %s6285_s16  ;;  %10489 = vst [vmem:[#allocation22_spill] sm:$0xff] %v6922_v21 }
  0xdb   : > { %v6856_v37 = vpop.permute.xlu2 %953  ;;  %v393_v45 = vpop.permute.xlu0 %392 }
  0xdc   : > { %v940_v42 = vpop.permute.xlu1 %939  ;;  %v415_v47 = vsel %vm410_vm2, %v393_v45, %v6688_v32  ;;  %v417_v49 = vsel %vm410_vm2, %v6690_v33, %v393_v45  ;;  %5666 = vmatmul.msk.f32.gmra.mxu2 %vm550_vm1, %v6739_v31  ;;  %v6875_v32 = vld [vmem:[%s10329_s1 + $0x20] sm:$0xff]  ;;  %v6884_v33 = vperm.slane %v6806_v60, 1 }
  0xdd   : > { %v972_v50 = vsel %vm963_vm3, %v940_v42, %v6757_v24  ;;  %v449_v51 = vmul.f32 %v6816_v36, %v417_v49  ;;  %v450_v53 = vmul.f32 %v6819_v16, %v415_v47 }
  0xde   : > { %v1002_v54 = vmul.f32 %v6827_v17, %v972_v50  ;;  %10487 = vst [vmem:[#allocation20_spill] sm:$0xff] %v6884_v33 }
  0xdf   : > { %854 = vmatpush.msrb.mxu0 %v449_v51  ;;  %877 = vmatpush.msrb.mxu1 %v450_v53 }
  0xe0   : > { %1108 = vmatpush.msra.mxu3 %v1002_v54  ;;  %5661 = vmatmul.msk.f32.vlgmr.msrb.gmra.mxu0 %vm550_vm1, %v6709_v57 }
  0xe1   : > { %5663 = vmatmul.msk.f32.vlgmr.msrb.gmra.mxu1 %vm550_vm1, %v6709_v57  ;;  %5678 = vmatmul.msk.f32.vlgmr.msra.gmra.mxu3 %vm550_vm1, %v6875_v32 }
  0xe2   : > { %2037 = vrot.lane.b32.xlu2 %v6436_v14, %s6286_s28  ;;  %2033 = vrot.lane.b32.xlu1 %v6379_v3, %s6286_s28 }
  0xe3   : > { %1748 = vrot.lane.b32.xlu0 %v6424_v12, %s6285_s16  ;;  %v6895_v57 = vpop.permute.xlu2 %1234  ;;  %v938_v56 = vpop.permute.xlu0 %937 }
  0xe4   : > { %v936_v59 = vpop.permute.xlu1 %935  ;;  %v975_v63 = vsel %vm963_vm3, %v938_v56, %v942_v62  ;;  %v977_v23 = vsel %vm963_vm3, %v6781_v46, %v938_v56 }
  0xe5   : > { %v1008_v25 = vmul.f32 %v6884_v33, %v977_v23  ;;  %v1009_v26 = vmul.f32 %v6887_v55, %v975_v63  ;;  %v976_v27 = vsel %vm963_vm3, %v6829_v18, %v936_v59  ;;  %v974_v62 = vsel %vm963_vm3, %v936_v59, %v940_v42 }
  0xe6   : > { %v1000_v43 = vmul.f32 %v6884_v33, %v976_v27  ;;  %v1001_v45 = vmul.f32 %v6887_v55, %v974_v62  ;;  %v6930_v42 = vperm.slane %v6806_v60, 0 }
  0xe7   : > { %1061 = vmatpush.msra.mxu1 %v1008_v25  ;;  %1084 = vmatpush.msra.mxu2 %v1009_v26 }
  0xe8   : > { %5662 = vmatmul.msk.f32.gmra.mxu0 %vm550_vm1, %v6739_v31  ;;  %10490 = vst [vmem:[#allocation23_spill] sm:$0xff] %v6930_v42 }
  0xe9   : > { %5664 = vmatmul.msk.f32.gmra.mxu1 %vm550_vm1, %v6739_v31  ;;  %5679 = vmatmul.msk.f32.gmra.mxu3 %vm550_vm1, %v6910_v38  ;;  %v6933_v31 = vperm.slane %v6806_v60, 7 }
  0xea   : > { %2035 = vrot.lane.b32.xlu2 %v6445_v15, %s6286_s28  ;;  %2031 = vrot.lane.b32.xlu1 %v6385_v5, %s6286_s28 }
  0xeb   : > { %10491 = vst [vmem:[#allocation24_spill] sm:$0xff] %v6933_v31  ;;  %1746 = vrot.lane.b32.xlu0 %v6427_v13, %s6285_s16  ;;  %1062 = vmatpush.msra.mxu1 %v1000_v43  ;;  %v6937_v47 = vpop.permute.xlu2 %1232  ;;  %v958_v49 = vpop.permute.xlu0 %957 }
  0xec   : > { %1085 = vmatpush.msra.mxu2 %v1001_v45  ;;  %v962_v50 = vpop.permute.xlu1 %961  ;;  %v967_v51 = vsel %vm963_vm3, %v6856_v37, %v958_v49  ;;  %v6983_v45 = vperm.slane %v6806_v60, 5 }
  0xed   : > { %5676 = vmatmul.msk.f32.vlgmr.msra.gmra.mxu2 %vm550_vm1, %v6875_v32  ;;  %v979_v53 = vsel %vm963_vm3, %v962_v50, %v6781_v46  ;;  %v965_v54 = vsel %vm963_vm3, %v958_v49, %v962_v50  ;;  %v1013_v56 = vmul.f32 %v6922_v21, %v967_v51 }
  0xee   : > { %v1007_v59 = vmul.f32 %v6930_v42, %v979_v53  ;;  %v1014_v63 = vmul.f32 %v6933_v31, %v965_v54  ;;  %10493 = vst [vmem:[#allocation26_spill] sm:$0xff] %v6983_v45 }
  0xef   : > { %1176 = vmatpush.msrb.mxu2 %v1013_v56 }
  0xf0   : > { %1038 = vmatpush.msra.mxu0 %v1007_v59  ;;  %1199 = vmatpush.msrb.mxu3 %v1014_v63 }
  0xf1   : > { %5674 = vmatmul.msk.f32.vlgmr.msra.gmra.mxu1 %vm550_vm1, %v6875_v32 }
  0xf2   : > { %2021 = vrot.lane.b32.xlu2 %v6394_v6, %s6286_s28  ;;  %2027 = vrot.lane.b32.xlu1 %v6370_v2, %s6286_s28 }
  0xf3   : > { %2029 = vrot.lane.b32.xlu0 %v6364_v0, %s6286_s28  ;;  %v6960_v46 = vpop.permute.xlu2 %1228  ;;  %v956_v23 = vpop.permute.xlu0 %955 }
  0xf4   : > { %v960_v25 = vpop.permute.xlu1 %959 }
  0xf5   : > { %5677 = vmatmul.msk.f32.gmra.mxu2 %vm550_vm1, %v6910_v38  ;;  %v978_v26 = vsel %vm963_vm3, %v960_v25, %v6829_v18  ;;  %v964_v27 = vsel %vm963_vm3, %v956_v23, %v960_v25  ;;  %v6980_v18 = vperm.slane %v6806_v60, 4  ;;  %v7005_v25 = vld [vmem:[%s10337_s9 + $0x18] sm:$0xff] }
  0xf6   : > { %v999_v62 = vmul.f32 %v6930_v42, %v978_v26  ;;  %v1006_v43 = vmul.f32 %v6933_v31, %v964_v27  ;;  %v6252_v31 = vld [vmem:[%s6361_s18 + $0x58] sm:$0xff]  ;;  %v6253_v42 = vld [vmem:[%s6361_s18 + $0x20] sm:$0xff] }
  0xf7   : > { %10492 = vst [vmem:[#allocation25_spill] sm:$0xff] %v6980_v18 }
  0xf8   : > { %1039 = vmatpush.msra.mxu0 %v999_v62  ;;  %1200 = vmatpush.msrb.mxu3 %v1006_v43 }
  0xf9   : > { %5672 = vmatmul.msk.f32.vlgmr.msra.gmra.mxu0 %vm550_vm1, %v6875_v32  ;;  %5675 = vmatmul.msk.f32.gmra.mxu1 %vm550_vm1, %v6910_v38 }
  0xfa   : > { %5686 = vmatmul.msk.f32.vlgmr.msrb.gmra.mxu3 %vm550_vm1, %v6875_v32  ;;  %2019 = vrot.lane.b32.xlu2 %v6412_v10, %s6286_s28 }
  0xfb   : > { %2049 = vrot.lane.b32.xlu1 %v6397_v7, %s6286_s28  ;;  %2025 = vrot.lane.b32.xlu0 %v6367_v1, %s6286_s28  ;;  %v6989_v49 = vpop.permute.xlu2 %1254 }
  0xfc   : > { %v950_v50 = vpop.permute.xlu1 %949  ;;  %v952_v51 = vpop.permute.xlu0 %951 }
  0xfd   : > { %v969_v53 = vsel %vm963_vm3, %v950_v50, %v6856_v37  ;;  %v971_v54 = vsel %vm963_vm3, %v6722_v58, %v950_v50  ;;  %v966_v60 = vsel %vm963_vm3, %v952_v51, %v956_v23  ;;  %v7015_v58 = vperm.slane %v7005_v25, 3 }
  0xfe   : > { %v1011_v56 = vmul.f32 %v6980_v18, %v971_v54  ;;  %v1012_v59 = vmul.f32 %v6983_v45, %v969_v53  ;;  %v1005_v63 = vmul.f32 %v6922_v21, %v966_v60 }
  0xff   : > { %10494 = vst [vmem:[#allocation27_spill] sm:$0xff] %v7015_v58 }
 0x100   : > { %1130 = vmatpush.msrb.mxu0 %v1011_v56  ;;  %1153 = vmatpush.msrb.mxu1 %v1012_v59  ;;  %v1267_v56 = vsel %vm1256_vm4, %v6960_v46, %v6937_v47 }
 0x101   : > { %1177 = vmatpush.msrb.mxu2 %v1005_v63  ;;  %5673 = vmatmul.msk.f32.gmra.mxu0 %vm550_vm1, %v6910_v38 }
 0x102   : > { %5684 = vmatmul.msk.f32.vlgmr.msrb.gmra.mxu2 %vm550_vm1, %v6875_v32  ;;  %5687 = vmatmul.msk.f32.gmra.mxu3 %vm550_vm1, %v6910_v38 }
 0x103   : > { %2045 = vrot.lane.b32.xlu2 %v6400_v8, %s6286_s28  ;;  %2047 = vrot.lane.b32.xlu1 %v6409_v9, %s6286_s28  ;;  %v7021_v37 = vpop.permute.xlu2 %1252 }
 0x104   : > { %2023 = vrot.lane.b32.xlu0 %v6382_v4, %s6286_s28  ;;  %v948_v23 = vpop.permute.xlu1 %947  ;;  %v7025_v26 = vpop.permute.xlu0 %1238 }
 0x105   : > { %v968_v27 = vsel %vm963_vm3, %v948_v23, %v952_v51  ;;  %v970_v62 = vsel %vm963_vm3, %v6757_v24, %v948_v23  ;;  %v1266_v43 = vsel %vm1256_vm4, %v6895_v57, %v7025_v26  ;;  %v7054_v51 = vperm.slane %v7005_v25, 2 }
 0x106   : > { %v1303_v50 = vmul.f32 %v7015_v58, %v1266_v43  ;;  %v1003_v53 = vmul.f32 %v6980_v18, %v970_v62  ;;  %v1004_v54 = vmul.f32 %v6983_v45, %v968_v27  ;;  %v7074_v62 = vld [vmem:[%s10329_s1 + $0x30] sm:$0xff] }
 0x107   : > { %10495 = vst [vmem:[#allocation28_spill] sm:$0xff] %v7054_v51  ;;  %v1294_v43 = vmul.f32 %v7054_v51, %v1267_v56 }
 0x108   : > { %1131 = vmatpush.msrb.mxu0 %v1003_v53  ;;  %1154 = vmatpush.msrb.mxu1 %v1004_v54 }
 0x109   : > { %1400 = vmatpush.msra.mxu3 %v1303_v50  ;;  %5680 = vmatmul.msk.f32.vlgmr.msrb.gmra.mxu0 %vm550_vm1, %v6875_v32  ;;  %v7090_v50 = vperm.slane %v7005_v25, 1 }
 0x10a   : > { %5682 = vmatmul.msk.f32.vlgmr.msrb.gmra.mxu1 %vm550_vm1, %v6875_v32  ;;  %5685 = vmatmul.msk.f32.gmra.mxu2 %vm550_vm1, %v6910_v38 }
 0x10b   : > { %2326 = vrot.lane.b32.xlu2 %v6379_v3, %s6287_s17  ;;  %2041 = vrot.lane.b32.xlu1 %v6424_v12, %s6286_s28  ;;  %v7049_v24 = vpop.permute.xlu2 %1242  ;;  %10498 = vst [vmem:[#allocation31_spill] sm:$0xff] %v7090_v50 }
 0x10c   : > { %2043 = vrot.lane.b32.xlu0 %v6415_v11, %s6286_s28  ;;  %v1231_v60 = vpop.permute.xlu1 %1230  ;;  %v7056_v32 = vpop.permute.xlu0 %1236 }
 0x10d   : > { %v1268_v59 = vsel %vm1256_vm4, %v1231_v60, %v6895_v57  ;;  %v1265_v63 = vsel %vm1256_vm4, %v6937_v47, %v7056_v32  ;;  %v7084_v57 = vperm.slane %v7005_v25, 7  ;;  %v7087_v47 = vperm.slane %v7005_v25, 0 }
 0x10e   : > { %v1302_v23 = vmul.f32 %v7054_v51, %v1268_v59  ;;  %v1295_v27 = vmul.f32 %v7015_v58, %v1265_v63 }
 0x10f   : > { %10496 = vst [vmem:[#allocation29_spill] sm:$0xff] %v7084_v57 }
 0x110   : > { %1377 = vmatpush.msra.mxu2 %v1302_v23  ;;  %1401 = vmatpush.msra.mxu3 %v1295_v27  ;;  %10497 = vst [vmem:[#allocation30_spill] sm:$0xff] %v7087_v47  ;;  %v7116_v27 = vld [vmem:[%s10329_s1 + $0x38] sm:$0xff] }
 0x111   : > { %5681 = vmatmul.msk.f32.gmra.mxu0 %vm550_vm1, %v6910_v38  ;;  %5697 = vmatmul.msk.f32.vlgmr.msra.gmra.mxu3 %vm550_vm1, %v7074_v62 }
 0x112   : > { %5683 = vmatmul.msk.f32.gmra.mxu1 %vm550_vm1, %v6910_v38  ;;  %1378 = vmatpush.msra.mxu2 %v1294_v43 }
 0x113   : > { %2324 = vrot.lane.b32.xlu2 %v6385_v5, %s6287_s17  ;;  %2039 = vrot.lane.b32.xlu1 %v6427_v13, %s6286_s28  ;;  %v7096_v53 = vpop.permute.xlu2 %1744 }
 0x114   : > { %2330 = vrot.lane.b32.xlu0 %v6436_v14, %s6287_s17  ;;  %5695 = vmatmul.msk.f32.vlgmr.msra.gmra.mxu2 %vm550_vm1, %v7074_v62  ;;  %v1251_v38 = vpop.permute.xlu1 %1250  ;;  %v1227_v54 = vpop.permute.xlu0 %1226 }
 0x115   : > { %v1258_v56 = vsel %vm1256_vm4, %v1251_v38, %v6989_v49  ;;  %v1270_v59 = vsel %vm1256_vm4, %v1227_v54, %v1231_v60  ;;  %v1272_v13 = vsel %vm1256_vm4, %v6989_v49, %v1227_v54  ;;  %v7127_v60 = vperm.slane %v7005_v25, 4 }
 0x116   : > { %v1307_v63 = vmul.f32 %v7084_v57, %v1258_v56  ;;  %v1300_v14 = vmul.f32 %v7087_v47, %v1272_v13  ;;  %v1301_v23 = vmul.f32 %v7090_v50, %v1270_v59  ;;  %v7146_v59 = vpop.f32.mrf.mxu3 }
 0x117   : > { %10499 = vst [vmem:[#allocation32_spill] sm:$0xff] %v7127_v60 }
 0x118   : > { %1331 = vmatpush.msra.mxu0 %v1300_v14  ;;  %1354 = vmatpush.msra.mxu1 %v1301_v23 }
 0x119   : > { %1492 = vmatpush.msrb.mxu3 %v1307_v63 }
 0x11a   : > { %5698 = vmatmul.msk.f32.gmra.mxu3 %vm550_vm1, %v7116_v27 }
 0x11b   : > { %2320 = vrot.lane.b32.xlu2 %v6370_v2, %s6287_s17  ;;  %2322 = vrot.lane.b32.xlu1 %v6364_v0, %s6287_s17  ;;  %v7124_v49 = vpop.permute.xlu2 %1736  ;;  %v1264_v2 = vsel %vm1256_vm4, %v7025_v26, %v7049_v24 }
 0x11c   : > { %2328 = vrot.lane.b32.xlu0 %v6445_v15, %s6287_s17  ;;  %5696 = vmatmul.msk.f32.gmra.mxu2 %vm550_vm1, %v7116_v27  ;;  %v1249_v43 = vpop.permute.xlu1 %1248  ;;  %v1225_v54 = vpop.permute.xlu0 %1224  ;;  %v1304_v14 = vmul.f32 %v7127_v60, %v1264_v2 }
 0x11d   : > { %v1257_v0 = vsel %vm1256_vm4, %v1249_v43, %v7021_v37  ;;  %v1269_v56 = vsel %vm1256_vm4, %v1225_v54, %v6960_v46  ;;  %v1271_v15 = vsel %vm1256_vm4, %v7021_v37, %v1225_v54  ;;  %v7157_v46 = vperm.slane %v7005_v25, 5 }
 0x11e   : > { %v1292_v13 = vmul.f32 %v7087_v47, %v1271_v15  ;;  %v1293_v63 = vmul.f32 %v7090_v50, %v1269_v56  ;;  %v1299_v26 = vmul.f32 %v7084_v57, %v1257_v0  ;;  %v7160_v37 = vperm.slane %v7005_v25, 6  ;;  %v7180_v15 = vpop.f32.mrf.mxu2  ;;  %v7307_v57 = vld [vmem:[%s6361_s18 + $0x8] sm:$0xff] }
 0x11f   : > { %10500 = vst [vmem:[#allocation33_spill] sm:$0xff] %v7157_v46  ;;  %v7332_v50 = vld [vmem:[%s6361_s18 + $0x68] sm:$0xff] }
 0x120   : > { %1332 = vmatpush.msra.mxu0 %v1292_v13  ;;  %1355 = vmatpush.msra.mxu1 %v1293_v63  ;;  %10501 = vst [vmem:[#allocation34_spill] sm:$0xff] %v7160_v37  ;;  %v7184_v13 = vpop.f32.mrf.mxu3 }
 0x121   : > { %1493 = vmatpush.msrb.mxu3 %v1299_v26  ;;  %5691 = vmatmul.msk.f32.vlgmr.msra.gmra.mxu0 %vm550_vm1, %v7074_v62 }
 0x122   : > { %5693 = vmatmul.msk.f32.vlgmr.msra.gmra.mxu1 %vm550_vm1, %v7074_v62  ;;  %1423 = vmatpush.msrb.mxu0 %v1304_v14 }
 0x123   : > { %5705 = vmatmul.msk.f32.vlgmr.msrb.gmra.mxu3 %vm550_vm1, %v7074_v62  ;;  %2342 = vrot.lane.b32.xlu2 %v6397_v7, %s6287_s17  ;;  %v7166_v23 = vpop.permute.xlu2 %1732 }
 0x124   : > { %2318 = vrot.lane.b32.xlu1 %v6367_v1, %s6287_s17  ;;  %2314 = vrot.lane.b32.xlu0 %v6394_v6, %s6287_s17  ;;  %v1245_v54 = vpop.permute.xlu1 %1244  ;;  %v1247_v2 = vpop.permute.xlu0 %1246  ;;  %v1770_v18 = vsel %vm1758_vm5, %v7166_v23, %v7124_v49 }
 0x125   : > { %v1259_v25 = vsel %vm1256_vm4, %v1245_v54, %v1249_v43  ;;  %v1260_v0 = vsel %vm1256_vm4, %v1247_v2, %v1251_v38  ;;  %v1262_v56 = vsel %vm1256_vm4, %v7049_v24, %v1247_v2  ;;  %1609 = vmatpush.msra.mxu3 %v6379_v3  ;;  %v7188_v43 = vpop.f32.mrf.mxu0  ;;  %v7193_v3 = vld [vmem:[%s10337_s9 + $0x28] sm:$0xff]  ;;  %v7197_v24 = vpop.f32.mrf.mxu1 }
 0x126   : > { %v1305_v1 = vmul.f32 %v7157_v46, %v1262_v56  ;;  %v1306_v6 = vmul.f32 %v7160_v37, %v1260_v0  ;;  %v1298_v38 = vmul.f32 %v7160_v37, %v1259_v25  ;;  %v7230_v0 = vld [vmem:[%s6361_s18 + $0x50] sm:$0xff]  ;;  %v7233_v56 = vpop.f32.mrf.mxu2  ;;  %v7315_v37 = vperm.slane %v7193_v3, 0 }
 0x127   : > { %1610 = vmatpush.msra.mxu3 %v6385_v5  ;;  %v7336_v51 = vperm.slane %v7193_v3, 1 }
 0x128   : > { %1446 = vmatpush.msrb.mxu1 %v1305_v1  ;;  %1469 = vmatpush.msrb.mxu2 %v1306_v6  ;;  %10504 = vst [vmem:[#allocation37_spill] sm:$0xff] %v7315_v37 }
 0x129   : > { %5692 = vmatmul.msk.f32.gmra.mxu0 %vm550_vm1, %v7116_v27  ;;  %1701 = vmatpush.msrb.mxu3 %v6397_v7  ;;  %v7214_v7 = vperm.slane %v7193_v3, 3  ;;  %10505 = vst [vmem:[#allocation38_spill] sm:$0xff] %v7336_v51 }
 0x12a   : > { %5694 = vmatmul.msk.f32.gmra.mxu1 %vm550_vm1, %v7116_v27  ;;  %1470 = vmatpush.msrb.mxu2 %v1298_v38 }
 0x12b   : > { %5706 = vmatmul.msk.f32.gmra.mxu3 %vm550_vm1, %v7116_v27  ;;  %2340 = vrot.lane.b32.xlu2 %v6409_v9, %s6287_s17  ;;  %v7207_v5 = vpop.permute.xlu2 %1730  ;;  %10502 = vst [vmem:[#allocation35_spill] sm:$0xff] %v7214_v7 }
 0x12c   : > { %2316 = vrot.lane.b32.xlu1 %v6382_v4, %s6287_s17  ;;  %2312 = vrot.lane.b32.xlu0 %v6412_v10, %s6287_s17  ;;  %v1741_v63 = vpop.permute.xlu1 %1740  ;;  %v1241_v26 = vpop.permute.xlu0 %1240 }
 0x12d   : > { %5703 = vmatmul.msk.f32.vlgmr.msrb.gmra.mxu2 %vm550_vm1, %v7074_v62  ;;  %v1766_v14 = vsel %vm1758_vm5, %v1741_v63, %v7096_v53  ;;  %v1261_v2 = vsel %vm1256_vm4, %v1241_v26, %v1245_v54  ;;  %v1263_v4 = vsel %vm1256_vm4, %v7056_v32, %v1241_v26  ;;  %1702 = vmatpush.msrb.mxu3 %v6409_v9  ;;  %v7239_v32 = vld [vmem:[%s10329_s1 + $0x40] sm:$0xff]  ;;  %v7243_v9 = vpop.f32.mrf.mxu3  ;;  %v7246_v54 = vld [vmem:[%s6361_s18 + $0x10] sm:$0xff]  ;;  %v7251_v6 = vpop.f32.mrf.mxu0 }
 0x12e   : > { %v1296_v10 = vmul.f32 %v7127_v60, %v1263_v4  ;;  %v1297_v25 = vmul.f32 %v7157_v46, %v1261_v2  ;;  %1586 = vmatpush.msra.mxu2 %v7230_v0  ;;  %v1805_v1 = vmul.f32 %v7214_v7, %v1766_v14  ;;  %v7260_v26 = vpop.f32.mrf.mxu1  ;;  %v7267_v14 = vld [vmem:[%s6361_s18 + $0x70] sm:$0xff]  ;;  %v7282_v4 = vld [vmem:[%s6361_s18 + $0x40] sm:$0xff] }
 0x12f   : > { %v6249_v46 = vld [vmem:[%s6361_s18 + $0x60] sm:$0xff] }
 0x130   : > { %1424 = vmatpush.msrb.mxu0 %v1296_v10  ;;  %1447 = vmatpush.msrb.mxu1 %v1297_v25  ;;  %v7286_v10 = vld [vmem:[%s6361_s18 + $0x48] sm:$0xff]  ;;  %v7290_v25 = vperm.slane %v7193_v3, 2 }
 0x131   : > { %5699 = vmatmul.msk.f32.vlgmr.msrb.gmra.mxu0 %vm550_vm1, %v7074_v62  ;;  %1587 = vmatpush.msra.mxu2 %v7246_v54 }
 0x132   : > { %5701 = vmatmul.msk.f32.vlgmr.msrb.gmra.mxu1 %vm550_vm1, %v7074_v62  ;;  %1540 = vmatpush.msra.mxu0 %v7282_v4  ;;  %10503 = vst [vmem:[#allocation36_spill] sm:$0xff] %v7290_v25 }
 0x133   : > { %1678 = vmatpush.msrb.mxu2 %v6400_v8  ;;  %5715 = vmatmul.msk.f32.vlgmr.msra.gmra.mxu3 %vm550_vm1, %v7239_v32  ;;  %v7258_v38 = vpop.permute.xlu2 %1750 }
 0x134   : > { %2334 = vrot.lane.b32.xlu2 %v6424_v12, %s6287_s17  ;;  %1902 = vmatpush.msra.mxu3 %v1805_v1  ;;  %v7264_v62 = vpop.permute.xlu1 %1742  ;;  %v1739_v8 = vpop.permute.xlu0 %1738  ;;  %v7295_v1 = vld [vmem:[%s10329_s1 + $0x48] sm:$0xff] }
 0x135   : > { %2336 = vrot.lane.b32.xlu1 %v6415_v11, %s6287_s17  ;;  %2338 = vrot.lane.b32.xlu0 %v7267_v14, %s6287_s17  ;;  %v1765_v12 = vsel %vm1758_vm5, %v1739_v8, %v7264_v62  ;;  %v7278_v11 = vld [vmem:[%s6361_s18 + $0x30] sm:$0xff]  ;;  %v7325_v60 = vpop.f32.mrf.mxu3 }
 0x136   : > { %5704 = vmatmul.msk.f32.gmra.mxu2 %vm550_vm1, %v7116_v27  ;;  %v1797_v2 = vmul.f32 %v7214_v7, %v1765_v12  ;;  %1563 = vmatpush.msra.mxu1 %v7286_v10  ;;  %v7298_v12 = vld [vmem:[%s6361_s18] sm:$0xff]  ;;  %v1768_v7 = vsel %vm1758_vm5, %v7124_v49, %v1741_v63  ;;  %v7321_v63 = vld [vmem:[%s6361_s18 + $0x28] sm:$0xff]  ;;  %v7345_v21 = vpop.f32.mrf.mxu0 }
 0x137   : > { %1679 = vmatpush.msrb.mxu2 %v7278_v11  ;;  %1541 = vmatpush.msra.mxu0 %v7298_v12  ;;  %v1804_v47 = vmul.f32 %v7290_v25, %v1768_v7 }
 0x138   : > { %1903 = vmatpush.msra.mxu3 %v1797_v2  ;;  %1564 = vmatpush.msra.mxu1 %v7307_v57  ;;  %v7310_v2 = vpop.f32.mrf.mxu2  ;;  %v7354_v33 = vpop.f32.mrf.mxu1 }
 0x139   : > { %5700 = vmatmul.msk.f32.gmra.mxu0 %vm550_vm1, %v7116_v27 }
 0x13a   : > { %5702 = vmatmul.msk.f32.gmra.mxu1 %vm550_vm1, %v7116_v27  ;;  %1632 = vmatpush.msrb.mxu0 %v6249_v46 }
 0x13b   : > { %5716 = vmatmul.msk.f32.gmra.mxu3 %vm550_vm1, %v7295_v1  ;;  %1655 = vmatpush.msrb.mxu1 %v7332_v50 }
 0x13c   : > { %2332 = vrot.lane.b32.xlu2 %v7321_v63, %s6287_s17  ;;  %v7329_v27 = vpop.permute.xlu2 %2037  ;;  %v1729_v58 = vpop.permute.xlu1 %1728  ;;  %1633 = vmatpush.msrb.mxu0 %v6253_v42 }
 0x13d   : > { %2623 = vrot.lane.b32.xlu1 %v6249_v46, %s6288_s23  ;;  %2619 = vrot.lane.b32.xlu0 %v6252_v31, %s6288_s23  ;;  %v1772_v46 = vsel %vm1758_vm5, %v1729_v58, %v7166_v23  ;;  %v1735_v7 = vpop.permute.xlu0 %1734  ;;  %v7371_v23 = vperm.slane %v7193_v3, 7 }
 0x13e   : > { %5713 = vmatmul.msk.f32.vlgmr.msra.gmra.mxu2 %vm550_vm1, %v7239_v32  ;;  %v1802_v45 = vmul.f32 %v7315_v37, %v1772_v46  ;;  %v1767_v31 = vsel %vm1758_vm5, %v1735_v7, %v1739_v8  ;;  %v1769_v17 = vsel %vm1758_vm5, %v7207_v5, %v1735_v7  ;;  %1656 = vmatpush.msrb.mxu1 %v7321_v63  ;;  %v7387_v7 = vpop.f32.mrf.mxu3 }
 0x13f   : > { %1879 = vmatpush.msra.mxu2 %v1804_v47  ;;  %v1796_v36 = vmul.f32 %v7290_v25, %v1767_v31  ;;  %v1803_v47 = vmul.f32 %v7336_v51, %v1770_v18  ;;  %v1795_v49 = vmul.f32 %v7336_v51, %v1769_v17  ;;  %10506 = vst [vmem:[#allocation39_spill] sm:$0xff] %v7371_v23 }
 0x140   : > { %v7373_v8 = vpop.f32.mrf.mxu2 }
 0x141   : > { %1880 = vmatpush.msra.mxu2 %v1796_v36  ;;  %5709 = vmatmul.msk.f32.vlgmr.msra.gmra.mxu0 %vm550_vm1, %v7239_v32  ;;  %10507 = vst [vmem:[#allocation40_spill] sm:$0xff] %v7373_v8  ;;  %v7741_v8 = vld [vmem:[%s10329_s1 + $0x70] sm:$0xff] }
 0x142   : > { %5711 = vmatmul.msk.f32.vlgmr.msra.gmra.mxu1 %vm550_vm1, %v7239_v32  ;;  %1833 = vmatpush.msra.mxu0 %v1802_v45  ;;  %v6254_v45 = vld [vmem:[%s6361_s18 + $0x18] sm:$0xff] }
 0x143   : > { %5723 = vmatmul.msk.f32.vlgmr.msrb.gmra.mxu3 %vm550_vm1, %v7239_v32  ;;  %1856 = vmatpush.msra.mxu1 %v1803_v47  ;;  %v7393_v47 = vpop.f32.mrf.mxu0 }
 0x144   : > { %v7376_v36 = vpop.permute.xlu2 %2035  ;;  %v1727_v18 = vpop.permute.xlu1 %1726  ;;  %2615 = vrot.lane.b32.xlu2 %v7230_v0, %s6288_s23 }
 0x145   : > { %2621 = vrot.lane.b32.xlu1 %v6253_v42, %s6288_s23  ;;  %2617 = vrot.lane.b32.xlu0 %v6254_v45, %s6288_s23  ;;  %v1771_v17 = vsel %vm1758_vm5, %v1727_v18, %v7207_v5  ;;  %v1757_v46 = vpop.permute.xlu0 %1756  ;;  %v7395_v45 = vpop.f32.mrf.mxu1  ;;  %v7402_v5 = vperm.slane %v7193_v3, 6 }
 0x146   : > { %5714 = vmatmul.msk.f32.gmra.mxu2 %vm550_vm1, %v7295_v1  ;;  %v1774_v42 = vsel %vm1758_vm5, %v1757_v46, %v1729_v58  ;;  %v1794_v31 = vmul.f32 %v7315_v37, %v1771_v17  ;;  %1857 = vmatpush.msra.mxu1 %v1795_v49  ;;  %v7430_v37 = vld [vmem:[%s10337_s9 + $0x30] sm:$0xff] }
 0x147   : > { %v1809_v0 = vmul.f32 %v7371_v23, %v1774_v42  ;;  %10508 = vst [vmem:[#allocation41_spill] sm:$0xff] %v7402_v5 }
 0x148   : > { %1834 = vmatpush.msra.mxu0 %v1794_v31 }
 0x149   : > { %1994 = vmatpush.msrb.mxu3 %v1809_v0  ;;  %5710 = vmatmul.msk.f32.gmra.mxu0 %vm550_vm1, %v7295_v1 }
 0x14a   : > { %5712 = vmatmul.msk.f32.gmra.mxu1 %vm550_vm1, %v7295_v1 }
 0x14b   : > { %5724 = vmatmul.msk.f32.gmra.mxu3 %vm550_vm1, %v7295_v1 }
 0x14c   : > { %v7408_v58 = vpop.permute.xlu2 %2021  ;;  %v1753_v49 = vpop.permute.xlu1 %1752  ;;  %2611 = vrot.lane.b32.xlu2 %v7286_v10, %s6288_s23 }
 0x14d   : > { %2607 = vrot.lane.b32.xlu1 %v7282_v4, %s6288_s23  ;;  %2613 = vrot.lane.b32.xlu0 %v7246_v54, %s6288_s23  ;;  %v1760_v17 = vsel %vm1758_vm5, %v1753_v49, %v1757_v46  ;;  %v1755_v42 = vpop.permute.xlu0 %1754  ;;  %v7424_v10 = vpop.f32.mrf.mxu2 }
 0x14e   : > { %5721 = vmatmul.msk.f32.vlgmr.msrb.gmra.mxu2 %vm550_vm1, %v7239_v32  ;;  %v1808_v31 = vmul.f32 %v7402_v5, %v1760_v17  ;;  %v1759_v4 = vsel %vm1758_vm5, %v7258_v38, %v1755_v42  ;;  %v1773_v0 = vsel %vm1758_vm5, %v1755_v42, %v1727_v18  ;;  %v7432_v46 = vpop.f32.mrf.mxu3  ;;  %v7437_v17 = vld [vmem:[%s10329_s1 + $0x50] sm:$0xff]  ;;  %v7440_v18 = vpop.f32.mrf.mxu0 }
 0x14f   : > { %v1801_v54 = vmul.f32 %v7371_v23, %v1773_v0  ;;  %v1800_v51 = vmul.f32 %v7402_v5, %v1759_v4  ;;  %v7444_v42 = vpop.f32.mrf.mxu1  ;;  %v7455_v4 = vperm.slane %v7193_v3, 4  ;;  %v7458_v0 = vperm.slane %v7193_v3, 5 }
 0x150   : > { %1971 = vmatpush.msrb.mxu2 %v1808_v31  ;;  %v7450_v31 = vperm.slane %v7430_v37, 3 }
 0x151   : > { %1995 = vmatpush.msrb.mxu3 %v1801_v54  ;;  %5717 = vmatmul.msk.f32.vlgmr.msrb.gmra.mxu0 %vm550_vm1, %v7239_v32  ;;  %10510 = vst [vmem:[#allocation43_spill] sm:$0xff] %v7455_v4 }
 0x152   : > { %5719 = vmatmul.msk.f32.vlgmr.msrb.gmra.mxu1 %vm550_vm1, %v7239_v32  ;;  %1972 = vmatpush.msrb.mxu2 %v1800_v51  ;;  %10509 = vst [vmem:[#allocation42_spill] sm:$0xff] %v7450_v31  ;;  %v6255_v32 = vld [vmem:[%s6361_s18 + $0x78] sm:$0xff] }
 0x153   : > { %5734 = vmatmul.msk.f32.vlgmr.msra.gmra.mxu3 %vm550_vm1, %v7437_v17  ;;  %10511 = vst [vmem:[#allocation44_spill] sm:$0xff] %v7458_v0 }
 0x154   : > { %v7462_v54 = vpop.permute.xlu2 %2019  ;;  %v2034_v51 = vpop.permute.xlu1 %2033  ;;  %2609 = vrot.lane.b32.xlu2 %v7307_v57, %s6288_s23 }
 0x155   : > { %2605 = vrot.lane.b32.xlu1 %v7298_v12, %s6288_s23  ;;  %2635 = vrot.lane.b32.xlu0 %v6255_v32, %s6288_s23  ;;  %v2059_v3 = vsel %vm2051_vm6, %v2034_v51, %v7329_v27  ;;  %v1749_v5 = vpop.permute.xlu0 %1748  ;;  %v7481_v52 = vpop.f32.mrf.mxu2 }
 0x156   : > { %5722 = vmatmul.msk.f32.gmra.mxu2 %vm550_vm1, %v7295_v1  ;;  %v2098_v23 = vmul.f32 %v7450_v31, %v2059_v3  ;;  %v1762_v12 = vsel %vm1758_vm5, %v1749_v5, %v1753_v49  ;;  %v1764_v57 = vsel %vm1758_vm5, %v7096_v53, %v1749_v5  ;;  %v7488_v49 = vpop.f32.mrf.mxu3  ;;  %v7494_v53 = vpop.f32.mrf.mxu0  ;;  %v6256_v5 = vld [vmem:[%s6361_s18 + $0x38] sm:$0xff] }
 0x157   : > { %v1806_v25 = vmul.f32 %v7455_v4, %v1764_v57  ;;  %v1807_v32 = vmul.f32 %v7458_v0, %v1762_v12 }
 0x158   : > { %2195 = vmatpush.msra.mxu3 %v2098_v23  ;;  %v7498_v23 = vpop.f32.mrf.mxu1 }
 0x159   : > { %1925 = vmatpush.msrb.mxu0 %v1806_v25  ;;  %1948 = vmatpush.msrb.mxu1 %v1807_v32 }
 0x15a   : > { %5718 = vmatmul.msk.f32.gmra.mxu0 %vm550_vm1, %v7295_v1  ;;  %5720 = vmatmul.msk.f32.gmra.mxu1 %vm550_vm1, %v7295_v1 }
 0x15b   : > { %5735 = vmatmul.msk.f32.gmra.mxu3 %vm550_vm1, %v7486_v44 }
 0x15c   : > { %v2032_v25 = vpop.permute.xlu1 %2031  ;;  %2629 = vrot.lane.b32.xlu2 %v7278_v11, %s6288_s23 }
 0x15d   : > { %2631 = vrot.lane.b32.xlu1 %v7267_v14, %s6288_s23  ;;  %2633 = vrot.lane.b32.xlu0 %v6256_v5, %s6288_s23  ;;  %v7508_v1 = vpop.permute.xlu2 %2045  ;;  %v2058_v3 = vsel %vm2051_vm6, %v2032_v25, %v7376_v36  ;;  %v1747_v12 = vpop.permute.xlu0 %1746 }
 0x15e   : > { %5732 = vmatmul.msk.f32.vlgmr.msra.gmra.mxu2 %vm550_vm1, %v7437_v17  ;;  %v2090_v57 = vmul.f32 %v7450_v31, %v2058_v3  ;;  %v1761_v14 = vsel %vm1758_vm5, %v1747_v12, %v7258_v38  ;;  %v1763_v11 = vsel %vm1758_vm5, %v7264_v62, %v1747_v12  ;;  %v7522_v55 = vpop.f32.mrf.mxu2  ;;  %v7528_v38 = vpop.f32.mrf.mxu3  ;;  %v7535_v3 = vperm.slane %v7430_v37, 2 }
 0x15f   : > { %v1798_v32 = vmul.f32 %v7455_v4, %v1763_v11  ;;  %v1799_v5 = vmul.f32 %v7458_v0, %v1761_v14  ;;  %v7537_v12 = vpop.f32.mrf.mxu0  ;;  %v7561_v0 = vperm.slane %v7430_v37, 7 }
 0x160   : > { %2196 = vmatpush.msra.mxu3 %v2090_v57  ;;  %10512 = vst [vmem:[#allocation45_spill] sm:$0xff] %v7535_v3  ;;  %v7545_v14 = vpop.f32.mrf.mxu1 }
 0x161   : > { %1926 = vmatpush.msrb.mxu0 %v1798_v32  ;;  %1949 = vmatpush.msrb.mxu1 %v1799_v5  ;;  %10514 = vst [vmem:[#allocation47_spill] sm:$0xff] %v7561_v0 }
 0x162   : > { %5728 = vmatmul.msk.f32.vlgmr.msra.gmra.mxu0 %vm550_vm1, %v7437_v17  ;;  %5730 = vmatmul.msk.f32.vlgmr.msra.gmra.mxu1 %vm550_vm1, %v7437_v17 }
 0x163   : > { %5742 = vmatmul.msk.f32.vlgmr.msrb.gmra.mxu3 %vm550_vm1, %v7437_v17 }
 0x164   : > { %v2028_v62 = vpop.permute.xlu1 %2027 }
 0x165   : > { %2625 = vrot.lane.b32.xlu1 %v7321_v63, %s6288_s23  ;;  %2627 = vrot.lane.b32.xlu0 %v7332_v50, %s6288_s23  ;;  %v7543_v57 = vpop.permute.xlu2 %2326  ;;  %v2030_v11 = vpop.permute.xlu0 %2029  ;;  %v2060_v63 = vsel %vm2051_vm6, %v2028_v62, %v2032_v25  ;;  %v7558_v50 = vperm.slane %v7430_v37, 6 }
 0x166   : > { %5733 = vmatmul.msk.f32.gmra.mxu2 %vm550_vm1, %v7486_v44  ;;  %v2061_v32 = vsel %vm2051_vm6, %v2030_v11, %v2034_v51  ;;  %v2089_v31 = vmul.f32 %v7535_v3, %v2060_v63  ;;  %v7563_v25 = vpop.f32.mrf.mxu2  ;;  %v7568_v51 = vperm.slane %v7430_v37, 1  ;;  %v7583_v48 = vpop.f32.mrf.mxu3 }
 0x167   : > { %v2097_v5 = vmul.f32 %v7535_v3, %v2061_v32  ;;  %10513 = vst [vmem:[#allocation46_spill] sm:$0xff] %v7558_v50  ;;  %v7589_v61 = vpop.f32.mrf.mxu0 }
 0x168   : > { %10515 = vst [vmem:[#allocation48_spill] sm:$0xff] %v7563_v25  ;;  %v7591_v16 = vpop.f32.mrf.mxu1 }
 0x169   : > { %2172 = vmatpush.msra.mxu2 %v2097_v5  ;;  %10516 = vst [vmem:[#allocation49_spill] sm:$0xff] %v7568_v51  ;;  %v7575_v5 = vperm.slane %v7430_v37, 0 }
 0x16a   : > { %5729 = vmatmul.msk.f32.gmra.mxu0 %vm550_vm1, %v7486_v44  ;;  %5731 = vmatmul.msk.f32.gmra.mxu1 %vm550_vm1, %v7486_v44 }
 0x16b   : > { %5743 = vmatmul.msk.f32.gmra.mxu3 %vm550_vm1, %v7486_v44  ;;  %2173 = vmatpush.msra.mxu2 %v2089_v31  ;;  %10517 = vst [vmem:[#allocation50_spill] sm:$0xff] %v7575_v5 }
 0x16d   : > { %v7572_v63 = vpop.permute.xlu2 %2324  ;;  %v2050_v32 = vpop.permute.xlu1 %2049 }
 0x16e   : > { %5740 = vmatmul.msk.f32.vlgmr.msrb.gmra.mxu2 %vm550_vm1, %v7437_v17  ;;  %v2053_v3 = vsel %vm2051_vm6, %v7508_v1, %v2050_v32  ;;  %v2067_v31 = vsel %vm2051_vm6, %v2050_v32, %v7408_v58  ;;  %v2026_v4 = vpop.permute.xlu0 %2025  ;;  %v7633_v35 = vpop.f32.mrf.mxu3 }
 0x16f   : > { %v2101_v28 = vmul.f32 %v7558_v50, %v2053_v3  ;;  %v2102_v19 = vmul.f32 %v7561_v0, %v2067_v31  ;;  %v2063_v41 = vsel %vm2051_vm6, %v2026_v4, %v2030_v11  ;;  %v2065_v34 = vsel %vm2051_vm6, %v7408_v58, %v2026_v4  ;;  %v7601_v3 = vld [vmem:[%s10329_s1 + $0x60] sm:$0xff] }
 0x170   : > { %v2096_v32 = vmul.f32 %v7568_v51, %v2063_v41  ;;  %v2095_v29 = vmul.f32 %v7575_v5, %v2065_v34  ;;  %v7616_v34 = vpop.f32.mrf.mxu2 }
 0x171   : > { %2264 = vmatpush.msrb.mxu2 %v2101_v28  ;;  %2287 = vmatpush.msrb.mxu3 %v2102_v19 }
 0x172   : > { %2149 = vmatpush.msra.mxu1 %v2096_v32  ;;  %2126 = vmatpush.msra.mxu0 %v2095_v29 }
 0x173   : > { %5738 = vmatmul.msk.f32.vlgmr.msrb.gmra.mxu1 %vm550_vm1, %v7437_v17  ;;  %5736 = vmatmul.msk.f32.vlgmr.msrb.gmra.mxu0 %vm550_vm1, %v7437_v17 }
 0x174   : > { %5753 = vmatmul.msk.f32.vlgmr.msra.gmra.mxu3 %vm550_vm1, %v7601_v3 }
 0x175   : > { %v7611_v41 = vpop.permute.xlu2 %2320  ;;  %v2048_v19 = vpop.permute.xlu1 %2047 }
 0x176   : > { %5741 = vmatmul.msk.f32.gmra.mxu2 %vm550_vm1, %v7486_v44  ;;  %v2066_v28 = vsel %vm2051_vm6, %v2048_v19, %v7462_v54  ;;  %v2024_v29 = vpop.permute.xlu0 %2023  ;;  %v7624_v11 = vpop.f32.mrf.mxu0 }
 0x177   : > { %v2062_v58 = vsel %vm2051_vm6, %v2024_v29, %v2028_v62  ;;  %v2064_v17 = vsel %vm2051_vm6, %v7462_v54, %v2024_v29  ;;  %v2094_v4 = vmul.f32 %v7561_v0, %v2066_v28  ;;  %v7635_v62 = vpop.f32.mrf.mxu1  ;;  %v7640_v54 = vperm.slane %v7430_v37, 4 }
 0x178   : > { %v2087_v31 = vmul.f32 %v7575_v5, %v2064_v17  ;;  %v2088_v32 = vmul.f32 %v7568_v51, %v2062_v58  ;;  %v7643_v28 = vperm.slane %v7430_v37, 5  ;;  %v7664_v5 = vpop.f32.mrf.mxu2 }
 0x179   : > { %2288 = vmatpush.msrb.mxu3 %v2094_v4  ;;  %10518 = vst [vmem:[#allocation51_spill] sm:$0xff] %v7640_v54 }
 0x17a   : > { %2127 = vmatpush.msra.mxu0 %v2087_v31  ;;  %2150 = vmatpush.msra.mxu1 %v2088_v32  ;;  %10519 = vst [vmem:[#allocation52_spill] sm:$0xff] %v7643_v28 }
 0x17b   : > { %5739 = vmatmul.msk.f32.gmra.mxu1 %vm550_vm1, %v7486_v44  ;;  %5737 = vmatmul.msk.f32.gmra.mxu0 %vm550_vm1, %v7486_v44 }
 0x17c   : > { %5754 = vmatmul.msk.f32.gmra.mxu3 %vm550_vm1, %v7631_v39 }
 0x17d   : > { %v7651_v29 = vpop.permute.xlu2 %2342  ;;  %v2042_v58 = vpop.permute.xlu1 %2041 }
 0x17e   : > { %5751 = vmatmul.msk.f32.vlgmr.msra.gmra.mxu2 %vm550_vm1, %v7601_v3  ;;  %v2055_v17 = vsel %vm2051_vm6, %v2042_v58, %v7508_v1  ;;  %v2057_v37 = vsel %vm2051_vm6, %v7329_v27, %v2042_v58  ;;  %v2044_v4 = vpop.permute.xlu0 %2043  ;;  %v7666_v51 = vpop.f32.mrf.mxu3  ;;  %v7673_v27 = vld [vmem:[%s10337_s9 + $0x38] sm:$0xff] }
 0x17f   : > { %v2099_v44 = vmul.f32 %v7640_v54, %v2057_v37  ;;  %v2100_v31 = vmul.f32 %v7643_v28, %v2055_v17  ;;  %v2052_v32 = vsel %vm2051_vm6, %v2044_v4, %v2048_v19  ;;  %10520 = vst [vmem:[#allocation53_spill] sm:$0xff] %v7666_v51  ;;  %v7668_v1 = vpop.f32.mrf.mxu0  ;;  %v7677_v19 = vpop.f32.mrf.mxu1  ;;  %v7689_v17 = vperm.slane %v7673_v27, 3 }
 0x180   : > { %v2093_v0 = vmul.f32 %v7558_v50, %v2052_v32  ;;  %10521 = vst [vmem:[#allocation54_spill] sm:$0xff] %v7668_v1 }
 0x181   : > { %2218 = vmatpush.msrb.mxu0 %v2099_v44  ;;  %2241 = vmatpush.msrb.mxu1 %v2100_v31  ;;  %10522 = vst [vmem:[#allocation55_spill] sm:$0xff] %v7689_v17 }
 0x182   : > { %2265 = vmatpush.msrb.mxu2 %v2093_v0 }
 0x183   : > { %5749 = vmatmul.msk.f32.vlgmr.msra.gmra.mxu1 %vm550_vm1, %v7601_v3  ;;  %5747 = vmatmul.msk.f32.vlgmr.msra.gmra.mxu0 %vm550_vm1, %v7601_v3 }
 0x184   : > { %5761 = vmatmul.msk.f32.vlgmr.msrb.gmra.mxu3 %vm550_vm1, %v7601_v3 }
 0x185   : > { %v7686_v0 = vpop.permute.xlu2 %2340  ;;  %v2040_v58 = vpop.permute.xlu1 %2039 }
 0x186   : > { %5752 = vmatmul.msk.f32.gmra.mxu2 %vm550_vm1, %v7631_v39  ;;  %v2054_v37 = vsel %vm2051_vm6, %v2040_v58, %v2044_v4  ;;  %v2056_v44 = vsel %vm2051_vm6, %v7376_v36, %v2040_v58  ;;  %v7696_v31 = vpop.permute.xlu0 %2330  ;;  %v7704_v22 = vpop.f32.mrf.mxu2 }
 0x187   : > { %v2091_v32 = vmul.f32 %v7640_v54, %v2056_v44  ;;  %v2092_v50 = vmul.f32 %v7643_v28, %v2054_v37  ;;  %v2352_v30 = vsel %vm2344_vm7, %v7543_v57, %v7696_v31  ;;  %10523 = vst [vmem:[#allocation56_spill] sm:$0xff] %v7704_v22  ;;  %v7709_v36 = vpop.f32.mrf.mxu3  ;;  %v7711_v4 = vpop.f32.mrf.mxu0  ;;  %v2353_v54 = vsel %vm2344_vm7, %v7611_v41, %v7572_v63 }
 0x188   : > { %v2391_v40 = vmul.f32 %v7689_v17, %v2352_v30  ;;  %10524 = vst [vmem:[#allocation57_spill] sm:$0xff] %v7709_v36  ;;  %v7717_v58 = vpop.f32.mrf.mxu1  ;;  %v7722_v30 = vperm.slane %v7673_v27, 2 }
 0x189   : > { %2219 = vmatpush.msrb.mxu0 %v2091_v32  ;;  %2242 = vmatpush.msrb.mxu1 %v2092_v50  ;;  %10525 = vst [vmem:[#allocation58_spill] sm:$0xff] %v7711_v4 }
 0x18a   : > { %2488 = vmatpush.msra.mxu3 %v2391_v40  ;;  %10526 = vst [vmem:[#allocation59_spill] sm:$0xff] %v7717_v58 }
 0x18b   : > { %5750 = vmatmul.msk.f32.gmra.mxu1 %vm550_vm1, %v7631_v39  ;;  %5748 = vmatmul.msk.f32.gmra.mxu0 %vm550_vm1, %v7631_v39  ;;  %10527 = vst [vmem:[#allocation60_spill] sm:$0xff] %v7722_v30 }
 0x18c   : > { %5762 = vmatmul.msk.f32.gmra.mxu3 %vm550_vm1, %v7631_v39 }
 0x18d   : > { %v2323_v40 = vpop.permute.xlu1 %2322 }
 0x18e   : > { %5759 = vmatmul.msk.f32.vlgmr.msrb.gmra.mxu2 %vm550_vm1, %v7601_v3  ;;  %v7724_v50 = vpop.permute.xlu2 %2334  ;;  %v2354_v37 = vsel %vm2344_vm7, %v2323_v40, %v7543_v57  ;;  %v2329_v32 = vpop.permute.xlu0 %2328 }
 0x18f   : > { %v2390_v44 = vmul.f32 %v7722_v30, %v2354_v37  ;;  %v2351_v28 = vsel %vm2344_vm7, %v7572_v63, %v2329_v32  ;;  %v7743_v57 = vpop.f32.mrf.mxu2  ;;  %v2382_v37 = vmul.f32 %v7722_v30, %v2353_v54  ;;  %v7753_v63 = vperm.slane %v7673_v27, 1 }
 0x190   : > { %v2383_v25 = vmul.f32 %v7689_v17, %v2351_v28  ;;  %10528 = vst [vmem:[#allocation61_spill] sm:$0xff] %v7743_v57  ;;  %v7763_v17 = vpop.f32.mrf.mxu0  ;;  %v7767_v54 = vpop.f32.mrf.mxu1 }
 0x191   : > { %2465 = vmatpush.msra.mxu2 %v2390_v44  ;;  %10529 = vst [vmem:[#allocation62_spill] sm:$0xff] %v7753_v63  ;;  %v7758_v44 = vperm.slane %v7673_v27, 0 }
 0x192   : > { %2489 = vmatpush.msra.mxu3 %v2383_v25  ;;  %v7761_v25 = vperm.slane %v7673_v27, 7  ;;  %10532 = vst [vmem:[#allocation65_spill] sm:$0xff] %v7763_v17 }
 0x193   : > { %5757 = vmatmul.msk.f32.vlgmr.msrb.gmra.mxu1 %vm550_vm1, %v7601_v3  ;;  %5755 = vmatmul.msk.f32.vlgmr.msrb.gmra.mxu0 %vm550_vm1, %v7601_v3  ;;  %10530 = vst [vmem:[#allocation63_spill] sm:$0xff] %v7758_v44 }
 0x194   : > { %5772 = vmatmul.msk.f32.vlgmr.msra.gmra.mxu3 %vm550_vm1, %v7741_v8  ;;  %v7755_v28 = vpop.f32.mrf.mxu3  ;;  %2466 = vmatpush.msra.mxu2 %v2382_v37  ;;  %10531 = vst [vmem:[#allocation64_spill] sm:$0xff] %v7761_v25 }
 0x195   : > { %10533 = vst [vmem:[#allocation66_spill] sm:$0xff] %v7767_v54 }
 0x196   : > { %5760 = vmatmul.msk.f32.gmra.mxu2 %vm550_vm1, %v7631_v39  ;;  %v2319_v3 = vpop.permute.xlu1 %2318  ;;  %v2315_v57 = vpop.permute.xlu0 %2314 }
 0x197   : > { %v2356_v30 = vsel %vm2344_vm7, %v2319_v3, %v2323_v40  ;;  %v2333_v58 = vpop.permute.xlu2 %2332  ;;  %v2358_v4 = vsel %vm2344_vm7, %v2315_v57, %v2319_v3  ;;  %v2360_v17 = vsel %vm2344_vm7, %v7651_v29, %v2315_v57  ;;  %v7782_v40 = vld [vmem:[%s10329_s1 + $0x78] sm:$0xff]  ;;  %v7784_v54 = vpop.f32.mrf.mxu2  ;;  %v2350_v3 = vsel %vm2344_vm7, %v7696_v31, %v7724_v50 }
 0x198   : > { %v2389_v37 = vmul.f32 %v7753_v63, %v2356_v30  ;;  %v2388_v36 = vmul.f32 %v7758_v44, %v2358_v4  ;;  %v2395_v22 = vmul.f32 %v7761_v25, %v2360_v17  ;;  %10534 = vst [vmem:[#allocation67_spill] sm:$0xff] %v7784_v54  ;;  %v2349_v51 = vsel %vm2344_vm7, %v2329_v32, %v2333_v58 }
 0x199   : > { %v7831_v32 = vperm.slane %v7673_v27, 5 }
 0x19a   : > { %2442 = vmatpush.msra.mxu1 %v2389_v37  ;;  %2419 = vmatpush.msra.mxu0 %v2388_v36  ;;  %v7799_v36 = vperm.slane %v7673_v27, 4 }
 0x19b   : > { %2580 = vmatpush.msrb.mxu3 %v2395_v22  ;;  %5756 = vmatmul.msk.f32.gmra.mxu0 %vm550_vm1, %v7631_v39  ;;  %10539 = vst [vmem:[#allocation72_spill] sm:$0xff] %v7831_v32 }
 0x19c   : > { %5758 = vmatmul.msk.f32.gmra.mxu1 %vm550_vm1, %v7631_v39  ;;  %5773 = vmatmul.msk.f32.gmra.mxu3 %vm550_vm1, %v7782_v40  ;;  %10537 = vst [vmem:[#allocation70_spill] sm:$0xff] %v7799_v36  ;;  %v2392_v31 = vmul.f32 %v7799_v36, %v2350_v3 }
 0x19d   : > { %v7792_v17 = vpop.f32.mrf.mxu3 }
 0x19e   : > { %10535 = vst [vmem:[#allocation68_spill] sm:$0xff] %v7792_v17  ;;  %5770 = vmatmul.msk.f32.vlgmr.msra.gmra.mxu2 %vm550_vm1, %v7741_v8  ;;  %v2317_v4 = vpop.permute.xlu1 %2316  ;;  %v7796_v30 = vpop.f32.mrf.mxu0 }
 0x19f   : > { %10536 = vst [vmem:[#allocation69_spill] sm:$0xff] %v7796_v30  ;;  %v2355_v22 = vsel %vm2344_vm7, %v2317_v4, %v7611_v41  ;;  %v2313_v57 = vpop.permute.xlu0 %2312  ;;  %v7804_v39 = vpop.f32.mrf.mxu1 }
 0x1a0   : > { %v2357_v37 = vsel %vm2344_vm7, %v2313_v57, %v2317_v4  ;;  %v2359_v17 = vsel %vm2344_vm7, %v7686_v0, %v2313_v57  ;;  %v2381_v30 = vmul.f32 %v7753_v63, %v2355_v22  ;;  %v2616_v1 = vpop.permute.xlu2 %2615  ;;  %v7825_v4 = vpop.f32.mrf.mxu2  ;;  %v7843_v57 = vld [vmem:[%s10337_s9 + $0x40] sm:$0xff] }
 0x1a1   : > { %v2380_v41 = vmul.f32 %v7758_v44, %v2357_v37  ;;  %v2387_v54 = vmul.f32 %v7761_v25, %v2359_v17  ;;  %10538 = vst [vmem:[#allocation71_spill] sm:$0xff] %v7825_v4  ;;  %v2384_v17 = vmul.f32 %v7799_v36, %v2349_v51  ;;  %v7848_v37 = vperm.slane %v7843_v57, 1 }
 0x1a2   : > { %2443 = vmatpush.msra.mxu1 %v2381_v30  ;;  %v7834_v30 = vperm.slane %v7673_v27, 6 }
 0x1a3   : > { %2420 = vmatpush.msra.mxu0 %v2380_v41  ;;  %2581 = vmatpush.msrb.mxu3 %v2387_v54  ;;  %10543 = vst [vmem:[#allocation76_spill] sm:$0xff] %v7848_v37 }
 0x1a4   : > { %5766 = vmatmul.msk.f32.vlgmr.msra.gmra.mxu0 %vm550_vm1, %v7741_v8  ;;  %5768 = vmatmul.msk.f32.vlgmr.msra.gmra.mxu1 %vm550_vm1, %v7741_v8  ;;  %10540 = vst [vmem:[#allocation73_spill] sm:$0xff] %v7834_v30 }
 0x1a5   : > { %2511 = vmatpush.msrb.mxu0 %v2392_v31  ;;  %5780 = vmatmul.msk.f32.vlgmr.msrb.gmra.mxu3 %vm550_vm1, %v7741_v8 }
 0x1a6   : > { %5771 = vmatmul.msk.f32.gmra.mxu2 %vm550_vm1, %v7782_v40  ;;  %v7838_v22 = vpop.f32.mrf.mxu3  ;;  %v7845_v51 = vpop.f32.mrf.mxu0 }
 0x1a7   : > { %v2337_v54 = vpop.permute.xlu1 %2336  ;;  %10541 = vst [vmem:[#allocation74_spill] sm:$0xff] %v7838_v22  ;;  %2512 = vmatpush.msrb.mxu0 %v2384_v17  ;;  %v2339_v3 = vpop.permute.xlu0 %2338 }
 0x1a8   : > { %10542 = vst [vmem:[#allocation75_spill] sm:$0xff] %v7845_v51  ;;  %v2347_v27 = vsel %vm2344_vm7, %v2333_v58, %v2337_v54  ;;  %v2346_v41 = vsel %vm2344_vm7, %v2339_v3, %v7651_v29  ;;  %v2348_v31 = vsel %vm2344_vm7, %v7724_v50, %v2339_v3  ;;  %v7858_v36 = vpop.f32.mrf.mxu1  ;;  %v2612_v17 = vpop.permute.xlu2 %2611  ;;  %v2345_v25 = vsel %vm2344_vm7, %v2337_v54, %v7686_v0 }
 0x1a9   : > { %v2393_v63 = vmul.f32 %v7831_v32, %v2348_v31  ;;  %v2394_v44 = vmul.f32 %v7834_v30, %v2346_v41  ;;  %v2649_v29 = vsel %vm2637_vm8, %v2612_v17, %v2616_v1  ;;  %v2385_v58 = vmul.f32 %v7831_v32, %v2347_v27  ;;  %v2898_v31 = vld [vmem:[%s10330_s2] sm:$0xff] }
 0x1aa   : > { %v2682_v50 = vmul.f32 %v7848_v37, %v2649_v29  ;;  %v2386_v0 = vmul.f32 %v7834_v30, %v2345_v25  ;;  %v7878_v54 = vperm.slane %v7843_v57, 2  ;;  %v6289_v41 = vmov 0  }
 0x1ab   : > { %2534 = vmatpush.msrb.mxu1 %v2393_v63  ;;  %2557 = vmatpush.msrb.mxu2 %v2394_v44  ;;  %v7881_v63 = vperm.slane %v7843_v57, 3 }
 0x1ac   : > { %5767 = vmatmul.msk.f32.gmra.mxu0 %vm550_vm1, %v7782_v40  ;;  %5769 = vmatmul.msk.f32.gmra.mxu1 %vm550_vm1, %v7782_v40  ;;  %10544 = vst [vmem:[#allocation77_spill] sm:$0xff] %v7878_v54 }
 0x1ad   : > { %5781 = vmatmul.msk.f32.gmra.mxu3 %vm550_vm1, %v7782_v40  ;;  %2535 = vmatpush.msrb.mxu1 %v2385_v58  ;;  %10545 = vst [vmem:[#allocation78_spill] sm:$0xff] %v7881_v63 }
 0x1ae   : > { %2558 = vmatpush.msrb.mxu2 %v2386_v0  ;;  %v7885_v3 = vpop.f32.mrf.mxu3  ;;  %v7889_v27 = vpop.f32.mrf.mxu0  ;;  %6239 = vset.pattern.permute.xlu0 %v6289_v41 }
 0x1af   : > { %v7883_v44 = vpop.permute.xlu1 %2623  ;;  %10546 = vst [vmem:[#allocation79_spill] sm:$0xff] %v7885_v3  ;;  %2735 = vmatpush.msra.mxu1 %v2682_v50  ;;  %5778 = vmatmul.msk.f32.vlgmr.msrb.gmra.mxu2 %vm550_vm1, %v7741_v8  ;;  %v2620_v25 = vpop.permute.xlu0 %2619 }
 0x1b0   : > { %10547 = vst [vmem:[#allocation80_spill] sm:$0xff] %v7889_v27  ;;  %v2645_v29 = vsel %vm2637_vm8, %v2620_v25, %v7883_v44  ;;  %v2647_v58 = vsel %vm2637_vm8, %v2616_v1, %v2620_v25  ;;  %v7899_v50 = vpop.f32.mrf.mxu1  ;;  %v7901_v0 = vpop.f32.mrf.mxu2  ;;  %2902 = vperm.xlu0 %6239, %v2898_v31   ;;  %6238 = vset.pattern.permute.xlu2 %v6289_v41 }
 0x1b1   : > { %10548 = vst [vmem:[#allocation81_spill] sm:$0xff] %v7899_v50  ;;  %v2683_v32 = vmul.f32 %v7878_v54, %v2647_v58  ;;  %v2684_v30 = vmul.f32 %v7881_v63, %v2645_v29  ;;  %6240 = vset.pattern.permute.xlu1 %v6289_v41  ;;  %v7928_v29 = vld [vmem:[%s10329_s1 + $0x80] sm:$0xff] }
 0x1b2   : > { %10549 = vst [vmem:[#allocation82_spill] sm:$0xff] %v7901_v0 }
 0x1b3   : > { %2781 = vmatpush.msra.mxu3 %v2684_v30  ;;  %2758 = vmatpush.msra.mxu2 %v2683_v32 }
 0x1b4   : > { %5774 = vmatmul.msk.f32.vlgmr.msrb.gmra.mxu0 %vm550_vm1, %v7741_v8  ;;  %5776 = vmatmul.msk.f32.vlgmr.msrb.gmra.mxu1 %vm550_vm1, %v7741_v8 }
 0x1b6   : > { %v7911_v25 = vpop.f32.mrf.mxu3  ;;  %v7915_v58 = vpop.f32.mrf.mxu0 }
 0x1b7   : > { %v7909_v1 = vpop.permute.xlu1 %2621  ;;  %5779 = vmatmul.msk.f32.gmra.mxu2 %vm550_vm1, %v7782_v40  ;;  %v2618_v31 = vpop.permute.xlu0 %2617  ;;  %10550 = vst [vmem:[#allocation83_spill] sm:$0xff] %v7915_v58  ;;  %v7935_v58 = vperm.slane %v7843_v57, 0 }
 0x1b8   : > { %v2644_v32 = vsel %vm2637_vm8, %v2618_v31, %v7909_v1  ;;  %v7920_v30 = vpop.f32.mrf.mxu1 }
 0x1b9   : > { %10551 = vst [vmem:[#allocation84_spill] sm:$0xff] %v7920_v30  ;;  %v7922_v41 = vpop.f32.mrf.mxu2  ;;  %v2676_v8 = vmul.f32 %v7881_v63, %v2644_v32 }
 0x1ba   : > { %10552 = vst [vmem:[#allocation85_spill] sm:$0xff] %v7922_v41  ;;  %v2610_v41 = vpop.permute.xlu2 %2609 }
 0x1bb   : > { %2782 = vmatpush.msra.mxu3 %v2676_v8  ;;  %10553 = vst [vmem:[#allocation86_spill] sm:$0xff] %v7935_v58 }
 0x1bc   : > { %5775 = vmatmul.msk.f32.gmra.mxu0 %vm550_vm1, %v7782_v40  ;;  %5777 = vmatmul.msk.f32.gmra.mxu1 %vm550_vm1, %v7782_v40 }
 0x1bd   : > { %5791 = vmatmul.msk.f32.vlgmr.msra.gmra.mxu3 %vm550_vm1, %v7928_v29 }
 0x1be   : > { %v7939_v63 = vpop.f32.mrf.mxu3  ;;  %v7943_v0 = vpop.f32.mrf.mxu0 }
 0x1bf   : > { %v2608_v32 = vpop.permute.xlu1 %2607  ;;  %10554 = vst [vmem:[#allocation87_spill] sm:$0xff] %v7939_v63  ;;  %v2614_v8 = vpop.permute.xlu0 %2613 }
 0x1c0   : > { %v2651_v30 = vsel %vm2637_vm8, %v2608_v32, %v2612_v17  ;;  %10555 = vst [vmem:[#allocation88_spill] sm:$0xff] %v7943_v0  ;;  %v2646_v40 = vsel %vm2637_vm8, %v2614_v8, %v2618_v31  ;;  %v2648_v27 = vsel %vm2637_vm8, %v2610_v41, %v2614_v8  ;;  %v7950_v3 = vpop.f32.mrf.mxu1  ;;  %v7959_v17 = vld [vmem:[%s10329_s1 + $0x88] sm:$0xff] }
 0x1c1   : > { %v2681_v50 = vmul.f32 %v7935_v58, %v2651_v30  ;;  %v7952_v51 = vpop.f32.mrf.mxu2  ;;  %v2674_v63 = vmul.f32 %v7848_v37, %v2648_v27  ;;  %v2675_v22 = vmul.f32 %v7878_v54, %v2646_v40  ;;  %v7968_v27 = vperm.slane %v7843_v57, 7 }
 0x1c2   : > { %10556 = vst [vmem:[#allocation89_spill] sm:$0xff] %v7952_v51 }
 0x1c3   : > { %2712 = vmatpush.msra.mxu0 %v2681_v50  ;;  %2736 = vmatpush.msra.mxu1 %v2674_v63  ;;  %10557 = vst [vmem:[#allocation90_spill] sm:$0xff] %v7968_v27 }
 0x1c4   : > { %2759 = vmatpush.msra.mxu2 %v2675_v22  ;;  %5787 = vmatmul.msk.f32.vlgmr.msra.gmra.mxu1 %vm550_vm1, %v7928_v29 }
 0x1c5   : > { %5789 = vmatmul.msk.f32.vlgmr.msra.gmra.mxu2 %vm550_vm1, %v7928_v29  ;;  %5792 = vmatmul.msk.f32.gmra.mxu3 %vm550_vm1, %v7959_v17 }
 0x1c6   : > { %v7970_v31 = vpop.f32.mrf.mxu3  ;;  %v7974_v22 = vpop.f32.mrf.mxu0 }
 0x1c7   : > { %v2606_v50 = vpop.permute.xlu1 %2605  ;;  %10558 = vst [vmem:[#allocation91_spill] sm:$0xff] %v7970_v31  ;;  %v2636_v63 = vpop.permute.xlu0 %2635  ;;  %v2899_v31 = vld [vmem:[%s10330_s2 + $0x8] sm:$0xff] }
 0x1c8   : > { %v2650_v30 = vsel %vm2637_vm8, %v2606_v50, %v2610_v41  ;;  %10559 = vst [vmem:[#allocation92_spill] sm:$0xff] %v7974_v22  ;;  %v2653_v40 = vsel %vm2637_vm8, %v2636_v63, %v2608_v32  ;;  %v7979_v37 = vpop.f32.mrf.mxu1  ;;  %v7994_v41 = vperm.slane %v7843_v57, 6  ;;  %v2630_v32 = vpop.permute.xlu2 %2629  ;;  %2907 = vperm.xlu2 %6238, %v2899_v31  }
 0x1c9   : > { %v2673_v8 = vmul.f32 %v7935_v58, %v2650_v30  ;;  %10560 = vst [vmem:[#allocation93_spill] sm:$0xff] %v7979_v37  ;;  %v7981_v54 = vpop.f32.mrf.mxu2  ;;  %v2688_v4 = vmul.f32 %v7968_v27, %v2653_v40 }
 0x1ca   : > { %10561 = vst [vmem:[#allocation94_spill] sm:$0xff] %v7981_v54 }
 0x1cb   : > { %2713 = vmatpush.msra.mxu0 %v2673_v8  ;;  %2873 = vmatpush.msrb.mxu3 %v2688_v4  ;;  %10562 = vst [vmem:[#allocation95_spill] sm:$0xff] %v7994_v41 }
 0x1cc   : > { %5785 = vmatmul.msk.f32.vlgmr.msra.gmra.mxu0 %vm550_vm1, %v7928_v29  ;;  %5788 = vmatmul.msk.f32.gmra.mxu1 %vm550_vm1, %v7959_v17 }
 0x1cd   : > { %5790 = vmatmul.msk.f32.gmra.mxu2 %vm550_vm1, %v7959_v17 }
 0x1ce   : > { %v7996_v8 = vpop.f32.mrf.mxu3  ;;  %v8000_v58 = vpop.f32.mrf.mxu0 }
 0x1cf   : > { %v2632_v30 = vpop.permute.xlu1 %2631  ;;  %10563 = vst [vmem:[#allocation96_spill] sm:$0xff] %v7996_v8  ;;  %v2634_v40 = vpop.permute.xlu0 %2633 }
 0x1d0   : > { %v2639_v4 = vsel %vm2637_vm8, %v2632_v30, %v2636_v63  ;;  %10564 = vst [vmem:[#allocation97_spill] sm:$0xff] %v8000_v58  ;;  %v2652_v22 = vsel %vm2637_vm8, %v2634_v40, %v2606_v50  ;;  %v2638_v37 = vsel %vm2637_vm8, %v2630_v32, %v2634_v40  ;;  %v8007_v0 = vpop.f32.mrf.mxu1  ;;  %v8020_v50 = vperm.slane %v7843_v57, 4 }
 0x1d1   : > { %v2687_v54 = vmul.f32 %v7994_v41, %v2639_v4  ;;  %10565 = vst [vmem:[#allocation98_spill] sm:$0xff] %v8007_v0  ;;  %v8009_v31 = vpop.f32.mrf.mxu2  ;;  %v2680_v8 = vmul.f32 %v7968_v27, %v2652_v22  ;;  %v2679_v51 = vmul.f32 %v7994_v41, %v2638_v37  ;;  %v8023_v63 = vperm.slane %v7843_v57, 5 }
 0x1d2   : > { %10566 = vst [vmem:[#allocation99_spill] sm:$0xff] %v8009_v31 }
 0x1d3   : > { %2850 = vmatpush.msrb.mxu2 %v2687_v54  ;;  %2874 = vmatpush.msrb.mxu3 %v2680_v8  ;;  %10567 = vst [vmem:[#allocation100_spill] sm:$0xff] %v8020_v50 }
 0x1d4   : > { %5786 = vmatmul.msk.f32.gmra.mxu0 %vm550_vm1, %v7959_v17  ;;  %5799 = vmatmul.msk.f32.vlgmr.msrb.gmra.mxu3 %vm550_vm1, %v7928_v29  ;;  %10568 = vst [vmem:[#allocation101_spill] sm:$0xff] %v8023_v63 }
 0x1d5   : > { %2851 = vmatpush.msrb.mxu2 %v2679_v51 }
 0x1d6   : > { %5797 = vmatmul.msk.f32.vlgmr.msrb.gmra.mxu2 %vm550_vm1, %v7928_v29  ;;  %v8025_v37 = vpop.f32.mrf.mxu3 }
 0x1d7   : > { %v2626_v22 = vpop.permute.xlu1 %2625  ;;  %v2628_v8 = vpop.permute.xlu0 %2627 }
 0x1d8   : > { %v2640_v54 = vsel %vm2637_vm8, %v2626_v22, %v2630_v32  ;;  %v8029_v4 = vpop.f32.mrf.mxu0  ;;  %v2642_v51 = vsel %vm2637_vm8, %v7909_v1, %v2626_v22  ;;  %v2641_v40 = vsel %vm2637_vm8, %v2628_v8, %v2632_v30  ;;  %v2643_v57 = vsel %vm2637_vm8, %v7883_v44, %v2628_v8  ;;  %v8039_v41 = vpop.f32.mrf.mxu1 }
 0x1d9   : > { %10569 = vst [vmem:[#allocation102_spill] sm:$0xff] %v8029_v4  ;;  %v8041_v27 = vpop.f32.mrf.mxu2  ;;  %v2678_v32 = vmul.f32 %v8023_v63, %v2640_v54  ;;  %v2685_v31 = vmul.f32 %v8020_v50, %v2643_v57  ;;  %v2686_v4 = vmul.f32 %v8023_v63, %v2641_v40  ;;  %v2677_v0 = vmul.f32 %v8020_v50, %v2642_v51 }
 0x1da   : > { %10570 = vst [vmem:[#allocation103_spill] sm:$0xff] %v8039_v41 }
 0x1db   : > { %10571 = vst [vmem:[#allocation104_spill] sm:$0xff] %v8041_v27  ;;  %2804 = vmatpush.msrb.mxu0 %v2685_v31  ;;  %2827 = vmatpush.msrb.mxu1 %v2686_v4 }
 0x1dc   : > { %5800 = vmatmul.msk.f32.gmra.mxu3 %vm550_vm1, %v7959_v17 }
 0x1dd   : > { %2805 = vmatpush.msrb.mxu0 %v2677_v0  ;;  %2828 = vmatpush.msrb.mxu1 %v2678_v32 }
 0x1de   : > { %5793 = vmatmul.msk.f32.vlgmr.msrb.gmra.mxu0 %vm550_vm1, %v7928_v29  ;;  %5795 = vmatmul.msk.f32.vlgmr.msrb.gmra.mxu1 %vm550_vm1, %v7928_v29  ;;  %v8053_v44 = vpop.f32.mrf.mxu3 }
 0x1df   : > { %10572 = vst [vmem:[#allocation105_spill] sm:$0xff] %v8053_v44  ;;  %5798 = vmatmul.msk.f32.gmra.mxu2 %vm550_vm1, %v7959_v17 }
 0x1e0   : > { %v8057_v1 = vpop.f32.mrf.mxu0  ;;  %v8059_v30 = vpop.f32.mrf.mxu1 }
 0x1e1   : > { %v8061_v31 = vpop.f32.mrf.mxu2 }
 0x1e6   : > { %5794 = vmatmul.msk.f32.gmra.mxu0 %vm550_vm1, %v7959_v17  ;;  %5796 = vmatmul.msk.f32.gmra.mxu1 %vm550_vm1, %v7959_v17  ;;  %v8067_v0 = vpop.f32.mrf.mxu3 }
 0x1e7   : > { %10573 = vst [vmem:[#allocation106_spill] sm:$0xff] %v8067_v0 }
 0x1e8   : > { %v8069_v29 = vpop.f32.mrf.mxu0  ;;  %v8071_v22 = vpop.f32.mrf.mxu1 }
 0x1e9   : > { %10574 = vst [vmem:[#allocation107_spill] sm:$0xff] %v8069_v29  ;;  %v8073_v54 = vpop.f32.mrf.mxu2 }
 0x1ea   : > { %10575 = vst [vmem:[#allocation108_spill] sm:$0xff] %v8073_v54 }
 0x1ee   : > { %v8075_v8 = vpop.f32.mrf.mxu3 }
 0x1ef   : > { %10576 = vst [vmem:[#allocation109_spill] sm:$0xff] %v8075_v8 }
 0x1f0   : > { %v8077_v4 = vpop.f32.mrf.mxu1  ;;  %v8079_v51 = vpop.f32.mrf.mxu0 }
 0x1f1   : > { %10577 = vst [vmem:[#allocation110_spill] sm:$0xff] %v8077_v4  ;;  %v8081_v40 = vpop.f32.mrf.mxu2 }
 0x1f2   : > { %10578 = vst [vmem:[#allocation111_spill] sm:$0xff] %v8079_v51 }
 0x1f3   : > { %10579 = vst [vmem:[#allocation112_spill] sm:$0xff] %v8081_v40 }
 0x1f7   : > { %v2198_v57 = vpop.f32.mrf.mxu3 }
 0x1f8   : > { %v8083_v32 = vpop.f32.mrf.mxu1  ;;  %v8085_v17 = vpop.f32.mrf.mxu0 }
 0x1f9   : > { %10580 = vst [vmem:[#allocation113_spill] sm:$0xff] %v8083_v32  ;;  %v8087_v63 = vpop.f32.mrf.mxu2 }
 0x1fa   : > { %10581 = vst [vmem:[#allocation114_spill] sm:$0xff] %v8085_v17 }
 0x1fb   : > { %10582 = vst [vmem:[#allocation115_spill] sm:$0xff] %v8087_v63 }
 0x1ff   : > { %v8089_v50 = vpop.f32.mrf.mxu3 }
 0x200   : > { %10583 = vst [vmem:[#allocation116_spill] sm:$0xff] %v8089_v50  ;;  %v2152_v20 = vpop.f32.mrf.mxu1  ;;  %v8091_v27 = vpop.f32.mrf.mxu0 }
 0x201   : > { %v8093_v0 = vpop.f32.mrf.mxu2 }
 0x207   : > { %v8095_v8 = vpop.f32.mrf.mxu3 }
 0x208   : > { %10584 = vst [vmem:[#allocation117_spill] sm:$0xff] %v8095_v8  ;;  %v8097_v4 = vpop.f32.mrf.mxu1  ;;  %v8099_v51 = vpop.f32.mrf.mxu0 }
 0x209   : > { %10585 = vst [vmem:[#allocation118_spill] sm:$0xff] %v8099_v51  ;;  %v8101_v40 = vpop.f32.mrf.mxu2 }
 0x20a   : > { %10586 = vst [vmem:[#allocation119_spill] sm:$0xff] %v8101_v40 }
 0x20f   : > { %v8103_v32 = vpop.f32.mrf.mxu3 }
 0x210   : > { %10587 = vst [vmem:[#allocation120_spill] sm:$0xff] %v8103_v32  ;;  %v8105_v17 = vpop.f32.mrf.mxu1  ;;  %v8107_v63 = vpop.f32.mrf.mxu0 }
 0x211   : > { %10588 = vst [vmem:[#allocation121_spill] sm:$0xff] %v8105_v17  ;;  %v8109_v41 = vpop.f32.mrf.mxu2 }
 0x212   : > { %10589 = vst [vmem:[#allocation122_spill] sm:$0xff] %v8107_v63 }
 0x213   : > { %10590 = vst [vmem:[#allocation123_spill] sm:$0xff] %v8109_v41 }
 0x217   : > { %v2491_v54 = vpop.f32.mrf.mxu3 }
 0x218   : > { %v8111_v50 = vpop.f32.mrf.mxu0 }
 0x219   : > { %10591 = vst [vmem:[#allocation124_spill] sm:$0xff] %v8111_v50  ;;  %v8113_v44 = vpop.f32.mrf.mxu1  ;;  %v8115_v8 = vpop.f32.mrf.mxu2 }
 0x21a   : > { %10592 = vst [vmem:[#allocation125_spill] sm:$0xff] %v8113_v44  ;;  %v788_v44 = vadd.f32 %v7444_v42, %v7197_v24  ;;  %v791_v24 = vadd.f32 %v7498_v23, %v7260_v26  ;;  %v814_v42 = vadd.f32 %v7481_v52, %v7233_v56  ;;  %v929_v26 = vadd.f32 %v7528_v38, %v7325_v60  ;;  %v10602_v38 = vld [vmem:[#allocation67_spill] sm:$0xff] }
 0x21b   : > { %10593 = vst [vmem:[#allocation126_spill] sm:$0xff] %v8115_v8  ;;  %v834_v8 = vadd.f32 %v7387_v7, %v7146_v59  ;;  %v857_v52 = vadd.f32 %v7537_v12, %v7345_v21  ;;  %v880_v56 = vadd.f32 %v7545_v14, %v7354_v33  ;;  %v10603_v12 = vld [vmem:[#allocation54_spill] sm:$0xff] }
 0x21c   : > { %v1217_v21 = vadd.f32 %v7677_v19, %v791_v24  ;;  %v1218_v33 = vadd.f32 %v7664_v5, %v814_v42  ;;  %v10606_v19 = vld [vmem:[#allocation57_spill] sm:$0xff] }
 0x21d   : > { %v10612_v42 = vld [vmem:[#allocation93_spill] sm:$0xff] }
 0x21e   : > { %v1510_v5 = vadd.f32 %v7858_v36, %v1217_v21 }
 0x21f   : > { %v8121_v40 = vpop.f32.mrf.mxu3 }
 0x220   : > { %10596 = vst [vmem:[#allocation129_spill] sm:$0xff] %v8121_v40  ;;  %v1209_v40 = vadd.f32 %v7635_v62, %v788_v44 }
 0x221   : > { %v2445_v58 = vpop.f32.mrf.mxu1  ;;  %v8117_v29 = vpop.f32.mrf.mxu0 }
 0x222   : > { %10594 = vst [vmem:[#allocation127_spill] sm:$0xff] %v8117_v29  ;;  %v8119_v51 = vpop.f32.mrf.mxu2  ;;  %v1211_v29 = vadd.f32 %v7583_v48, %v834_v8  ;;  %v1502_v59 = vadd.f32 %v7804_v39, %v1209_v40  ;;  %v765_v48 = vadd.f32 %v7440_v18, %v7188_v43  ;;  %v10609_v8 = vld [vmem:[#allocation59_spill] sm:$0xff] }
 0x223   : > { %10595 = vst [vmem:[#allocation128_spill] sm:$0xff] %v8119_v51  ;;  %v1213_v40 = vadd.f32 %v10609_v8, %v880_v56  ;;  %v10627_v8 = vld [vmem:[#allocation87_spill] sm:$0xff] }
 0x224   : > { %v1711_v43 = vadd.f32 %v7950_v3, %v1502_v59  ;;  %v1208_v18 = vadd.f32 %v7624_v11, %v765_v48  ;;  %v8191_v11 = vpop.permute.xlu0 %2902  ;;  %v10611_v48 = vld [vmem:[#allocation65_spill] sm:$0xff] }
 0x228   : > { %v8129_v41 = vpop.f32.mrf.mxu3 }
 0x229   : > { %v8123_v32 = vpop.f32.mrf.mxu1  ;;  %v8127_v63 = vpop.f32.mrf.mxu0  ;;  %10599 = vst [vmem:[#allocation132_spill] sm:$0xff] %v8129_v41  ;;  %v837_v41 = vadd.f32 %v7432_v46, %v7184_v13  ;;  %v768_v13 = vadd.f32 %v7494_v53, %v7251_v6  ;;  %v883_v6 = vadd.f32 %v7591_v16, %v7395_v45  ;;  %v10601_v53 = vld [vmem:[#allocation53_spill] sm:$0xff]  ;;  %v10604_v45 = vld [vmem:[#allocation56_spill] sm:$0xff] }
 0x22a   : > { %10597 = vst [vmem:[#allocation130_spill] sm:$0xff] %v8123_v32  ;;  %v8125_v17 = vpop.f32.mrf.mxu2 }
 0x22b   : > { %10598 = vst [vmem:[#allocation131_spill] sm:$0xff] %v8125_v17  ;;  %v1504_v17 = vadd.f32 %v7755_v28, %v1211_v29  ;;  %v1219_v60 = vadd.f32 %v7633_v35, %v837_v41  ;;  %v1216_v16 = vadd.f32 %v10603_v12, %v768_v13  ;;  %v10607_v41 = vld [vmem:[#allocation89_spill] sm:$0xff]  ;;  %v10613_v13 = vld [vmem:[#allocation66_spill] sm:$0xff] }
 0x22d   : > { %v1713_v62 = vadd.f32 %v7911_v25, %v1504_v17  ;;  %v1223_v25 = vadd.f32 %v10606_v19, %v929_v26  ;;  %v10623_v19 = vld [vmem:[#allocation127_spill] sm:$0xff] }
 0x22f   : > { %v2006_v46 = vadd.f32 %v8025_v37, %v1713_v62  ;;  %v1719_v62 = vadd.f32 %v10612_v42, %v1510_v5 }
 0x230   : > { %v8149_v7 = vpop.f32.mrf.mxu3 }
 0x231   : > { %v8131_v50 = vpop.f32.mrf.mxu1  ;;  %v8141_v32 = vpop.f32.mrf.mxu0 }
 0x232   : > { %10600 = vst [vmem:[#allocation133_spill] sm:$0xff] %v8131_v50  ;;  %v8138_v51 = vpop.f32.mrf.mxu2  ;;  %v811_v50 = vadd.f32 %v7424_v10, %v7180_v15  ;;  %v926_v15 = vadd.f32 %v7488_v49, %v7243_v9  ;;  %v903_v10 = vadd.f32 %v7522_v55, %v7310_v2  ;;  %v860_v9 = vadd.f32 %v7589_v61, %v7393_v47 }
 0x233   : > { %v2004_v2 = vadd.f32 %v8059_v30, %v1711_v43  ;;  %v2299_v49 = vadd.f32 %v2198_v57, %v2006_v46  ;;  %v10608_v30 = vld [vmem:[#allocation58_spill] sm:$0xff]  ;;  %v10610_v57 = vld [vmem:[#allocation88_spill] sm:$0xff]  ;;  %v10615_v46 = vld [vmem:[#allocation71_spill] sm:$0xff] }
 0x234   : > { %v1210_v55 = vadd.f32 %v7616_v34, %v811_v50  ;;  %v1215_v23 = vadd.f32 %v10601_v53, %v926_v15  ;;  %v1214_v14 = vadd.f32 %v10604_v45, %v903_v10  ;;  %v10605_v34 = vld [vmem:[#allocation69_spill] sm:$0xff]  ;;  %v1212_v29 = vadd.f32 %v10608_v30, %v857_v52  ;;  %v10614_v10 = vld [vmem:[#allocation68_spill] sm:$0xff]  ;;  %v2927_v52 = vld [vmem:[%s10331_s3 + $0x8] sm:$0xff] }
 0x235   : > { %v2297_v47 = vadd.f32 %v2152_v20, %v2004_v2  ;;  %v1501_v39 = vadd.f32 %v10605_v34, %v1208_v18  ;;  %v2592_v3 = vadd.f32 %v2491_v54, %v2299_v49  ;;  %v1220_v24 = vadd.f32 %v10611_v48, %v860_v9  ;;  %v10617_v18 = vld [vmem:[#allocation75_spill] sm:$0xff]  ;;  %v10621_v45 = vld [vmem:[#allocation81_spill] sm:$0xff]  ;;  %v10629_v48 = vld [vmem:[#allocation94_spill] sm:$0xff] }
 0x236   : > { %v1503_v61 = vadd.f32 %v10602_v38, %v1210_v55  ;;  %v1512_v43 = vadd.f32 %v10614_v10, %v1219_v60  ;;  %v1511_v55 = vadd.f32 %v10615_v46, %v1218_v33  ;;  %v2012_v9 = vadd.f32 %v8071_v22, %v1719_v62  ;;  %v10616_v60 = vld [vmem:[#allocation74_spill] sm:$0xff]  ;;  %v10618_v49 = vld [vmem:[#allocation79_spill] sm:$0xff] }
 0x237   : > { %v2590_v37 = vadd.f32 %v2445_v58, %v2297_v47  ;;  %v1710_v54 = vadd.f32 %v10610_v57, %v1501_v39  ;;  %v1221_v58 = vadd.f32 %v10613_v13, %v883_v6  ;;  %v1509_v21 = vadd.f32 %v10617_v18, %v1216_v16  ;;  %v10620_v47 = vld [vmem:[#allocation128_spill] sm:$0xff]  ;;  %v10622_v39 = vld [vmem:[#allocation82_spill] sm:$0xff]  ;;  %v10624_v16 = vld [vmem:[#allocation83_spill] sm:$0xff] }
 0x238   : > { %v1712_v50 = vadd.f32 %v10607_v41, %v1503_v61  ;;  %v1516_v53 = vadd.f32 %v10618_v49, %v1223_v25  ;;  %v10619_v61 = vld [vmem:[#allocation80_spill] sm:$0xff]  ;;  %v2305_v22 = vadd.f32 %v8097_v4, %v2012_v9  ;;  %v1506_v34 = vadd.f32 %v10621_v45, %v1213_v40  ;;  %v10625_v25 = vld [vmem:[#allocation130_spill] sm:$0xff]  ;;  %v10636_v18 = vld [vmem:[#allocation105_spill] sm:$0xff] }
 0x239   : > { %v8158_v28 = vpop.f32.mrf.mxu1  ;;  %v8196_v44 = vpop.f32.mrf.mxu0  ;;  %v2003_v26 = vadd.f32 %v8057_v1, %v1710_v54  ;;  %v1508_v1 = vadd.f32 %v10616_v60, %v1215_v23  ;;  %v1505_v33 = vadd.f32 %v10619_v61, %v1212_v29  ;;  %v10626_v4 = vld [vmem:[#allocation84_spill] sm:$0xff]  ;;  %v1721_v57 = vadd.f32 %v10627_v8, %v1512_v43  ;;  %v10632_v43 = vld [vmem:[#allocation107_spill] sm:$0xff]  ;;  %v10635_v60 = vld [vmem:[#allocation98_spill] sm:$0xff] }
 0x23a   : > { %v8189_v35 = vpop.f32.mrf.mxu2  ;;  %v2005_v36 = vadd.f32 %v8061_v31, %v1712_v50  ;;  %v2929_v31 = vld [vmem:[%s10331_s3 + $0x18] sm:$0xff]  ;;  %v8229_v50 = vadd.f32 %v10624_v16, %v1220_v24  ;;  %v1514_v29 = vadd.f32 %v10626_v4, %v1221_v58  ;;  %v10628_v54 = vld [vmem:[#allocation92_spill] sm:$0xff]  ;;  %v1720_v24 = vadd.f32 %v10629_v48, %v1511_v55  ;;  %v10637_v49 = vld [vmem:[#allocation118_spill] sm:$0xff] }
 0x23b   : > { %v2296_v38 = vadd.f32 %v8091_v27, %v2003_v26  ;;  %v2598_v27 = vadd.f32 %v10625_v25, %v2305_v22  ;;  %v1718_v40 = vadd.f32 %v10628_v54, %v1509_v21  ;;  %v10631_v58 = vld [vmem:[#allocation96_spill] sm:$0xff]  ;;  %v2014_v21 = vadd.f32 %v10636_v18, %v1721_v57  ;;  %v2935_v45 = vld [vmem:[%s10331_s3 + $0x48] sm:$0xff] }
 0x23c   : > { %v2298_v2 = vadd.f32 %v8093_v0, %v2005_v36  ;;  %v8244_v10 = vadd.f32 %v10631_v58, %v1516_v53  ;;  %v10634_v9 = vld [vmem:[#allocation108_spill] sm:$0xff] }
 0x23d   : > { %v2589_v5 = vadd.f32 %v10623_v19, %v2296_v38  ;;  %v2011_v26 = vadd.f32 %v10632_v43, %v1718_v40  ;;  %v8257_v38 = vpop.permute.xlu2 %2907  ;;  %v10641_v8 = vld [vmem:[#allocation116_spill] sm:$0xff] }
 0x23e   : > { %v2591_v0 = vadd.f32 %v10620_v47, %v2298_v2  ;;  %v2013_v2 = vadd.f32 %v10634_v9, %v1720_v24  ;;  %v2307_v57 = vadd.f32 %v10641_v8, %v2014_v21  ;;  %v10642_v24 = vld [vmem:[#allocation103_spill] sm:$0xff]  ;;  %v10644_v58 = vld [vmem:[#allocation112_spill] sm:$0xff] }
 0x23f   : > { %v2304_v53 = vadd.f32 %v10637_v49, %v2011_v26  ;;  %v10645_v26 = vld [vmem:[#allocation129_spill] sm:$0xff]  ;;  %v3008_v8 = vld [vmem:[%s10332_s4 + $0x10] sm:$0xff] }
 0x240   : > { %v2784_v20 = vpop.f32.mrf.mxu3 }
 0x241   : > { %v2885_v17 = vadd.f32 %v2784_v20, %v2592_v3  ;;  %v2738_v59 = vpop.f32.mrf.mxu1  ;;  %v1507_v3 = vadd.f32 %v10622_v39, %v1214_v14  ;;  %v2928_v14 = vld [vmem:[%s10331_s3 + $0x10] sm:$0xff] }
 0x242   : > { %v2883_v15 = vadd.f32 %v2738_v59, %v2590_v37 }
 0x243   : > { %v2913_v56 = vadd.f32 %v8191_v11, %v2885_v17 }
 0x244   : > { %v2911_v6 = vadd.f32 %v8191_v11, %v2883_v15  ;;  %v10630_v15 = vld [vmem:[#allocation91_spill] sm:$0xff] }
 0x245   : > { %v2945_v23 = vmul.f32 %v2929_v31, %v2913_v56  ;;  %v8241_v13 = vadd.f32 %v10630_v15, %v1508_v1  ;;  %v10633_v56 = vld [vmem:[#allocation97_spill] sm:$0xff]  ;;  %v1715_v1 = vadd.f32 %v10635_v60, %v1506_v34  ;;  %v2597_v34 = vadd.f32 %v8127_v63, %v2304_v53  ;;  %v3007_v63 = vld [vmem:[%s10332_s4 + $0x8] sm:$0xff] }
 0x246   : > { %v2943_v12 = vmul.f32 %v2927_v52, %v2911_v6  ;;  %v8248_v46 = vadd.f32 %v10633_v56, %v1505_v33  ;;  %v2926_v6 = vld [vmem:[%s10331_s3] sm:$0xff]  ;;  %v10638_v33 = vld [vmem:[#allocation119_spill] sm:$0xff]  ;;  %v10646_v53 = vld [vmem:[#allocation121_spill] sm:$0xff] }
 0x247   : > { %v2961_v52 = vmax.f32 %v2945_v23, 0.0  ;;  %v2306_v22 = vadd.f32 %v10638_v33, %v2013_v2 }
 0x248   : > { %v2761_v41 = vpop.f32.mrf.mxu2  ;;  %v2959_v37 = vmax.f32 %v2943_v12, 0.0  ;;  %v2787_v2 = vpop.f32.mrf.mxu3 }
 0x249   : > { %v2884_v20 = vadd.f32 %v2761_v41, %v2591_v0  ;;  %v2715_v30 = vpop.f32.mrf.mxu0  ;;  %v2741_v59 = vpop.f32.mrf.mxu1  ;;  %v8266_v39 = vmin.f32 %v2961_v52, 15.0  ;;  %v10639_v41 = vld [vmem:[#allocation131_spill] sm:$0xff]  ;;  %v2600_v52 = vadd.f32 %v10645_v26, %v2307_v57 }
 0x24a   : > { %v2882_v17 = vadd.f32 %v2715_v30, %v2589_v5  ;;  %v2975_v42 = vmin.f32 %v2959_v37, 15.0  ;;  %v2891_v36 = vadd.f32 %v2741_v59, %v2598_v27  ;;  %v2599_v16 = vadd.f32 %v10639_v41, %v2306_v22  ;;  %v10640_v30 = vld [vmem:[#allocation99_spill] sm:$0xff] }
 0x24b   : > { %v2912_v62 = vadd.f32 %v8191_v11, %v2884_v20  ;;  %v1716_v4 = vadd.f32 %v10640_v30, %v1507_v3  ;;  %v5991_v3 = vcvt.f32.s32 %v8266_v39  ;;  %v2893_v22 = vadd.f32 %v2787_v2, %v2600_v52 }
 0x24c   : > { %v5975_v31 = vcvt.f32.s32 %v2975_v42  ;;  %v2910_v61 = vadd.f32 %v8191_v11, %v2882_v17  ;;  %v2919_v12 = vadd.f32 %v8257_v38, %v2891_v36  ;;  %v5973_v19 = vand.u32 2147483647, %v2975_v42  ;;  %v10643_v36 = vld [vmem:[#allocation110_spill] sm:$0xff] }
 0x24d   : > { %v2944_v55 = vmul.f32 %v2928_v14, %v2912_v62  ;;  %v5978_v27 = vand.u32 2147483648, %v2975_v42  ;;  %v8275_v62 = vadd.f32 %v10642_v24, %v1514_v29  ;;  %v2008_v15 = vadd.f32 %v10643_v36, %v1715_v1  ;;  %v2936_v29 = vld [vmem:[%s10331_s3 + $0x50] sm:$0xff]  ;;  %v2934_v1 = vld [vmem:[%s10331_s3 + $0x40] sm:$0xff] }
 0x24e   : > { %v5976_v47 = vcvt.s32.f32 %v5975_v31  ;;  %v2942_v5 = vmul.f32 %v2926_v6, %v2910_v61  ;;  %v2951_v40 = vmul.f32 %v2935_v45, %v2919_v12  ;;  %vm5974_vm9 = vcmp.lt.f32.partialorder %v5973_v19, 8388608.0  ;;  %v10647_v19 = vld [vmem:[#allocation123_spill] sm:$0xff] }
 0x24f   : > { %v2960_v0 = vmax.f32 %v2944_v55, 0.0  ;;  %v2009_v43 = vadd.f32 %v10644_v58, %v1716_v4  ;;  %v2301_v61 = vadd.f32 %v10646_v53, %v2008_v15  ;;  %v5992_v33 = vcvt.s32.f32 %v5991_v3 }
 0x250   : > { %v2764_v23 = vpop.f32.mrf.mxu2  ;;  %v5977_v25 = vand.u32 2147483647, %v5976_v47  ;;  %v2958_v54 = vmax.f32 %v2942_v5, 0.0  ;;  %v2967_v21 = vmax.f32 %v2951_v40, 0.0  ;;  %v2921_v40 = vadd.f32 %v8257_v38, %v2893_v22 }
 0x251   : > { %v2976_v37 = vmin.f32 %v2960_v0, 15.0  ;;  %v2718_v20 = vpop.f32.mrf.mxu0  ;;  %v2892_v59 = vadd.f32 %v2764_v23, %v2599_v16  ;;  %v2302_v5 = vadd.f32 %v10647_v19, %v2009_v43  ;;  %v5989_v2 = vand.u32 2147483647, %v8266_v39 }
 0x252   : > { %v5979_v14 = vor.u32 %v5978_v27, %v5977_v25  ;;  %v2890_v48 = vadd.f32 %v2718_v20, %v2597_v34  ;;  %v2974_v60 = vmin.f32 %v2958_v54, 15.0  ;;  %v8296_v12 = vmin.f32 %v2967_v21, 15.0  ;;  %v10650_v25 = vld [vmem:[#allocation109_spill] sm:$0xff] }
 0x253   : > { %v5983_v17 = vcvt.f32.s32 %v2976_v37  ;;  %v5981_v55 = vand.u32 2147483647, %v2976_v37  ;;  %v5986_v6 = vand.u32 2147483648, %v2976_v37  ;;  %v2920_v49 = vadd.f32 %v8257_v38, %v2892_v59  ;;  %v10651_v20 = vld [vmem:[#allocation133_spill] sm:$0xff] }
 0x254   : > { %v5980_v56 = vsel %vm5974_vm9, %v5979_v14, %v2975_v42  ;;  %v2918_v42 = vadd.f32 %v8257_v38, %v2890_v48  ;;  %v5967_v47 = vcvt.f32.s32 %v2974_v60  ;;  %v5965_v41 = vand.u32 2147483647, %v2974_v60 }
 0x255   : > { %v5984_v9 = vcvt.s32.f32 %v5983_v17  ;;  %v8281_v31 = vmul.f32 %v5980_v56, %v3007_v63  ;;  %v2952_v45 = vmul.f32 %v2936_v29, %v2920_v49  ;;  %vm8299_vm10 = vcmp.lt.f32.partialorder %v5981_v55, 8388608.0 }
 0x256   : > { %v2950_v34 = vmul.f32 %v2934_v1, %v2918_v42  ;;  %v5968_v16 = vcvt.s32.f32 %v5967_v47  ;;  %v2018_v27 = vadd.f32 %v10650_v25, %v8244_v10  ;;  %v2594_v30 = vadd.f32 %v10651_v20, %v2301_v61  ;;  %v2937_v10 = vld [vmem:[%s10331_s3 + $0x58] sm:$0xff]  ;;  %v10652_v42 = vld [vmem:[#allocation111_spill] sm:$0xff]  ;;  %v10655_v47 = vld [vmem:[#allocation106_spill] sm:$0xff] }
 0x257   : > { %v5985_v18 = vand.u32 2147483647, %v5984_v9  ;;  %3042 = vrot.lane.b32.xlu0 %v8281_v31, %s6282_s20  ;;  %3108 = vrot.lane.b32.xlu2 %v8281_v31, %s6281_s19  ;;  %v6039_v57 = vcvt.f32.s32 %v8296_v12  ;;  %v2595_v54 = vadd.f32 %v8138_v51, %v2302_v5  ;;  %v5970_v14 = vand.u32 2147483648, %v2974_v60  ;;  %v3006_v51 = vld [vmem:[%s10332_s4] sm:$0xff]  ;;  %v8323_v58 = vpop.f32.mrf.mxu3  ;;  %v10656_v5 = vld [vmem:[#allocation120_spill] sm:$0xff] }
 0x258   : > { %v5969_v63 = vand.u32 2147483647, %v5968_v16  ;;  %v5993_v59 = vand.u32 2147483647, %v5992_v33  ;;  %v2966_v24 = vmax.f32 %v2950_v34, 0.0  ;;  %vm5966_vm11 = vcmp.lt.f32.partialorder %v5965_v41, 8388608.0 }
 0x259   : > { %v5987_v0 = vor.u32 %v5986_v6, %v5985_v18  ;;  %v2853_v17 = vpop.f32.mrf.mxu2  ;;  %v6040_v48 = vcvt.s32.f32 %v6039_v57  ;;  %v6037_v3 = vand.u32 2147483647, %v8296_v12  ;;  %v6042_v26 = vand.u32 2147483648, %v8296_v12  ;;  %v3009_v57 = vld [vmem:[%s10332_s4 + $0x18] sm:$0xff]  ;;  %v10668_v33 = vld [vmem:[#allocation48_spill] sm:$0xff] }
 0x25a   : > { %v5971_v15 = vor.u32 %v5970_v14, %v5969_v63  ;;  %v8326_v52 = vmin.f32 %v2966_v24, 15.0  ;;  %v2888_v56 = vadd.f32 %v2853_v17, %v2595_v54  ;;  %v5994_v55 = vand.u32 2147483648, %v8266_v39  ;;  %v10660_v14 = vld [vmem:[#allocation102_spill] sm:$0xff] }
 0x25b   : > { %v5988_v4 = vsel %vm8299_vm10, %v5987_v0, %v2976_v37  ;;  %v2968_v37 = vmax.f32 %v2952_v45, 0.0  ;;  %v6041_v43 = vand.u32 2147483647, %v6040_v48  ;;  %v2830_v9 = vpop.f32.mrf.mxu1  ;;  %v2953_v6 = vmul.f32 %v2937_v10, %v2921_v40  ;;  %v2931_v48 = vld [vmem:[%s10331_s3 + $0x28] sm:$0xff] }
 0x25c   : > { %v8317_v36 = vmul.f32 %v5988_v4, %v3008_v8  ;;  %v5972_v29 = vsel %vm5966_vm11, %v5971_v15, %v2974_v60  ;;  %v6031_v49 = vcvt.f32.s32 %v8326_v52  ;;  %v2007_v53 = vadd.f32 %v10652_v42, %v8248_v46  ;;  %v2932_v60 = vld [vmem:[%s10331_s3 + $0x30] sm:$0xff]  ;;  %v3015_v46 = vld [vmem:[%s10332_s4 + $0x48] sm:$0xff]  ;;  %v2807_v8 = vpop.f32.mrf.mxu0  ;;  %v10662_v15 = vld [vmem:[#allocation117_spill] sm:$0xff] }
 0x25d   : > { %v8332_v1 = vmul.f32 %v5972_v29, %v3006_v51  ;;  %v6043_v18 = vor.u32 %v6042_v26, %v6041_v43  ;;  %v8334_v21 = vmin.f32 %v2968_v37, 15.0  ;;  %v5995_v61 = vor.u32 %v5994_v55, %v5993_v59  ;;  %v10661_v37 = vld [vmem:[#allocation113_spill] sm:$0xff]  ;;  %v10666_v29 = vld [vmem:[#allocation132_spill] sm:$0xff] }
 0x25e   : > { %vm8339_vm12 = vcmp.lt.f32.partialorder %v6037_v3, 8388608.0  ;;  %v2887_v22 = vadd.f32 %v2830_v9, %v2594_v30  ;;  %v2010_v0 = vadd.f32 %v10655_v47, %v8241_v13  ;;  %v6032_v34 = vcvt.s32.f32 %v6031_v49  ;;  %v10657_v13 = vld [vmem:[#allocation122_spill] sm:$0xff] }
 0x25f   : > { %3112 = vrot.lane.b32.xlu0 %v8317_v36, %s6281_s19  ;;  %v6044_v45 = vsel %vm8339_vm12, %v6043_v18, %v8296_v12  ;;  %v2916_v19 = vadd.f32 %v8191_v11, %v2888_v56  ;;  %3038 = vrot.lane.b32.xlu2 %v8332_v1, %s6282_s20  ;;  %v2311_v23 = vadd.f32 %v10656_v5, %v2018_v27  ;;  %vm8361_vm13 = vcmp.lt.f32.partialorder %v5989_v2, 8388608.0  ;;  %v2879_v43 = vpop.f32.mrf.mxu3  ;;  %v10663_v2 = vld [vmem:[#allocation114_spill] sm:$0xff] }
 0x260   : > { %3104 = vrot.lane.b32.xlu1 %v8332_v1, %s6281_s19  ;;  %v2300_v41 = vadd.f32 %v10657_v13, %v2007_v53  ;;  %v2969_v12 = vmax.f32 %v2953_v6, 0.0  ;;  %v6047_v25 = vcvt.f32.s32 %v8334_v21  ;;  %v6033_v20 = vand.u32 2147483647, %v6032_v34  ;;  %v3014_v49 = vld [vmem:[%s10332_s4 + $0x40] sm:$0xff] }
 0x261   : > { %v6034_v30 = vand.u32 2147483648, %v8326_v52  ;;  %v2948_v4 = vmul.f32 %v2932_v60, %v2916_v19  ;;  %v5996_v27 = vsel %vm8361_vm13, %v5995_v61, %v8266_v39  ;;  %v8373_v54 = vmul.f32 %v6044_v45, %v3015_v46  ;;  %v10667_v61 = vld [vmem:[#allocation40_spill] sm:$0xff] }
 0x262   : > { %v6029_v40 = vand.u32 2147483647, %v8326_v52  ;;  %v2915_v63 = vadd.f32 %v8191_v11, %v2887_v22  ;;  %v1722_v17 = vadd.f32 %v10660_v14, %v8229_v50  ;;  %v2016_v24 = vadd.f32 %v10661_v37, %v8275_v62  ;;  %v10669_v22 = vld [vmem:[#allocation124_spill] sm:$0xff]  ;;  %v2938_v62 = vld [vmem:[%s10331_s3 + $0x60] sm:$0xff] }
 0x263   : > { %v6035_v59 = vor.u32 %v6034_v30, %v6033_v20  ;;  %v2964_v10 = vmax.f32 %v2948_v4, 0.0  ;;  %v2303_v39 = vadd.f32 %v10662_v15, %v2010_v0  ;;  %v2604_v51 = vadd.f32 %v8149_v7, %v2311_v23  ;;  %v10670_v0 = vld [vmem:[#allocation125_spill] sm:$0xff]  ;;  %v2930_v20 = vld [vmem:[%s10331_s3 + $0x20] sm:$0xff] }
 0x264   : > { %v2593_v3 = vadd.f32 %v8141_v32, %v2300_v41  ;;  %v8389_v50 = vmul.f32 %v5996_v27, %v3009_v57  ;;  %v8391_v26 = vmin.f32 %v2969_v12, 15.0  ;;  %v6048_v56 = vcvt.s32.f32 %v6047_v25  ;;  %v2810_v4 = vpop.f32.mrf.mxu0 }
 0x265   : > { %v2980_v9 = vmin.f32 %v2964_v10, 15.0  ;;  %v2015_v55 = vadd.f32 %v10663_v2, %v1722_v17  ;;  %vm8394_vm14 = vcmp.lt.f32.partialorder %v6029_v40, 8388608.0  ;;  %v2947_v7 = vmul.f32 %v2931_v48, %v2915_v63  ;;  %v2941_v40 = vld [vmem:[%s10331_s3 + $0x78] sm:$0xff]  ;;  %v2833_v10 = vpop.f32.mrf.mxu1 }
 0x266   : > { %v2886_v6 = vadd.f32 %v2807_v8, %v2593_v3  ;;  %v2596_v32 = vadd.f32 %v10666_v29, %v2303_v39  ;;  %v6036_v18 = vsel %vm8394_vm14, %v6035_v59, %v8326_v52  ;;  %v2897_v53 = vadd.f32 %v2879_v43, %v2604_v51  ;;  %v10671_v8 = vld [vmem:[#allocation61_spill] sm:$0xff]  ;;  %v3012_v39 = vld [vmem:[%s10332_s4 + $0x30] sm:$0xff] }
 0x267   : > { %3044 = vrot.lane.b32.xlu0 %v8373_v54, %s6282_s20  ;;  %v6015_v42 = vcvt.f32.s32 %v2980_v9  ;;  %3050 = vrot.lane.b32.xlu2 %v8389_v50, %s6282_s20  ;;  %v906_v60 = vadd.f32 %v10668_v33, %v10667_v61  ;;  %v2308_v47 = vadd.f32 %v10669_v22, %v2015_v55  ;;  %v2309_v45 = vadd.f32 %v10670_v0, %v2016_v24  ;;  %v2933_v3 = vld [vmem:[%s10331_s3 + $0x38] sm:$0xff]  ;;  %v10678_v0 = vld [vmem:[#allocation115_spill] sm:$0xff] }
 0x268   : > { %3116 = vrot.lane.b32.xlu1 %v8389_v50, %s6281_s19  ;;  %v6055_v52 = vcvt.f32.s32 %v8391_v26  ;;  %v6049_v46 = vand.u32 2147483647, %v6048_v56  ;;  %v2889_v34 = vadd.f32 %v8323_v58, %v2596_v32  ;;  %v8415_v5 = vmul.f32 %v6036_v18, %v3014_v49  ;;  %v10677_v49 = vld [vmem:[#allocation104_spill] sm:$0xff] }
 0x269   : > { %v6016_v19 = vcvt.s32.f32 %v6015_v42  ;;  %v6013_v23 = vand.u32 2147483647, %v2980_v9  ;;  %v2914_v13 = vadd.f32 %v8191_v11, %v2886_v6  ;;  %v2963_v41 = vmax.f32 %v2947_v7, 0.0  ;;  %v3016_v7 = vld [vmem:[%s10332_s4 + $0x50] sm:$0xff] }
 0x26a   : > { %v6050_v16 = vand.u32 2147483648, %v8334_v21  ;;  %v6018_v25 = vand.u32 2147483648, %v2980_v9  ;;  %v2925_v30 = vadd.f32 %v8257_v38, %v2897_v53  ;;  %v1222_v58 = vadd.f32 %v10671_v8, %v906_v60  ;;  %v2939_v60 = vld [vmem:[%s10331_s3 + $0x68] sm:$0xff] }
 0x26b   : > { %v6017_v12 = vand.u32 2147483647, %v6016_v19  ;;  %v2601_v57 = vadd.f32 %v8196_v44, %v2308_v47  ;;  %v2602_v27 = vadd.f32 %v8158_v28, %v2309_v45  ;;  %v6056_v63 = vcvt.s32.f32 %v6055_v52 }
 0x26c   : > { %v6045_v14 = vand.u32 2147483647, %v8334_v21  ;;  %v6051_v17 = vor.u32 %v6050_v16, %v6049_v46  ;;  %vm8432_vm15 = vcmp.lt.f32.partialorder %v6013_v23, 8388608.0  ;;  %v2946_v44 = vmul.f32 %v2930_v20, %v2914_v13 }
 0x26d   : > { %v6019_v59 = vor.u32 %v6018_v25, %v6017_v12  ;;  %v8436_v37 = vmin.f32 %v2963_v41, 15.0  ;;  %v2894_v28 = vadd.f32 %v2810_v4, %v2601_v57  ;;  %v2917_v24 = vadd.f32 %v8191_v11, %v2889_v34  ;;  %v10674_v11 = vld [vmem:[#allocation85_spill] sm:$0xff]  ;;  %v10679_v41 = vld [vmem:[#allocation126_spill] sm:$0xff] }
 0x26e   : > { %v2957_v51 = vmul.f32 %v2941_v40, %v2925_v30  ;;  %v2895_v43 = vadd.f32 %v2833_v10, %v2602_v27  ;;  %v1515_v56 = vadd.f32 %v10674_v11, %v1222_v58  ;;  %v6057_v2 = vand.u32 2147483647, %v6056_v63  ;;  %v2856_v58 = vpop.f32.mrf.mxu2  ;;  %v3017_v57 = vld [vmem:[%s10332_s4 + $0x58] sm:$0xff] }
 0x26f   : > { %3040 = vrot.lane.b32.xlu0 %v8415_v5, %s6282_s20  ;;  %v6020_v15 = vsel %vm8432_vm15, %v6019_v59, %v2980_v9  ;;  %3106 = vrot.lane.b32.xlu2 %v8415_v5, %s6281_s19  ;;  %vm8452_vm9 = vcmp.lt.f32.partialorder %v6045_v14, 8388608.0  ;;  %v2922_v55 = vadd.f32 %v8257_v38, %v2894_v28  ;;  %v2962_v32 = vmax.f32 %v2946_v44, 0.0 }
 0x270   : > { %3046 = vrot.lane.b32.xlu1 %v8317_v36, %s6282_s20  ;;  %v6052_v6 = vsel %vm8452_vm9, %v6051_v17, %v8334_v21  ;;  %v8466_v29 = vmul.f32 %v6020_v15, %v3012_v39  ;;  %v6007_v18 = vcvt.f32.s32 %v8436_v37  ;;  %v1724_v42 = vadd.f32 %v10677_v49, %v1515_v56 }
 0x271   : > { %v6058_v53 = vand.u32 2147483648, %v8391_v26  ;;  %v2949_v61 = vmul.f32 %v2933_v3, %v2917_v24  ;;  %v2973_v33 = vmax.f32 %v2957_v51, 0.0  ;;  %v6053_v21 = vand.u32 2147483647, %v8391_v26 }
 0x272   : > { %v2954_v22 = vmul.f32 %v2938_v62, %v2922_v55  ;;  %v2923_v47 = vadd.f32 %v8257_v38, %v2895_v43  ;;  %v2017_v45 = vadd.f32 %v10678_v0, %v1724_v42  ;;  %v8479_v46 = vmul.f32 %v6052_v6, %v3016_v7 }
 0x273   : > { %v6059_v52 = vor.u32 %v6058_v53, %v6057_v2  ;;  %v8481_v34 = vmin.f32 %v2962_v32, 15.0  ;;  %v6008_v19 = vcvt.s32.f32 %v6007_v18  ;;  %v2965_v12 = vmax.f32 %v2949_v61, 0.0  ;;  %v2940_v2 = vld [vmem:[%s10331_s3 + $0x70] sm:$0xff]  ;;  %v3019_v53 = vld [vmem:[%s10332_s4 + $0x68] sm:$0xff] }
 0x274   : > { %v2970_v23 = vmax.f32 %v2954_v22, 0.0  ;;  %v2955_v13 = vmul.f32 %v2939_v60, %v2923_v47  ;;  %v2310_v16 = vadd.f32 %v10679_v41, %v2017_v45  ;;  %v8484_v25 = vmin.f32 %v2973_v33, 15.0 }
 0x275   : > { %vm6054_vm10 = vcmp.lt.f32.partialorder %v6053_v21, 8388608.0  ;;  %v5999_v27 = vcvt.f32.s32 %v8481_v34  ;;  %v6009_v40 = vand.u32 2147483647, %v6008_v19  ;;  %v8499_v17 = vmin.f32 %v2965_v12, 15.0 }
 0x276   : > { %v8490_v20 = vmin.f32 %v2970_v23, 15.0  ;;  %v2971_v30 = vmax.f32 %v2955_v13, 0.0  ;;  %v2603_v4 = vadd.f32 %v8189_v35, %v2310_v16  ;;  %v6060_v8 = vsel %vm6054_vm10, %v6059_v52, %v8391_v26  ;;  %v3010_v16 = vld [vmem:[%s10332_s4 + $0x20] sm:$0xff] }
 0x277   : > { %3128 = vrot.lane.b32.xlu0 %v8466_v29, %s6281_s19  ;;  %3114 = vrot.lane.b32.xlu2 %v8479_v46, %s6281_s19  ;;  %v6087_v59 = vcvt.f32.s32 %v8484_v25  ;;  %v6010_v10 = vand.u32 2147483648, %v8436_v37  ;;  %v8503_v48 = vmul.f32 %v6060_v8, %v3017_v57  ;;  %v6005_v26 = vand.u32 2147483647, %v8436_v37 }
 0x278   : > { %3110 = vrot.lane.b32.xlu1 %v8373_v54, %s6281_s19  ;;  %v6063_v63 = vcvt.f32.s32 %v8490_v20  ;;  %v2987_v14 = vmin.f32 %v2971_v30, 15.0  ;;  %v2896_v35 = vadd.f32 %v2856_v58, %v2603_v4  ;;  %v6000_v28 = vcvt.s32.f32 %v5999_v27  ;;  %v3018_v4 = vld [vmem:[%s10332_s4 + $0x60] sm:$0xff]  ;;  %v3021_v58 = vld [vmem:[%s10332_s4 + $0x78] sm:$0xff] }
 0x279   : > { %v6011_v24 = vor.u32 %v6010_v10, %v6009_v40  ;;  %v6023_v39 = vcvt.f32.s32 %v8499_v17  ;;  %v6088_v51 = vcvt.s32.f32 %v6087_v59  ;;  %vm8512_vm11 = vcmp.lt.f32.partialorder %v6005_v26, 8388608.0  ;;  %v3013_v59 = vld [vmem:[%s10332_s4 + $0x38] sm:$0xff] }
 0x27a   : > { %v6071_v44 = vcvt.f32.s32 %v2987_v14  ;;  %v6064_v15 = vcvt.s32.f32 %v6063_v63  ;;  %v2924_v43 = vadd.f32 %v8257_v38, %v2896_v35  ;;  %v6069_v11 = vand.u32 2147483647, %v2987_v14  ;;  %v3011_v38 = vld [vmem:[%s10332_s4 + $0x28] sm:$0xff] }
 0x27b   : > { %v6074_v55 = vand.u32 2147483648, %v2987_v14  ;;  %v6001_v62 = vand.u32 2147483647, %v6000_v28  ;;  %v6012_v6 = vsel %vm8512_vm11, %v6011_v24, %v8436_v37  ;;  %v6024_v32 = vcvt.s32.f32 %v6023_v39  ;;  %v3020_v39 = vld [vmem:[%s10332_s4 + $0x70] sm:$0xff] }
 0x27c   : > { %v6072_v3 = vcvt.s32.f32 %v6071_v44  ;;  %v6065_v7 = vand.u32 2147483647, %v6064_v15  ;;  %v5997_v18 = vand.u32 2147483647, %v8481_v34  ;;  %v6089_v49 = vand.u32 2147483647, %v6088_v51 }
 0x27d   : > { %v6002_v61 = vand.u32 2147483648, %v8481_v34  ;;  %v2956_v33 = vmul.f32 %v2940_v2, %v2924_v43  ;;  %v6066_v60 = vand.u32 2147483648, %v8490_v20  ;;  %vm6070_vm12 = vcmp.lt.f32.partialorder %v6069_v11, 8388608.0 }
 0x27e   : > { %v6073_v9 = vand.u32 2147483647, %v6072_v3  ;;  %v8531_v37 = vmul.f32 %v6012_v6, %v3011_v38  ;;  %v6090_v21 = vand.u32 2147483648, %v8484_v25  ;;  %v6061_v22 = vand.u32 2147483647, %v8490_v20 }
 0x27f   : > { %3052 = vrot.lane.b32.xlu2 %v8503_v48, %s6282_s20  ;;  %v6003_v0 = vor.u32 %v6002_v61, %v6001_v62  ;;  %v6085_v45 = vand.u32 2147483647, %v8484_v25  ;;  %v6067_v52 = vor.u32 %v6066_v60, %v6065_v7  ;;  %v6025_v13 = vand.u32 2147483647, %v6024_v32 }
 0x280   : > { %3118 = vrot.lane.b32.xlu1 %v8503_v48, %s6281_s19  ;;  %v6075_v42 = vor.u32 %v6074_v55, %v6073_v9  ;;  %v6091_v23 = vor.u32 %v6090_v21, %v6089_v49  ;;  %vm5998_vm13 = vcmp.lt.f32.partialorder %v5997_v18, 8388608.0  ;;  %vm6062_vm14 = vcmp.lt.f32.partialorder %v6061_v22, 8388608.0  ;;  %v10683_v22 = vld [vmem:[#allocation6_spill] sm:$0xff] }
 0x281   : > { %v6004_v41 = vsel %vm5998_vm13, %v6003_v0, %v8481_v34  ;;  %vm6086_vm15 = vcmp.lt.f32.partialorder %v6085_v45, 8388608.0  ;;  %v2972_v12 = vmax.f32 %v2956_v33, 0.0  ;;  %v6068_v30 = vsel %vm6062_vm14, %v6067_v52, %v8490_v20  ;;  %v10684_v0 = vld [vmem:[#allocation3_spill] sm:$0xff] }
 0x282   : > { %v6076_v47 = vsel %vm6070_vm12, %v6075_v42, %v2987_v14  ;;  %v6092_v8 = vsel %vm6086_vm15, %v6091_v23, %v8484_v25  ;;  %v6026_v34 = vand.u32 2147483648, %v8499_v17  ;;  %v6021_v57 = vand.u32 2147483647, %v8499_v17 }
 0x283   : > { %v8536_v19 = vmul.f32 %v6076_v47, %v3019_v53  ;;  %v8558_v27 = vmul.f32 %v6004_v41, %v3010_v16  ;;  %v8560_v40 = vmul.f32 %v6068_v30, %v3018_v4  ;;  %v8562_v20 = vmul.f32 %v6092_v8, %v3021_v58  ;;  %v10685_v58 = vld [vmem:[#allocation4_spill] sm:$0xff] }
 0x284   : > { %v6027_v63 = vor.u32 %v6026_v34, %v6025_v13  ;;  %v2988_v14 = vmin.f32 %v2972_v12, 15.0  ;;  %vm6022_vm9 = vcmp.lt.f32.partialorder %v6021_v57, 8388608.0  ;;  %v8685_v13 = vld [vmem:[%s10333_s5 + $0x10] sm:$0xff] }
 0x285   : > { %3126 = vrot.lane.b32.xlu0 %v8536_v19, %s6281_s19 }
 0x286   : > { %v6028_v25 = vsel %vm6022_vm9, %v6027_v63, %v8499_v17  ;;  %v6079_v10 = vcvt.f32.s32 %v2988_v14  ;;  %v6082_v28 = vand.u32 2147483648, %v2988_v14  ;;  %v6077_v17 = vand.u32 2147483647, %v2988_v14  ;;  %v8712_v63 = vld [vmem:[%s10333_s5 + $0x18] sm:$0xff] }
 0x287   : > { %3124 = vrot.lane.b32.xlu2 %v8531_v37, %s6281_s19  ;;  %v8574_v35 = vmul.f32 %v6028_v25, %v3013_v59 }
 0x288   : > { %3048 = vrot.lane.b32.xlu1 %v8479_v46, %s6282_s20  ;;  %v6080_v26 = vcvt.s32.f32 %v6079_v10  ;;  %vm6078_vm10 = vcmp.lt.f32.partialorder %v6077_v17, 8388608.0 }
 0x28a   : > { %v6081_v44 = vand.u32 2147483647, %v6080_v26 }
 0x28c   : > { %v6083_v24 = vor.u32 %v6082_v28, %v6081_v44 }
 0x28d   : > { %3134 = vrot.lane.b32.xlu0 %v8562_v20, %s6281_s19 }
 0x28e   : > { %v6084_v15 = vsel %vm6078_vm10, %v6083_v24, %v2988_v14 }
 0x28f   : > { %3120 = vrot.lane.b32.xlu2 %v8558_v27, %s6281_s19  ;;  %v8591_v51 = vmul.f32 %v6084_v15, %v3020_v39  ;;  %v10686_v39 = vld [vmem:[#allocation12_spill] sm:$0xff] }
 0x290   : > { %3122 = vrot.lane.b32.xlu1 %v8560_v40, %s6281_s19 }
 0x295   : > { %3066 = vrot.lane.b32.xlu0 %v8574_v35, %s6282_s20 }
 0x297   : > { %3132 = vrot.lane.b32.xlu2 %v8574_v35, %s6281_s19 }
 0x298   : > { %3060 = vrot.lane.b32.xlu1 %v8536_v19, %s6282_s20 }
 0x29d   : > { %3058 = vrot.lane.b32.xlu0 %v8531_v37, %s6282_s20 }
 0x29f   : > { %3056 = vrot.lane.b32.xlu2 %v8560_v40, %s6282_s20 }
 0x2a0   : > { %3062 = vrot.lane.b32.xlu1 %v8466_v29, %s6282_s20 }
 0x2a5   : > { %3054 = vrot.lane.b32.xlu0 %v8558_v27, %s6282_s20 }
 0x2a7   : > { %3561 = vrot.lane.b32.xlu2 %v8479_v46, %s6283_s21 }
 0x2a8   : > { %3130 = vrot.lane.b32.xlu1 %v8591_v51, %s6281_s19  ;;  %s10166_s19 = scalar_lea.vmem %s10338_s10, %s5963_s15 }
 0x2ad   : > { %3565 = vrot.lane.b32.xlu0 %v8503_v48, %s6283_s21 }
 0x2af   : > { %3559 = vrot.lane.b32.xlu2 %v8317_v36, %s6283_s21 }
 0x2b0   : > { %3557 = vrot.lane.b32.xlu1 %v8373_v54, %s6283_s21 }
 0x2b1   : > { %v3109_v3 = vpop.permute.xlu2 %3108 }
 0x2b5   : > { %3563 = vrot.lane.b32.xlu0 %v8389_v50, %s6283_s21 }
 0x2b7   : > { %3573 = vrot.lane.b32.xlu2 %v8536_v19, %s6283_s21 }
 0x2b8   : > { %3555 = vrot.lane.b32.xlu1 %v8281_v31, %s6283_s21 }
 0x2b9   : > { %v8611_v43 = vpop.permute.xlu2 %3038 }
 0x2bd   : > { %3551 = vrot.lane.b32.xlu0 %v8332_v1, %s6283_s21 }
 0x2bf   : > { %3064 = vrot.lane.b32.xlu2 %v8591_v51, %s6282_s20 }
 0x2c0   : > { %3068 = vrot.lane.b32.xlu1 %v8562_v20, %s6282_s20 }
 0x2c1   : > { %v8619_v11 = vpop.permute.xlu2 %3050 }
 0x2c5   : > { %3569 = vrot.lane.b32.xlu0 %v8560_v40, %s6283_s21 }
 0x2c7   : > { %3575 = vrot.lane.b32.xlu2 %v8466_v29, %s6283_s21 }
 0x2c8   : > { %3553 = vrot.lane.b32.xlu1 %v8415_v5, %s6283_s21 }
 0x2c9   : > { %v8627_v56 = vpop.permute.xlu0 %3042  ;;  %v8629_v2 = vpop.permute.xlu2 %3106 }
 0x2cd   : > { %3834 = vrot.lane.b32.xlu0 %v8479_v46, %s6284_s24 }
 0x2cf   : > { %3830 = vrot.lane.b32.xlu2 %v8373_v54, %s6284_s24 }
 0x2d0   : > { %3579 = vrot.lane.b32.xlu1 %v8574_v35, %s6283_s21 }
 0x2d1   : > { %v3115_v9 = vpop.permute.xlu2 %3114  ;;  %v3113_v62 = vpop.permute.xlu0 %3112 }
 0x2d2   : > { %v8637_v55 = vpop.permute.xlu1 %3104  ;;  %v3146_v52 = vsel %vm495_vm0, %v3109_v3, %v3113_v62 }
 0x2d3   : > { %v3148_v21 = vsel %vm495_vm0, %v8637_v55, %v3109_v3  ;;  %v3154_v41 = vmul.f32 %v3146_v52, %v10684_v0 }
 0x2d4   : > { %v3153_v23 = vmul.f32 %v3148_v21, %v10683_v22 }
 0x2d5   : > { %3832 = vrot.lane.b32.xlu0 %v8317_v36, %s6284_s24 }
 0x2d7   : > { %3581 = vrot.lane.b32.xlu2 %v8562_v20, %s6283_s21 }
 0x2d8   : > { %3571 = vrot.lane.b32.xlu1 %v8531_v37, %s6283_s21 }
 0x2d9   : > { %v8645_v6 = vpop.permute.xlu2 %3052  ;;  %v8649_v7 = vpop.permute.xlu0 %3044 }
 0x2da   : > { %v8647_v38 = vpop.permute.xlu1 %3116 }
 0x2db   : > { %v3144_v8 = vsel %vm495_vm0, %v3113_v62, %v8647_v38  ;;  %v10687_v62 = vld [vmem:[#allocation5_spill] sm:$0xff] }
 0x2dc   : > { %v3155_v57 = vmul.f32 %v3144_v8, %v10685_v58 }
 0x2dd   : > { %3577 = vrot.lane.b32.xlu0 %v8591_v51, %s6283_s21 }
 0x2df   : > { %3828 = vrot.lane.b32.xlu2 %v8281_v31, %s6284_s24 }
 0x2e0   : > { %3567 = vrot.lane.b32.xlu1 %v8558_v27, %s6283_s21 }
 0x2e1   : > { %v8657_v32 = vpop.permute.xlu2 %3124  ;;  %v8661_v49 = vpop.permute.xlu0 %3040 }
 0x2e2   : > { %v8659_v18 = vpop.permute.xlu1 %3046 }
 0x2e5   : > { %3846 = vrot.lane.b32.xlu0 %v8536_v19, %s6284_s24 }
 0x2e7   : > { %3826 = vrot.lane.b32.xlu2 %v8415_v5, %s6284_s24 }
 0x2e8   : > { %3838 = vrot.lane.b32.xlu1 %v8503_v48, %s6284_s24 }
 0x2e9   : > { %v3121_v42 = vpop.permute.xlu2 %3120  ;;  %v8694_v16 = vpop.permute.xlu0 %3128 }
 0x2ea   : > { %v3111_v53 = vpop.permute.xlu1 %3110 }
 0x2eb   : > { %v3147_v33 = vsel %vm495_vm0, %v3111_v53, %v3115_v9  ;;  %v3149_v60 = vsel %vm495_vm0, %v8629_v2, %v3111_v53 }
 0x2ec   : > { %v3161_v47 = vmul.f32 %v3149_v60, %v10683_v22  ;;  %v3162_v45 = vmul.f32 %v3147_v33, %v10684_v0  ;;  %v3083_v33 = vsel %vm410_vm2, %v8661_v49, %v8649_v7  ;;  %v10688_v60 = vld [vmem:[#allocation11_spill] sm:$0xff]  ;;  %v3082_v22 = vsel %vm410_vm2, %v8611_v43, %v8627_v56  ;;  %v10689_v0 = vld [vmem:[#allocation13_spill] sm:$0xff] }
 0x2ed   : > { %3854 = vrot.lane.b32.xlu0 %v8562_v20, %s6284_s24 }
 0x2ee   : > { %3214 = vmatpush.msra.mxu1 %v3161_v47  ;;  %3237 = vmatpush.msra.mxu2 %v3162_v45  ;;  %v3095_v45 = vmul.f32 %v3083_v33, %v10689_v0  ;;  %v10692_v33 = vld [vmem:[#allocation7_spill] sm:$0xff] }
 0x2ef   : > { %3852 = vrot.lane.b32.xlu2 %v8574_v35, %s6284_s24 }
 0x2f0   : > { %3836 = vrot.lane.b32.xlu1 %v8389_v50, %s6284_s24  ;;  %3215 = vmatpush.msra.mxu1 %v3153_v23  ;;  %v3087_v23 = vmul.f32 %v3082_v22, %v10689_v0  ;;  %v8873_v22 = vld [vmem:[%s10333_s5 + $0x8] sm:$0xff] }
 0x2f1   : > { %3238 = vmatpush.msra.mxu2 %v3154_v41  ;;  %v8696_v12 = vpop.permute.xlu2 %3132  ;;  %5805 = vmatmul.msk.f32.vlgmr.msra.gmra.mxu1 %vm550_vm1, %v8685_v13 }
 0x2f2   : > { %v3119_v30 = vpop.permute.xlu1 %3118  ;;  %5807 = vmatmul.msk.f32.vlgmr.msra.gmra.mxu2 %vm550_vm1, %v8685_v13  ;;  %v3150_v24 = vsel %vm495_vm0, %v8696_v12, %v8637_v55 }
 0x2f3   : > { %v3145_v4 = vsel %vm495_vm0, %v3115_v9, %v3119_v30  ;;  %v3140_v9 = vsel %vm495_vm0, %v3121_v42, %v8657_v32  ;;  %v3152_v55 = vmul.f32 %v3150_v24, %v10687_v62 }
 0x2f4   : > { %v3163_v34 = vmul.f32 %v3145_v4, %v10685_v58  ;;  %v3157_v47 = vmul.f32 %v3140_v9, %v10686_v39  ;;  %v10690_v4 = vld [vmem:[#allocation18_spill] sm:$0xff] }
 0x2f5   : > { %3848 = vrot.lane.b32.xlu0 %v8466_v29, %s6284_s24 }
 0x2f6   : > { %3260 = vmatpush.msra.mxu3 %v3163_v34 }
 0x2f7   : > { %3844 = vrot.lane.b32.xlu2 %v8531_v37, %s6284_s24  ;;  %v3127_v59 = vpop.permute.xlu0 %3126 }
 0x2f8   : > { %3824 = vrot.lane.b32.xlu1 %v8332_v1, %s6284_s24  ;;  %3261 = vmatpush.msra.mxu3 %v3155_v57 }
 0x2f9   : > { %v8720_v14 = vpop.permute.xlu2 %3056  ;;  %5806 = vmatmul.msk.f32.gmra.mxu1 %vm550_vm1, %v8712_v63  ;;  %5809 = vmatmul.msk.f32.vlgmr.msra.gmra.mxu3 %vm550_vm1, %v8685_v13 }
 0x2fa   : > { %v8722_v25 = vpop.permute.xlu1 %3048  ;;  %5808 = vmatmul.msk.f32.gmra.mxu2 %vm550_vm1, %v8712_v63 }
 0x2fd   : > { %4316 = vrot.lane.b32.xlu0 %v8479_v46, %s6285_s16 }
 0x2ff   : > { %3840 = vrot.lane.b32.xlu2 %v8558_v27, %s6284_s24  ;;  %v3135_v44 = vpop.permute.xlu0 %3134 }
 0x300   : > { %3842 = vrot.lane.b32.xlu1 %v8560_v40, %s6284_s24  ;;  %v3151_v15 = vsel %vm495_vm0, %v3135_v44, %v8629_v2  ;;  %v3142_v2 = vsel %vm495_vm0, %v8647_v38, %v3121_v42 }
 0x301   : > { %v8736_v10 = vpop.permute.xlu2 %3561  ;;  %5810 = vmatmul.msk.f32.gmra.mxu3 %vm550_vm1, %v8712_v63  ;;  %v3160_v53 = vmul.f32 %v3151_v15, %v10687_v62  ;;  %v3156_v38 = vmul.f32 %v3142_v2, %v10688_v60  ;;  %v10691_v62 = vld [vmem:[#allocation8_spill] sm:$0xff]  ;;  %v3079_v2 = vsel %vm410_vm2, %v8722_v25, %v8645_v6 }
 0x302   : > { %v3123_v26 = vpop.permute.xlu1 %3122 }
 0x303   : > { %v3141_v28 = vsel %vm495_vm0, %v3123_v26, %v3127_v59  ;;  %v3143_v17 = vsel %vm495_vm0, %v3119_v30, %v3123_v26  ;;  %3191 = vmatpush.msra.mxu0 %v3160_v53  ;;  %v8814_v26 = vld [vmem:[%s10333_s5] sm:$0xff] }
 0x304   : > { %v3165_v3 = vmul.f32 %v3141_v28, %v10686_v39  ;;  %v3164_v21 = vmul.f32 %v3143_v17, %v10688_v60 }
 0x305   : > { %4314 = vrot.lane.b32.xlu0 %v8317_v36, %s6285_s16  ;;  %3192 = vmatpush.msra.mxu0 %v3152_v55 }
 0x306   : > { %3306 = vmatpush.msrb.mxu1 %v3165_v3  ;;  %5803 = vmatmul.msk.f32.vlgmr.msra.gmra.mxu0 %vm550_vm1, %v8685_v13  ;;  %v3138_v3 = vsel %vm495_vm0, %v8657_v32, %v8694_v16  ;;  %v3081_v32 = vsel %vm410_vm2, %v8649_v7, %v8722_v25  ;;  %v3078_v7 = vsel %vm410_vm2, %v8659_v18, %v8619_v11  ;;  %v10693_v25 = vld [vmem:[#allocation9_spill] sm:$0xff] }
 0x307   : > { %4324 = vrot.lane.b32.xlu2 %v8560_v40, %s6285_s16  ;;  %3283 = vmatpush.msrb.mxu0 %v3164_v21  ;;  %v8781_v41 = vpop.permute.xlu0 %3066  ;;  %v3158_v21 = vmul.f32 %v3138_v3, %v10691_v62  ;;  %v3096_v55 = vmul.f32 %v3081_v32, %v10693_v25  ;;  %v10697_v32 = vld [vmem:[#allocation14_spill] sm:$0xff] }
 0x308   : > { %3850 = vrot.lane.b32.xlu1 %v8591_v51, %s6284_s24  ;;  %3307 = vmatpush.msrb.mxu1 %v3157_v47  ;;  %v10694_v47 = vld [vmem:[#allocation10_spill] sm:$0xff] }
 0x309   : > { %v8778_v42 = vpop.permute.xlu2 %3559  ;;  %3284 = vmatpush.msrb.mxu0 %v3156_v38  ;;  %5813 = vmatmul.msk.f32.vlgmr.msrb.gmra.mxu1 %vm550_vm1, %v8685_v13  ;;  %v3097_v0 = vmul.f32 %v3079_v2, %v10694_v47  ;;  %v10698_v2 = vld [vmem:[#allocation15_spill] sm:$0xff] }
 0x30a   : > { %v3061_v52 = vpop.permute.xlu1 %3060  ;;  %3404 = vmatpush.msra.mxu1 %v3095_v45 }
 0x30b   : > { %v3075_v30 = vsel %vm410_vm2, %v8720_v14, %v3061_v52 }
 0x30c   : > { %v3099_v8 = vmul.f32 %v3075_v30, %v10690_v4  ;;  %3405 = vmatpush.msra.mxu1 %v3087_v23  ;;  %v3089_v30 = vmul.f32 %v3078_v7, %v10694_v47 }
 0x30d   : > { %4308 = vrot.lane.b32.xlu0 %v8415_v5, %s6285_s16 }
 0x30e   : > { %3496 = vmatpush.msrb.mxu1 %v3099_v8  ;;  %5804 = vmatmul.msk.f32.gmra.mxu0 %vm550_vm1, %v8712_v63 }
 0x30f   : > { %4322 = vrot.lane.b32.xlu2 %v8558_v27, %s6285_s16  ;;  %v3059_v57 = vpop.permute.xlu0 %3058 }
 0x310   : > { %4320 = vrot.lane.b32.xlu1 %v8503_v48, %s6285_s16 }
 0x311   : > { %v8797_v58 = vpop.permute.xlu2 %3573  ;;  %5814 = vmatmul.msk.f32.gmra.mxu1 %vm550_vm1, %v8712_v63 }
 0x312   : > { %v8799_v34 = vpop.permute.xlu1 %3062 }
 0x315   : > { %4310 = vrot.lane.b32.xlu0 %v8281_v31, %s6285_s16 }
 0x316   : > { %5811 = vmatmul.msk.f32.vlgmr.msrb.gmra.mxu0 %vm550_vm1, %v8685_v13 }
 0x317   : > { %4306 = vrot.lane.b32.xlu2 %v8332_v1, %s6285_s16  ;;  %v8818_v24 = vpop.permute.xlu0 %3054 }
 0x318   : > { %4318 = vrot.lane.b32.xlu1 %v8389_v50, %s6285_s16  ;;  %v3074_v9 = vsel %vm410_vm2, %v8818_v24, %v3059_v57 }
 0x319   : > { %v8816_v28 = vpop.permute.xlu2 %3064  ;;  %5821 = vmatmul.msk.f32.vlgmr.msra.gmra.mxu1 %vm550_vm1, %v8814_v26 }
 0x31a   : > { %v3131_v17 = vpop.permute.xlu1 %3130 }
 0x31b   : > { %v3137_v15 = vsel %vm495_vm0, %v3131_v17, %v3135_v44  ;;  %v3139_v39 = vsel %vm495_vm0, %v3127_v59, %v3131_v17  ;;  %v3136_v59 = vsel %vm495_vm0, %v8694_v16, %v8696_v12  ;;  %v3091_v44 = vmul.f32 %v3074_v9, %v10690_v4  ;;  %v10695_v4 = vld [vmem:[#allocation16_spill] sm:$0xff]  ;;  %v10696_v9 = vld [vmem:[#allocation21_spill] sm:$0xff] }
 0x31c   : > { %v3166_v53 = vmul.f32 %v3139_v39, %v10691_v62  ;;  %v3167_v60 = vmul.f32 %v3137_v15, %v10692_v33  ;;  %v3080_v16 = vsel %vm410_vm2, %v8627_v56, %v8659_v18  ;;  %v3159_v12 = vmul.f32 %v3136_v59, %v10692_v33 }
 0x31d   : > { %3497 = vmatpush.msrb.mxu1 %v3091_v44  ;;  %4330 = vrot.lane.b32.xlu0 %v8466_v29, %s6285_s16  ;;  %v3073_v56 = vsel %vm410_vm2, %v3061_v52, %v8816_v28  ;;  %v3088_v38 = vmul.f32 %v3080_v16, %v10693_v25  ;;  %v3072_v52 = vsel %vm410_vm2, %v3059_v57, %v8799_v34 }
 0x31e   : > { %3329 = vmatpush.msrb.mxu2 %v3166_v53  ;;  %3352 = vmatpush.msrb.mxu3 %v3167_v60  ;;  %v3100_v8 = vmul.f32 %v3073_v56, %v10695_v4  ;;  %v3092_v57 = vmul.f32 %v3072_v52, %v10695_v4  ;;  %v10701_v52 = vld [vmem:[#allocation23_spill] sm:$0xff] }
 0x31f   : > { %4328 = vrot.lane.b32.xlu2 %v8536_v19, %s6285_s16  ;;  %v8886_v23 = vpop.permute.xlu0 %3565  ;;  %5812 = vmatmul.msk.f32.gmra.mxu0 %vm550_vm1, %v8712_v63 }
 0x320   : > { %4312 = vrot.lane.b32.xlu1 %v8373_v54, %s6285_s16  ;;  %3330 = vmatpush.msrb.mxu2 %v3158_v21 }
 0x321   : > { %3353 = vmatpush.msrb.mxu3 %v3159_v12  ;;  %5815 = vmatmul.msk.f32.vlgmr.msrb.gmra.mxu2 %vm550_vm1, %v8685_v13  ;;  %v8878_v18 = vpop.permute.xlu2 %3575  ;;  %v3070_v12 = vsel %vm410_vm2, %v8799_v34, %v8781_v41  ;;  %v10700_v34 = vld [vmem:[#allocation19_spill] sm:$0xff] }
 0x322   : > { %v8880_v45 = vpop.permute.xlu1 %3557  ;;  %5817 = vmatmul.msk.f32.vlgmr.msrb.gmra.mxu3 %vm550_vm1, %v8685_v13  ;;  %3427 = vmatpush.msra.mxu2 %v3096_v55  ;;  %v3093_v25 = vmul.f32 %v3070_v12, %v10698_v2 }
 0x323   : > { %3450 = vmatpush.msra.mxu3 %v3097_v0  ;;  %5822 = vmatmul.msk.f32.gmra.mxu1 %vm550_vm1, %v8873_v22  ;;  %v3594_v39 = vsel %vm963_vm3, %v8880_v45, %v8736_v10 }
 0x324   : > { %3428 = vmatpush.msra.mxu2 %v3088_v38  ;;  %v3609_v62 = vmul.f32 %v3594_v39, %v10696_v9 }
 0x325   : > { %3451 = vmatpush.msra.mxu3 %v3089_v30  ;;  %4326 = vrot.lane.b32.xlu0 %v8531_v37, %s6285_s16 }
 0x326   : > { %3519 = vmatpush.msrb.mxu2 %v3100_v8  ;;  %v10702_v8 = vld [vmem:[#allocation20_spill] sm:$0xff] }
 0x327   : > { %4593 = vrot.lane.b32.xlu2 %v8503_v48, %s6286_s28  ;;  %v8907_v15 = vpop.permute.xlu0 %3563 }
 0x328   : > { %3520 = vmatpush.msrb.mxu2 %v3092_v57  ;;  %4334 = vrot.lane.b32.xlu1 %v8574_v35, %s6285_s16 }
 0x329   : > { %5816 = vmatmul.msk.f32.gmra.mxu2 %vm550_vm1, %v8712_v63  ;;  %v8905_v13 = vpop.permute.xlu2 %3830 }
 0x32a   : > { %v3556_v17 = vpop.permute.xlu1 %3555  ;;  %5818 = vmatmul.msk.f32.gmra.mxu3 %vm550_vm1, %v8712_v63  ;;  %v3084_v63 = vsel %vm410_vm2, %v8781_v41, %v8611_v43  ;;  %v3076_v41 = vsel %vm410_vm2, %v8619_v11, %v8818_v24 }
 0x32b   : > { %5829 = vmatmul.msk.f32.vlgmr.msrb.gmra.mxu1 %vm550_vm1, %v8814_v26  ;;  %v3593_v3 = vsel %vm963_vm3, %v3556_v17, %v8778_v42  ;;  %v3086_v7 = vmul.f32 %v3084_v63, %v10697_v32 }
 0x32c   : > { %v3601_v33 = vmul.f32 %v3593_v3, %v10696_v9 }
 0x32d   : > { %4597 = vrot.lane.b32.xlu0 %v8560_v40, %s6286_s28 }
 0x32f   : > { %4336 = vrot.lane.b32.xlu2 %v8562_v20, %s6285_s16  ;;  %v3552_v44 = vpop.permute.xlu0 %3551 }
 0x330   : > { %4589 = vrot.lane.b32.xlu1 %v8479_v46, %s6286_s28  ;;  %v3595_v4 = vsel %vm963_vm3, %v3552_v44, %v3556_v17  ;;  %v9011_v17 = vld [vmem:[%s10333_s5 + $0x20] sm:$0xff] }
 0x331   : > { %5823 = vmatmul.msk.f32.vlgmr.msra.gmra.mxu2 %vm550_vm1, %v8814_v26  ;;  %v8933_v53 = vpop.permute.xlu2 %3581 }
 0x332   : > { %v3069_v59 = vpop.permute.xlu1 %3068  ;;  %5825 = vmatmul.msk.f32.vlgmr.msra.gmra.mxu3 %vm550_vm1, %v8814_v26  ;;  %3684 = vmatpush.msra.mxu2 %v3609_v62  ;;  %v10703_v62 = vld [vmem:[#allocation26_spill] sm:$0xff] }
 0x333   : > { %v3071_v60 = vsel %vm410_vm2, %v8816_v28, %v3069_v59  ;;  %v3085_v43 = vsel %vm410_vm2, %v3069_v59, %v8661_v49  ;;  %5830 = vmatmul.msk.f32.gmra.mxu1 %vm550_vm1, %v8873_v22  ;;  %v3077_v49 = vsel %vm410_vm2, %v8645_v6, %v8720_v14  ;;  %v3592_v28 = vsel %vm963_vm3, %v8736_v10, %v8886_v23  ;;  %v10699_v14 = vld [vmem:[#allocation17_spill] sm:$0xff] }
 0x334   : > { %v3094_v21 = vmul.f32 %v3085_v43, %v10697_v32  ;;  %v3101_v16 = vmul.f32 %v3071_v60, %v10698_v2  ;;  %3685 = vmatpush.msra.mxu2 %v3601_v33  ;;  %v3591_v6 = vsel %vm963_vm3, %v8778_v42, %v8907_v15  ;;  %v3098_v10 = vmul.f32 %v3077_v49, %v10699_v14  ;;  %v10704_v32 = vld [vmem:[#allocation25_spill] sm:$0xff] }
 0x335   : > { %4595 = vrot.lane.b32.xlu0 %v8558_v27, %s6286_s28  ;;  %v3610_v55 = vmul.f32 %v3592_v28, %v10700_v34  ;;  %v3090_v0 = vmul.f32 %v3076_v41, %v10699_v14  ;;  %v3602_v38 = vmul.f32 %v3591_v6, %v10700_v34  ;;  %v10705_v34 = vld [vmem:[#allocation22_spill] sm:$0xff] }
 0x336   : > { %3381 = vmatpush.msra.mxu0 %v3094_v21  ;;  %3542 = vmatpush.msrb.mxu3 %v3101_v16 }
 0x337   : > { %4591 = vrot.lane.b32.xlu2 %v8389_v50, %s6286_s28  ;;  %v3570_v56 = vpop.permute.xlu0 %3569 }
 0x338   : > { %3382 = vmatpush.msra.mxu0 %v3086_v7  ;;  %4332 = vrot.lane.b32.xlu1 %v8591_v51, %s6285_s16  ;;  %v3588_v39 = vsel %vm963_vm3, %v3570_v56, %v8797_v58  ;;  %v3590_v43 = vsel %vm963_vm3, %v8886_v23, %v3570_v56 }
 0x339   : > { %3543 = vmatpush.msrb.mxu3 %v3093_v25  ;;  %5819 = vmatmul.msk.f32.vlgmr.msra.gmra.mxu0 %vm550_vm1, %v8814_v26  ;;  %v8980_v11 = vpop.permute.xlu2 %3828  ;;  %v3612_v63 = vmul.f32 %v3588_v39, %v10703_v62  ;;  %v3611_v21 = vmul.f32 %v3590_v43, %v10704_v32  ;;  %v10710_v43 = vld [vmem:[#allocation30_spill] sm:$0xff] }
 0x33a   : > { %v3554_v24 = vpop.permute.xlu1 %3553  ;;  %5824 = vmatmul.msk.f32.gmra.mxu2 %vm550_vm1, %v8873_v22  ;;  %5826 = vmatmul.msk.f32.gmra.mxu3 %vm550_vm1, %v8873_v22 }
 0x33b   : > { %v3596_v42 = vsel %vm963_vm3, %v3554_v24, %v8880_v45  ;;  %v3598_v47 = vsel %vm963_vm3, %v8933_v53, %v3554_v24  ;;  %3473 = vmatpush.msrb.mxu0 %v3098_v10  ;;  %3707 = vmatpush.msra.mxu3 %v3610_v55  ;;  %v3600_v45 = vmul.f32 %v3595_v4, %v10702_v8 }
 0x33c   : > { %v3607_v30 = vmul.f32 %v3598_v47, %v10701_v52  ;;  %v3608_v57 = vmul.f32 %v3596_v42, %v10702_v8 }
 0x33d   : > { %3474 = vmatpush.msrb.mxu0 %v3090_v0  ;;  %3708 = vmatpush.msra.mxu3 %v3602_v38 }
 0x33e   : > { %3661 = vmatpush.msra.mxu1 %v3608_v57  ;;  %4579 = vrot.lane.b32.xlu0 %v8332_v1, %s6286_s28 }
 0x33f   : > { %3638 = vmatpush.msra.mxu0 %v3607_v30  ;;  %4585 = vrot.lane.b32.xlu2 %v8373_v54, %s6286_s28  ;;  %v9018_v59 = vpop.permute.xlu0 %3834 }
 0x340   : > { %4587 = vrot.lane.b32.xlu1 %v8317_v36, %s6286_s28  ;;  %3662 = vmatpush.msra.mxu1 %v3600_v45  ;;  %v3867_v10 = vsel %vm1256_vm4, %v8905_v13, %v9018_v59  ;;  %v10709_v45 = vld [vmem:[#allocation27_spill] sm:$0xff] }
 0x341   : > { %5820 = vmatmul.msk.f32.gmra.mxu0 %vm550_vm1, %v8873_v22  ;;  %v9015_v3 = vpop.permute.xlu2 %3826  ;;  %5839 = vmatmul.msk.f32.vlgmr.msra.gmra.mxu1 %vm550_vm1, %v9011_v17 }
 0x342   : > { %v3580_v9 = vpop.permute.xlu1 %3579  ;;  %5831 = vmatmul.msk.f32.vlgmr.msrb.gmra.mxu2 %vm550_vm1, %v8814_v26  ;;  %5833 = vmatmul.msk.f32.vlgmr.msrb.gmra.mxu3 %vm550_vm1, %v8814_v26 }
 0x343   : > { %v3597_v33 = vsel %vm963_vm3, %v3580_v9, %v3552_v44  ;;  %3753 = vmatpush.msrb.mxu1 %v3612_v63  ;;  %v9041_v44 = vld [vmem:[%s10333_s5 + $0x28] sm:$0xff] }
 0x344   : > { %v3599_v60 = vmul.f32 %v3597_v33, %v10701_v52 }
 0x346   : > { %3639 = vmatpush.msra.mxu0 %v3599_v60  ;;  %4609 = vrot.lane.b32.xlu0 %v8562_v20, %s6286_s28 }
 0x347   : > { %4605 = vrot.lane.b32.xlu2 %v8591_v51, %s6286_s28  ;;  %v3833_v16 = vpop.permute.xlu0 %3832 }
 0x348   : > { %4581 = vrot.lane.b32.xlu1 %v8415_v5, %s6286_s28  ;;  %v3866_v56 = vsel %vm1256_vm4, %v8980_v11, %v3833_v16 }
 0x349   : > { %5827 = vmatmul.msk.f32.vlgmr.msrb.gmra.mxu0 %vm550_vm1, %v8814_v26  ;;  %v9046_v23 = vpop.permute.xlu2 %3852  ;;  %5840 = vmatmul.msk.f32.gmra.mxu1 %vm550_vm1, %v9041_v44 }
 0x34a   : > { %v3572_v2 = vpop.permute.xlu1 %3571  ;;  %5832 = vmatmul.msk.f32.gmra.mxu2 %vm550_vm1, %v8873_v22  ;;  %5834 = vmatmul.msk.f32.gmra.mxu3 %vm550_vm1, %v8873_v22 }
 0x34b   : > { %3730 = vmatpush.msrb.mxu0 %v3611_v21  ;;  %v3585_v49 = vsel %vm963_vm3, %v3572_v2, %v8878_v18 }
 0x34c   : > { %v3605_v42 = vmul.f32 %v3585_v49, %v10705_v34 }
 0x34e   : > { %4601 = vrot.lane.b32.xlu0 %v8536_v19, %s6286_s28 }
 0x34f   : > { %4607 = vrot.lane.b32.xlu2 %v8574_v35, %s6286_s28  ;;  %v3578_v7 = vpop.permute.xlu0 %3577 }
 0x350   : > { %4583 = vrot.lane.b32.xlu1 %v8281_v31, %s6286_s28  ;;  %v3584_v25 = vsel %vm963_vm3, %v3578_v7, %v8933_v53  ;;  %v3586_v41 = vsel %vm963_vm3, %v8797_v58, %v3578_v7  ;;  %v10706_v53 = vld [vmem:[#allocation24_spill] sm:$0xff]  ;;  %v3869_v58 = vsel %vm1256_vm4, %v9015_v3, %v8905_v13  ;;  %v10708_v13 = vld [vmem:[#allocation31_spill] sm:$0xff] }
 0x351   : > { %5828 = vmatmul.msk.f32.gmra.mxu0 %vm550_vm1, %v8873_v22  ;;  %v9062_v26 = vpop.permute.xlu2 %3844  ;;  %v3613_v55 = vmul.f32 %v3586_v41, %v10705_v34  ;;  %v3614_v24 = vmul.f32 %v3584_v25, %v10706_v53  ;;  %v3881_v38 = vmul.f32 %v3869_v58, %v10708_v13  ;;  %v10712_v34 = vld [vmem:[#allocation33_spill] sm:$0xff] }
 0x352   : > { %v3568_v12 = vpop.permute.xlu1 %3567  ;;  %5841 = vmatmul.msk.f32.vlgmr.msra.gmra.mxu2 %vm550_vm1, %v9011_v17  ;;  %5843 = vmatmul.msk.f32.vlgmr.msra.gmra.mxu3 %vm550_vm1, %v9011_v17 }
 0x353   : > { %v3587_v28 = vsel %vm963_vm3, %v3568_v12, %v3572_v2  ;;  %v3589_v22 = vsel %vm963_vm3, %v8907_v15, %v3568_v12  ;;  %v3583_v15 = vsel %vm963_vm3, %v8878_v18, %v3580_v9  ;;  %3776 = vmatpush.msrb.mxu2 %v3613_v55  ;;  %3799 = vmatpush.msrb.mxu3 %v3614_v24  ;;  %v10707_v18 = vld [vmem:[#allocation28_spill] sm:$0xff] }
 0x354   : > { %v3603_v6 = vmul.f32 %v3589_v22, %v10704_v32  ;;  %v3604_v14 = vmul.f32 %v3587_v28, %v10703_v62  ;;  %v3882_v47 = vmul.f32 %v3867_v10, %v10707_v18  ;;  %v3606_v0 = vmul.f32 %v3583_v15, %v10706_v53  ;;  %v9169_v28 = vld [vmem:[%s10333_s5 + $0x30] sm:$0xff]  ;;  %v9204_v53 = vld [vmem:[%s10333_s5 + $0x38] sm:$0xff] }
 0x355   : > { %3777 = vmatpush.msrb.mxu2 %v3605_v42  ;;  %v3874_v52 = vmul.f32 %v3866_v56, %v10707_v18  ;;  %v10711_v10 = vld [vmem:[#allocation32_spill] sm:$0xff] }
 0x356   : > { %3731 = vmatpush.msrb.mxu0 %v3603_v6  ;;  %3754 = vmatpush.msrb.mxu1 %v3604_v14 }
 0x357   : > { %5847 = vmatmul.msk.f32.vlgmr.msrb.gmra.mxu1 %vm550_vm1, %v9011_v17  ;;  %4862 = vrot.lane.b32.xlu2 %v8479_v46, %s6287_s17  ;;  %v9111_v8 = vpop.permute.xlu0 %3846 }
 0x358   : > { %4866 = vrot.lane.b32.xlu0 %v8503_v48, %s6287_s17  ;;  %3800 = vmatpush.msrb.mxu3 %v3606_v0 }
 0x359   : > { %3957 = vmatpush.msra.mxu2 %v3882_v47  ;;  %v3841_v30 = vpop.permute.xlu2 %3840  ;;  %3934 = vmatpush.msra.mxu1 %v3881_v38 }
 0x35a   : > { %v3839_v4 = vpop.permute.xlu1 %3838  ;;  %4603 = vrot.lane.b32.xlu1 %v8466_v29, %s6286_s28  ;;  %5837 = vmatmul.msk.f32.vlgmr.msra.gmra.mxu0 %vm550_vm1, %v9011_v17  ;;  %v3860_v14 = vsel %vm1256_vm4, %v3841_v30, %v9062_v26 }
 0x35b   : > { %v3865_v57 = vsel %vm1256_vm4, %v9018_v59, %v3839_v4  ;;  %3958 = vmatpush.msra.mxu2 %v3874_v52  ;;  %5844 = vmatmul.msk.f32.gmra.mxu3 %vm550_vm1, %v9041_v44  ;;  %v10714_v52 = vld [vmem:[#allocation29_spill] sm:$0xff] }
 0x35c   : > { %v3883_v39 = vmul.f32 %v3865_v57, %v10709_v45  ;;  %5842 = vmatmul.msk.f32.gmra.mxu2 %vm550_vm1, %v9041_v44 }
 0x35e   : > { %3980 = vmatpush.msra.mxu3 %v3883_v39 }
 0x35f   : > { %5848 = vmatmul.msk.f32.gmra.mxu1 %vm550_vm1, %v9041_v44  ;;  %4860 = vrot.lane.b32.xlu2 %v8317_v36, %s6287_s17  ;;  %v3855_v63 = vpop.permute.xlu0 %3854 }
 0x360   : > { %4864 = vrot.lane.b32.xlu0 %v8389_v50, %s6287_s17  ;;  %v3871_v33 = vsel %vm1256_vm4, %v3855_v63, %v9015_v3 }
 0x361   : > { %v9131_v9 = vpop.permute.xlu2 %4324  ;;  %v3880_v32 = vmul.f32 %v3871_v33, %v10710_v43 }
 0x362   : > { %v3837_v62 = vpop.permute.xlu1 %3836  ;;  %4599 = vrot.lane.b32.xlu1 %v8531_v37, %s6286_s28  ;;  %5838 = vmatmul.msk.f32.gmra.mxu0 %vm550_vm1, %v9041_v44 }
 0x363   : > { %v3864_v59 = vsel %vm1256_vm4, %v3833_v16, %v3837_v62  ;;  %5851 = vmatmul.msk.f32.vlgmr.msrb.gmra.mxu3 %vm550_vm1, %v9011_v17  ;;  %3911 = vmatpush.msra.mxu0 %v3880_v32  ;;  %v3862_v22 = vsel %vm1256_vm4, %v3837_v62, %v3841_v30 }
 0x364   : > { %v3875_v60 = vmul.f32 %v3864_v59, %v10709_v45  ;;  %5849 = vmatmul.msk.f32.vlgmr.msrb.gmra.mxu2 %vm550_vm1, %v9011_v17  ;;  %v3876_v24 = vmul.f32 %v3862_v22, %v10711_v10 }
 0x366   : > { %3981 = vmatpush.msra.mxu3 %v3875_v60 }
 0x367   : > { %4854 = vrot.lane.b32.xlu2 %v8415_v5, %s6287_s17  ;;  %v3849_v2 = vpop.permute.xlu0 %3848 }
 0x368   : > { %4858 = vrot.lane.b32.xlu0 %v8373_v54, %s6287_s17  ;;  %v3858_v57 = vsel %vm1256_vm4, %v9062_v26, %v3849_v2 }
 0x369   : > { %v9152_v3 = vpop.permute.xlu2 %4322 }
 0x36a   : > { %v3825_v21 = vpop.permute.xlu1 %3824  ;;  %4870 = vrot.lane.b32.xlu1 %v8560_v40, %s6287_s17  ;;  %5845 = vmatmul.msk.f32.vlgmr.msrb.gmra.mxu0 %vm550_vm1, %v9011_v17 }
 0x36b   : > { %v3868_v16 = vsel %vm1256_vm4, %v3825_v21, %v8980_v11  ;;  %v3870_v12 = vsel %vm1256_vm4, %v9046_v23, %v3825_v21  ;;  %5852 = vmatmul.msk.f32.gmra.mxu3 %vm550_vm1, %v9041_v44 }
 0x36c   : > { %v3872_v7 = vmul.f32 %v3870_v12, %v10710_v43  ;;  %v3873_v49 = vmul.f32 %v3868_v16, %v10708_v13  ;;  %5850 = vmatmul.msk.f32.gmra.mxu2 %vm550_vm1, %v9041_v44  ;;  %v10713_v13 = vld [vmem:[#allocation34_spill] sm:$0xff] }
 0x36e   : > { %3912 = vmatpush.msra.mxu0 %v3872_v7  ;;  %3935 = vmatpush.msra.mxu1 %v3873_v49  ;;  %v9218_v58 = vpop.f32.mrf.mxu1 }
 0x36f   : > { %5857 = vmatmul.msk.f32.vlgmr.msra.gmra.mxu1 %vm550_vm1, %v9169_v28  ;;  %4856 = vrot.lane.b32.xlu2 %v8281_v31, %s6287_s17  ;;  %v9185_v25 = vpop.permute.xlu0 %4316 }
 0x370   : > { %4878 = vrot.lane.b32.xlu0 %v8591_v51, %s6287_s17 }
 0x371   : > { %v9181_v11 = vpop.permute.xlu2 %4306 }
 0x372   : > { %v3843_v17 = vpop.permute.xlu1 %3842  ;;  %4868 = vrot.lane.b32.xlu1 %v8558_v27, %s6287_s17  ;;  %5846 = vmatmul.msk.f32.gmra.mxu0 %vm550_vm1, %v9041_v44  ;;  %v3877_v44 = vmul.f32 %v3860_v14, %v10712_v34 }
 0x373   : > { %v3861_v41 = vsel %vm1256_vm4, %v3843_v17, %v9111_v8  ;;  %v3863_v6 = vsel %vm1256_vm4, %v3839_v4, %v3843_v17  ;;  %5861 = vmatmul.msk.f32.vlgmr.msra.gmra.mxu3 %vm550_vm1, %v9169_v28  ;;  %v3856_v4 = vsel %vm1256_vm4, %v3849_v2, %v9046_v23  ;;  %v10716_v17 = vld [vmem:[#allocation35_spill] sm:$0xff] }
 0x374   : > { %v3884_v15 = vmul.f32 %v3863_v6, %v10711_v10  ;;  %v3885_v55 = vmul.f32 %v3861_v41, %v10712_v34  ;;  %5859 = vmatmul.msk.f32.vlgmr.msra.gmra.mxu2 %vm550_vm1, %v9169_v28  ;;  %v3879_v23 = vmul.f32 %v3856_v4, %v10714_v52  ;;  %v10717_v41 = vld [vmem:[#allocation38_spill] sm:$0xff]  ;;  %v9356_v10 = vld [vmem:[%s10333_s5 + $0x48] sm:$0xff] }
 0x375   : > { %v9310_v43 = vpop.f32.mrf.mxu2 }
 0x376   : > { %4003 = vmatpush.msrb.mxu0 %v3884_v15  ;;  %4026 = vmatpush.msrb.mxu1 %v3885_v55  ;;  %v9268_v62 = vpop.f32.mrf.mxu1 }
 0x377   : > { %5858 = vmatmul.msk.f32.gmra.mxu1 %vm550_vm1, %v9204_v53  ;;  %4876 = vrot.lane.b32.xlu2 %v8466_v29, %s6287_s17  ;;  %v9223_v18 = vpop.permute.xlu0 %4314 }
 0x378   : > { %4004 = vmatpush.msrb.mxu0 %v3876_v24  ;;  %4880 = vrot.lane.b32.xlu0 %v8574_v35, %s6287_s17 }
 0x379   : > { %4027 = vmatpush.msrb.mxu1 %v3877_v44  ;;  %v9221_v56 = vpop.permute.xlu2 %4328 }
 0x37a   : > { %v3851_v42 = vpop.permute.xlu1 %3850  ;;  %4852 = vrot.lane.b32.xlu1 %v8332_v1, %s6287_s17  ;;  %5855 = vmatmul.msk.f32.vlgmr.msra.gmra.mxu0 %vm550_vm1, %v9169_v28 }
 0x37b   : > { %4143 = vmatpush.msra.mxu1 %v8373_v54  ;;  %v3857_v47 = vsel %vm1256_vm4, %v3851_v42, %v3855_v63  ;;  %v3859_v0 = vsel %vm1256_vm4, %v9111_v8, %v3851_v42  ;;  %5862 = vmatmul.msk.f32.gmra.mxu3 %vm550_vm1, %v9204_v53  ;;  %v3878_v8 = vmul.f32 %v3858_v57, %v10713_v13 }
 0x37c   : > { %v3886_v38 = vmul.f32 %v3859_v0, %v10713_v13  ;;  %v3887_v30 = vmul.f32 %v3857_v47, %v10714_v52  ;;  %5860 = vmatmul.msk.f32.gmra.mxu2 %vm550_vm1, %v9204_v53  ;;  %4120 = vmatpush.msra.mxu0 %v8415_v5  ;;  %v10718_v47 = vld [vmem:[#allocation37_spill] sm:$0xff] }
 0x37d   : > { %4144 = vmatpush.msra.mxu1 %v8281_v31  ;;  %v9374_v44 = vpop.f32.mrf.mxu2 }
 0x37e   : > { %4049 = vmatpush.msrb.mxu2 %v3886_v38  ;;  %4072 = vmatpush.msrb.mxu3 %v3887_v30 }
 0x37f   : > { %5865 = vmatmul.msk.f32.vlgmr.msrb.gmra.mxu1 %vm550_vm1, %v9169_v28  ;;  %4121 = vmatpush.msra.mxu0 %v8332_v1  ;;  %v9260_v39 = vpop.permute.xlu0 %4308 }
 0x380   : > { %4235 = vmatpush.msrb.mxu1 %v8536_v19  ;;  %5135 = vrot.lane.b32.xlu0 %v8479_v46, %s6288_s23 }
 0x381   : > { %4872 = vrot.lane.b32.xlu2 %v8531_v37, %s6287_s17  ;;  %4050 = vmatpush.msrb.mxu2 %v3878_v8  ;;  %v9258_v26 = vpop.permute.xlu2 %4593  ;;  %v10719_v8 = vld [vmem:[#allocation39_spill] sm:$0xff] }
 0x382   : > { %4073 = vmatpush.msrb.mxu3 %v3879_v23  ;;  %v4321_v45 = vpop.permute.xlu1 %4320  ;;  %4882 = vrot.lane.b32.xlu1 %v8562_v20, %s6287_s17 }
 0x383   : > { %4166 = vmatpush.msra.mxu2 %v8479_v46  ;;  %5856 = vmatmul.msk.f32.gmra.mxu0 %vm550_vm1, %v9204_v53  ;;  %v9302_v33 = vpop.f32.mrf.mxu0  ;;  %v4345_v32 = vsel %vm1758_vm5, %v4321_v45, %v9131_v9  ;;  %v4347_v21 = vsel %vm1758_vm5, %v9185_v25, %v4321_v45 }
 0x384   : > { %4189 = vmatpush.msra.mxu3 %v8503_v48  ;;  %5867 = vmatmul.msk.f32.vlgmr.msrb.gmra.mxu2 %vm550_vm1, %v9169_v28  ;;  %v4365_v22 = vmul.f32 %v4345_v32, %v10716_v17  ;;  %v10720_v32 = vld [vmem:[#allocation43_spill] sm:$0xff] }
 0x385   : > { %5869 = vmatmul.msk.f32.vlgmr.msrb.gmra.mxu3 %vm550_vm1, %v9169_v28  ;;  %4236 = vmatpush.msrb.mxu1 %v8531_v37 }
 0x386   : > { %4167 = vmatpush.msra.mxu2 %v8317_v36  ;;  %4190 = vmatpush.msra.mxu3 %v8389_v50  ;;  %v9305_v60 = vpop.f32.mrf.mxu1 }
 0x387   : > { %5866 = vmatmul.msk.f32.gmra.mxu1 %vm550_vm1, %v9204_v53  ;;  %v4311_v59 = vpop.permute.xlu0 %4310 }
 0x388   : > { %4258 = vmatpush.msrb.mxu2 %v8591_v51  ;;  %4281 = vmatpush.msrb.mxu3 %v8562_v20  ;;  %v4348_v14 = vsel %vm1758_vm5, %v4311_v59, %v9223_v18  ;;  %v4350_v42 = vsel %vm1758_vm5, %v9181_v11, %v4311_v59 }
 0x389   : > { %5133 = vrot.lane.b32.xlu0 %v8317_v36, %s6288_s23  ;;  %5143 = vrot.lane.b32.xlu2 %v8560_v40, %s6288_s23  ;;  %v9287_v46 = vpop.permute.xlu2 %4336  ;;  %v9300_v36 = vld [vmem:[%s10333_s5 + $0x40] sm:$0xff]  ;;  %v4355_v34 = vmul.f32 %v4348_v14, %v10717_v41  ;;  %v4354_v13 = vmul.f32 %v4350_v42, %v10718_v47 }
 0x38a   : > { %4259 = vmatpush.msrb.mxu2 %v8466_v29  ;;  %4282 = vmatpush.msrb.mxu3 %v8574_v35  ;;  %v4319_v63 = vpop.permute.xlu1 %4318 }
 0x38b   : > { %4874 = vrot.lane.b32.xlu1 %v8536_v19, %s6287_s17  ;;  %5863 = vmatmul.msk.f32.vlgmr.msrb.gmra.mxu0 %vm550_vm1, %v9169_v28  ;;  %v4344_v7 = vsel %vm1758_vm5, %v4319_v63, %v9152_v3  ;;  %v4346_v49 = vsel %vm1758_vm5, %v9223_v18, %v4319_v63  ;;  %v9358_v15 = vpop.f32.mrf.mxu0 }
 0x38c   : > { %5868 = vmatmul.msk.f32.gmra.mxu2 %vm550_vm1, %v9204_v53  ;;  %4212 = vmatpush.msrb.mxu0 %v8560_v40  ;;  %v9320_v40 = vpop.f32.mrf.mxu3 }
 0x38d   : > { %5870 = vmatmul.msk.f32.gmra.mxu3 %vm550_vm1, %v9204_v53 }
 0x38e   : > { %4213 = vmatpush.msrb.mxu0 %v8558_v27  ;;  %v9361_v55 = vpop.f32.mrf.mxu1 }
 0x38f   : > { %5875 = vmatmul.msk.f32.vlgmr.msra.gmra.mxu1 %vm550_vm1, %v9300_v36  ;;  %v9326_v12 = vpop.permute.xlu0 %4330 }
 0x391   : > { %5127 = vrot.lane.b32.xlu0 %v8415_v5, %s6288_s23  ;;  %5141 = vrot.lane.b32.xlu2 %v8558_v27, %s6288_s23  ;;  %v9324_v2 = vpop.permute.xlu2 %4591  ;;  %v10715_v27 = vld [vmem:[#allocation36_spill] sm:$0xff] }
 0x392   : > { %v4313_v16 = vpop.permute.xlu1 %4312  ;;  %v4364_v28 = vmul.f32 %v4347_v21, %v10715_v27 }
 0x393   : > { %5139 = vrot.lane.b32.xlu1 %v8503_v48, %s6288_s23  ;;  %v4349_v5 = vsel %vm1758_vm5, %v4313_v16, %v9185_v25  ;;  %5864 = vmatmul.msk.f32.gmra.mxu0 %vm550_vm1, %v9204_v53  ;;  %v4356_v48 = vmul.f32 %v4346_v49, %v10715_v27  ;;  %v4357_v25 = vmul.f32 %v4344_v7, %v10716_v17  ;;  %v9399_v38 = vpop.f32.mrf.mxu0  ;;  %v10721_v7 = vld [vmem:[#allocation44_spill] sm:$0xff]  ;;  %v10722_v49 = vld [vmem:[#allocation41_spill] sm:$0xff] }
 0x394   : > { %v4363_v6 = vmul.f32 %v4349_v5, %v10717_v41  ;;  %5877 = vmatmul.msk.f32.vlgmr.msra.gmra.mxu2 %vm550_vm1, %v9300_v36  ;;  %v4351_v53 = vsel %vm1758_vm5, %v9260_v39, %v4313_v16  ;;  %v9481_v17 = vld [vmem:[%s10333_s5 + $0x50] sm:$0xff]  ;;  %v5399_v41 = vld [vmem:[%s10334_s6 + $0x8] sm:$0xff] }
 0x395   : > { %5879 = vmatmul.msk.f32.vlgmr.msra.gmra.mxu3 %vm550_vm1, %v9300_v36  ;;  %4439 = vmatpush.msra.mxu2 %v4364_v28  ;;  %v4362_v0 = vmul.f32 %v4351_v53, %v10718_v47 }
 0x396   : > { %4462 = vmatpush.msra.mxu3 %v4365_v22  ;;  %4416 = vmatpush.msra.mxu1 %v4363_v6  ;;  %v9401_v52 = vpop.f32.mrf.mxu1 }
 0x397   : > { %4440 = vmatpush.msra.mxu2 %v4356_v48  ;;  %5876 = vmatmul.msk.f32.gmra.mxu1 %vm550_vm1, %v9356_v10 }
 0x398   : > { %4463 = vmatpush.msra.mxu3 %v4357_v25  ;;  %4417 = vmatpush.msra.mxu1 %v4355_v34  ;;  %v10723_v25 = vld [vmem:[#allocation49_spill] sm:$0xff] }
 0x399   : > { %5129 = vrot.lane.b32.xlu0 %v8281_v31, %s6288_s23  ;;  %5125 = vrot.lane.b32.xlu2 %v8332_v1, %s6288_s23  ;;  %v9372_v24 = vpop.permute.xlu2 %4585  ;;  %v4327_v31 = vpop.permute.xlu0 %4326 }
 0x39a   : > { %v4335_v18 = vpop.permute.xlu1 %4334  ;;  %v9384_v1 = vpop.f32.mrf.mxu3  ;;  %v4342_v63 = vsel %vm1758_vm5, %v9152_v3, %v4327_v31  ;;  %v4340_v3 = vsel %vm1758_vm5, %v4327_v31, %v9326_v12 }
 0x39b   : > { %5137 = vrot.lane.b32.xlu1 %v8389_v50, %s6288_s23  ;;  %5873 = vmatmul.msk.f32.vlgmr.msra.gmra.mxu0 %vm550_vm1, %v9300_v36  ;;  %v4353_v50 = vsel %vm1758_vm5, %v9287_v46, %v9260_v39  ;;  %v4352_v57 = vsel %vm1758_vm5, %v4335_v18, %v9181_v11  ;;  %v4338_v21 = vsel %vm1758_vm5, %v9326_v12, %v4335_v18  ;;  %v10724_v18 = vld [vmem:[#allocation42_spill] sm:$0xff] }
 0x39c   : > { %5878 = vmatmul.msk.f32.gmra.mxu2 %vm550_vm1, %v9356_v10  ;;  %4393 = vmatpush.msra.mxu0 %v4362_v0  ;;  %v4369_v23 = vmul.f32 %v4353_v50, %v10719_v8  ;;  %v4361_v45 = vmul.f32 %v4352_v57, %v10719_v8  ;;  %v4360_v22 = vmul.f32 %v4338_v21, %v10722_v49  ;;  %v10725_v0 = vld [vmem:[#allocation45_spill] sm:$0xff] }
 0x39d   : > { %5880 = vmatmul.msk.f32.gmra.mxu3 %vm550_vm1, %v9356_v10  ;;  %v4359_v6 = vmul.f32 %v4340_v3, %v10721_v7 }
 0x39e   : > { %4394 = vmatpush.msra.mxu0 %v4354_v13 }
 0x39f   : > { %5883 = vmatmul.msk.f32.vlgmr.msrb.gmra.mxu1 %vm550_vm1, %v9300_v36 }
 0x3a0   : > { %v9449_v16 = vpop.f32.mrf.mxu1 }
 0x3a1   : > { %5149 = vrot.lane.b32.xlu0 %v8466_v29, %s6288_s23  ;;  %5155 = vrot.lane.b32.xlu2 %v8562_v20, %s6288_s23  ;;  %v9405_v30 = vpop.permute.xlu2 %4605  ;;  %v9407_v4 = vpop.permute.xlu0 %4597 }
 0x3a2   : > { %v4590_v29 = vpop.permute.xlu1 %4589  ;;  %v4618_v14 = vsel %vm2051_vm6, %v9258_v26, %v9407_v4 }
 0x3a3   : > { %5131 = vrot.lane.b32.xlu1 %v8373_v54, %s6288_s23  ;;  %5874 = vmatmul.msk.f32.gmra.mxu0 %vm550_vm1, %v9356_v10  ;;  %v4343_v54 = vsel %vm1758_vm5, %v9131_v9, %v9221_v56  ;;  %v4622_v12 = vsel %vm2051_vm6, %v9372_v24, %v4590_v29  ;;  %v4620_v48 = vsel %vm2051_vm6, %v4590_v29, %v9258_v26 }
 0x3a4   : > { %5885 = vmatmul.msk.f32.vlgmr.msrb.gmra.mxu2 %vm550_vm1, %v9300_v36  ;;  %v9421_v20 = vpop.f32.mrf.mxu2  ;;  %v4636_v34 = vmul.f32 %v4622_v12, %v10723_v25  ;;  %v4638_v47 = vmul.f32 %v4618_v14, %v10724_v18  ;;  %v4637_v13 = vmul.f32 %v4620_v48, %v10725_v0  ;;  %v10727_v12 = vld [vmem:[#allocation46_spill] sm:$0xff] }
 0x3a5   : > { %5887 = vmatmul.msk.f32.vlgmr.msrb.gmra.mxu3 %vm550_vm1, %v9300_v36  ;;  %v9424_v11 = vpop.f32.mrf.mxu3 }
 0x3a6   : > { %4554 = vmatpush.msrb.mxu3 %v4369_v23 }
 0x3a7   : > { %5884 = vmatmul.msk.f32.gmra.mxu1 %vm550_vm1, %v9356_v10 }
 0x3a8   : > { %4555 = vmatpush.msrb.mxu3 %v4361_v45  ;;  %v9521_v8 = vpop.f32.mrf.mxu1 }
 0x3a9   : > { %5145 = vrot.lane.b32.xlu0 %v8531_v37, %s6288_s23  ;;  %5147 = vrot.lane.b32.xlu2 %v8536_v19, %s6288_s23  ;;  %v9436_v39 = vpop.permute.xlu2 %4607  ;;  %v9441_v59 = vpop.permute.xlu0 %4595  ;;  %v4366_v37 = vmul.f32 %v4343_v54, %v10720_v32 }
 0x3aa   : > { %v4333_v9 = vpop.permute.xlu1 %4332  ;;  %v4617_v42 = vsel %vm2051_vm6, %v9324_v2, %v9441_v59 }
 0x3ab   : > { %5151 = vrot.lane.b32.xlu1 %v8591_v51, %s6288_s23  ;;  %5881 = vmatmul.msk.f32.vlgmr.msrb.gmra.mxu0 %vm550_vm1, %v9300_v36  ;;  %v4339_v19 = vsel %vm1758_vm5, %v4333_v9, %v9287_v46  ;;  %v4341_v51 = vsel %vm1758_vm5, %v9221_v56, %v4333_v9  ;;  %v9470_v46 = vpop.f32.mrf.mxu0  ;;  %v4358_v56 = vmul.f32 %v4342_v63, %v10720_v32  ;;  %v10726_v32 = vld [vmem:[#allocation50_spill] sm:$0xff] }
 0x3ac   : > { %5886 = vmatmul.msk.f32.gmra.mxu2 %vm550_vm1, %v9356_v10  ;;  %v4367_v36 = vmul.f32 %v4341_v51, %v10721_v7  ;;  %v4368_v5 = vmul.f32 %v4339_v19, %v10722_v49  ;;  %v9468_v27 = vpop.f32.mrf.mxu2  ;;  %4485 = vmatpush.msrb.mxu0 %v4366_v37  ;;  %v4630_v29 = vmul.f32 %v4617_v42, %v10724_v18 }
 0x3ad   : > { %5888 = vmatmul.msk.f32.gmra.mxu3 %vm550_vm1, %v9356_v10  ;;  %v9476_v28 = vpop.f32.mrf.mxu3 }
 0x3ae   : > { %4508 = vmatpush.msrb.mxu1 %v4367_v36  ;;  %4531 = vmatpush.msrb.mxu2 %v4368_v5 }
 0x3af   : > { %4486 = vmatpush.msrb.mxu0 %v4358_v56  ;;  %5893 = vmatmul.msk.f32.vlgmr.msra.gmra.mxu1 %vm550_vm1, %v9481_v17 }
 0x3b0   : > { %4532 = vmatpush.msrb.mxu2 %v4360_v22  ;;  %4509 = vmatpush.msrb.mxu1 %v4359_v6 }
 0x3b1   : > { %5407 = vperm.xlu2 %6238, %v5399_v41   ;;  %v9498_v53 = vpop.permute.xlu2 %4862  ;;  %v4580_v31 = vpop.permute.xlu0 %4579  ;;  %v10728_v41 = vld [vmem:[#allocation47_spill] sm:$0xff] }
 0x3b2   : > { %4689 = vmatpush.msra.mxu1 %v4636_v34  ;;  %v4588_v26 = vpop.permute.xlu1 %4587 }
 0x3b3   : > { %5153 = vrot.lane.b32.xlu1 %v8574_v35, %s6288_s23  ;;  %5882 = vmatmul.msk.f32.gmra.mxu0 %vm550_vm1, %v9356_v10  ;;  %v4619_v50 = vsel %vm2051_vm6, %v4588_v26, %v9324_v2  ;;  %v9528_v2 = vld [vmem:[%s10333_s5 + $0x58] sm:$0xff] }
 0x3b4   : > { %5895 = vmatmul.msk.f32.vlgmr.msra.gmra.mxu2 %vm550_vm1, %v9481_v17  ;;  %v4629_v35 = vmul.f32 %v4619_v50, %v10725_v0  ;;  %v9518_v57 = vpop.f32.mrf.mxu2  ;;  %v10729_v50 = vld [vmem:[#allocation52_spill] sm:$0xff] }
 0x3b5   : > { %5897 = vmatmul.msk.f32.vlgmr.msra.gmra.mxu3 %vm550_vm1, %v9481_v17  ;;  %4712 = vmatpush.msra.mxu2 %v4637_v13  ;;  %v9523_v10 = vpop.f32.mrf.mxu3 }
 0x3b6   : > { %4735 = vmatpush.msra.mxu3 %v4638_v47  ;;  %v9530_v23 = vpop.f32.mrf.mxu0 }
 0x3b7   : > { %4713 = vmatpush.msra.mxu2 %v4629_v35  ;;  %5894 = vmatmul.msk.f32.gmra.mxu1 %vm550_vm1, %v9528_v2 }
 0x3b8   : > { %4736 = vmatpush.msra.mxu3 %v4630_v29 }
 0x3b9   : > { %v9534_v45 = vpop.permute.xlu2 %4860  ;;  %v4610_v54 = vpop.permute.xlu0 %4609 }
 0x3ba   : > { %v4582_v63 = vpop.permute.xlu1 %4581  ;;  %v4612_v36 = vsel %vm2051_vm6, %v9405_v30, %v4610_v54 }
 0x3bb   : > { %5891 = vmatmul.msk.f32.vlgmr.msra.gmra.mxu0 %vm550_vm1, %v9481_v17  ;;  %v4624_v9 = vsel %vm2051_vm6, %v4582_v63, %v9372_v24  ;;  %v9554_v24 = vpop.f32.mrf.mxu1  ;;  %v4626_v49 = vsel %vm2051_vm6, %v4610_v54, %v4582_v63  ;;  %v4641_v22 = vmul.f32 %v4612_v36, %v10727_v12 }
 0x3bc   : > { %5896 = vmatmul.msk.f32.gmra.mxu2 %vm550_vm1, %v9528_v2  ;;  %v4635_v37 = vmul.f32 %v4624_v9, %v10726_v32  ;;  %v4642_v6 = vmul.f32 %v4626_v49, %v10728_v41 }
 0x3bd   : > { %5898 = vmatmul.msk.f32.gmra.mxu3 %vm550_vm1, %v9528_v2  ;;  %v3433_v21 = vpop.f32.mrf.mxu2  ;;  %v3456_v19 = vpop.f32.mrf.mxu3 }
 0x3be   : > { %v9547_v51 = vadd.f32 %v3433_v21, %v9374_v44  ;;  %v9550_v3 = vadd.f32 %v3456_v19, %v9384_v1  ;;  %v9552_v7 = vpop.f32.mrf.mxu0  ;;  %4666 = vmatpush.msra.mxu0 %v4635_v37  ;;  %v4625_v1 = vsel %vm2051_vm6, %v9436_v39, %v4580_v31 }
 0x3bf   : > { %5901 = vmatmul.msk.f32.vlgmr.msrb.gmra.mxu1 %vm550_vm1, %v9481_v17  ;;  %v4634_v18 = vmul.f32 %v4625_v1, %v10728_v41 }
 0x3c1   : > { %v9563_v44 = vpop.permute.xlu2 %4854  ;;  %v4602_v5 = vpop.permute.xlu0 %4601 }
 0x3c2   : > { %v4584_v56 = vpop.permute.xlu1 %4583  ;;  %v4614_v34 = vsel %vm2051_vm6, %v4602_v5, %v9405_v30 }
 0x3c3   : > { %5892 = vmatmul.msk.f32.gmra.mxu0 %vm550_vm1, %v9528_v2  ;;  %v4621_v14 = vsel %vm2051_vm6, %v4584_v56, %v4588_v26  ;;  %v4623_v48 = vsel %vm2051_vm6, %v4580_v31, %v4584_v56  ;;  %v4640_v35 = vmul.f32 %v4614_v34, %v10729_v50  ;;  %v9595_v29 = vpop.f32.mrf.mxu1  ;;  %v10731_v56 = vld [vmem:[#allocation60_spill] sm:$0xff] }
 0x3c4   : > { %5903 = vmatmul.msk.f32.vlgmr.msrb.gmra.mxu2 %vm550_vm1, %v9481_v17  ;;  %v4627_v42 = vmul.f32 %v4623_v48, %v10726_v32  ;;  %v4628_v26 = vmul.f32 %v4621_v14, %v10723_v25  ;;  %v4616_v25 = vsel %vm2051_vm6, %v9407_v4, %v4602_v5 }
 0x3c5   : > { %5905 = vmatmul.msk.f32.vlgmr.msrb.gmra.mxu3 %vm550_vm1, %v9481_v17  ;;  %4804 = vmatpush.msrb.mxu2 %v4641_v22  ;;  %v3522_v47 = vpop.f32.mrf.mxu2  ;;  %v3545_v31 = vpop.f32.mrf.mxu3  ;;  %v3454_v22 = vadd.f32 %v9523_v10, %v9320_v40 }
 0x3c6   : > { %4827 = vmatpush.msrb.mxu3 %v4642_v6  ;;  %v9587_v0 = vadd.f32 %v3522_v47, %v9421_v20  ;;  %v9590_v30 = vadd.f32 %v3545_v31, %v9424_v11  ;;  %v9592_v13 = vpop.f32.mrf.mxu0  ;;  %4667 = vmatpush.msra.mxu0 %v4627_v42  ;;  %v10730_v11 = vld [vmem:[#allocation51_spill] sm:$0xff] }
 0x3c7   : > { %4690 = vmatpush.msra.mxu1 %v4628_v26  ;;  %v4639_v54 = vmul.f32 %v4616_v25, %v10730_v11  ;;  %v10732_v25 = vld [vmem:[#allocation63_spill] sm:$0xff] }
 0x3c8   : > { %4828 = vmatpush.msrb.mxu3 %v4634_v18  ;;  %5902 = vmatmul.msk.f32.gmra.mxu1 %vm550_vm1, %v9528_v2  ;;  %v5908_v18 = vld [vmem:[%s10333_s5 + $0x68] sm:$0xff] }
 0x3c9   : > { %4781 = vmatpush.msrb.mxu1 %v4640_v35  ;;  %v9609_v63 = vpop.permute.xlu2 %4856 }
 0x3ca   : > { %v4867_v20 = vpop.permute.xlu0 %4866  ;;  %v4894_v31 = vsel %vm2344_vm7, %v9609_v63, %v9534_v45 }
 0x3cb   : > { %5899 = vmatmul.msk.f32.vlgmr.msrb.gmra.mxu0 %vm550_vm1, %v9481_v17  ;;  %v9617_v17 = vld [vmem:[%s10333_s5 + $0x60] sm:$0xff]  ;;  %v9633_v1 = vpop.f32.mrf.mxu1 }
 0x3cc   : > { %5904 = vmatmul.msk.f32.gmra.mxu2 %vm550_vm1, %v9528_v2  ;;  %v4604_v9 = vpop.permute.xlu1 %4603  ;;  %4758 = vmatpush.msrb.mxu0 %v4639_v54  ;;  %v10733_v54 = vld [vmem:[#allocation62_spill] sm:$0xff] }
 0x3cd   : > { %5906 = vmatmul.msk.f32.gmra.mxu3 %vm550_vm1, %v9528_v2  ;;  %v4611_v4 = vsel %vm2051_vm6, %v4604_v9, %v9436_v39  ;;  %v3525_v32 = vpop.f32.mrf.mxu2  ;;  %v3548_v37 = vpop.f32.mrf.mxu3  ;;  %v4893_v39 = vsel %vm2344_vm7, %v9498_v53, %v4867_v20 }
 0x3ce   : > { %v4633_v21 = vmul.f32 %v4611_v4, %v10727_v12  ;;  %v9621_v19 = vadd.f32 %v3525_v32, %v9468_v27  ;;  %v9624_v36 = vadd.f32 %v3548_v37, %v9476_v28  ;;  %v9626_v49 = vpop.f32.mrf.mxu0  ;;  %v4910_v12 = vmul.f32 %v4893_v39, %v10731_v56  ;;  %v10734_v32 = vld [vmem:[#allocation55_spill] sm:$0xff] }
 0x3cf   : > { %v3431_v28 = vadd.f32 %v9518_v57, %v9310_v43  ;;  %v4901_v4 = vmul.f32 %v4894_v31, %v10733_v54  ;;  %v9740_v31 = vld [vmem:[%s10333_s5 + $0x70] sm:$0xff] }
 0x3d0   : > { %4805 = vmatpush.msrb.mxu2 %v4633_v21  ;;  %5911 = vmatmul.msk.f32.vlgmr.msra.gmra.mxu1 %vm550_vm1, %v9617_v17 }
 0x3d1   : > { %v9655_v40 = vpop.permute.xlu2 %4876 }
 0x3d2   : > { %v4865_v5 = vpop.permute.xlu0 %4864 }
 0x3d3   : > { %v4892_v27 = vsel %vm2344_vm7, %v9534_v45, %v4865_v5  ;;  %5900 = vmatmul.msk.f32.gmra.mxu0 %vm550_vm1, %v9528_v2 }
 0x3d4   : > { %5913 = vmatmul.msk.f32.vlgmr.msra.gmra.mxu2 %vm550_vm1, %v9617_v17  ;;  %v4600_v41 = vpop.permute.xlu1 %4599  ;;  %v4902_v6 = vmul.f32 %v4892_v27, %v10731_v56 }
 0x3d5   : > { %5915 = vmatmul.msk.f32.vlgmr.msra.gmra.mxu3 %vm550_vm1, %v9617_v17  ;;  %4985 = vmatpush.msra.mxu2 %v4910_v12  ;;  %v4613_v14 = vsel %vm2051_vm6, %v4600_v41, %v4604_v9  ;;  %v4615_v43 = vsel %vm2051_vm6, %v9441_v59, %v4600_v41  ;;  %v3687_v57 = vpop.f32.mrf.mxu2  ;;  %v3710_v2 = vpop.f32.mrf.mxu3 }
 0x3d6   : > { %v4631_v10 = vmul.f32 %v4615_v43, %v10730_v11  ;;  %v4632_v48 = vmul.f32 %v4613_v14, %v10729_v50  ;;  %v9659_v34 = vadd.f32 %v3687_v57, %v3431_v28  ;;  %v9661_v42 = vadd.f32 %v3710_v2, %v3454_v22  ;;  %v9668_v59 = vpop.f32.mrf.mxu1 }
 0x3d7   : > { %4986 = vmatpush.msra.mxu2 %v4902_v6  ;;  %v9666_v26 = vpop.f32.mrf.mxu0 }
 0x3d8   : > { %4759 = vmatpush.msrb.mxu0 %v4631_v10  ;;  %4782 = vmatpush.msrb.mxu1 %v4632_v48 }
 0x3d9   : > { %5912 = vmatmul.msk.f32.gmra.mxu1 %vm550_vm1, %v5908_v18 }
 0x3da   : > { %v4859_v47 = vpop.permute.xlu0 %4858 }
 0x3db   : > { %v4895_v50 = vsel %vm2344_vm7, %v4859_v47, %v9498_v53  ;;  %v4897_v35 = vsel %vm2344_vm7, %v9563_v44, %v4859_v47  ;;  %5909 = vmatmul.msk.f32.vlgmr.msra.gmra.mxu0 %vm550_vm1, %v9617_v17  ;;  %v9694_v56 = vpop.permute.xlu2 %4872 }
 0x3dc   : > { %v4908_v11 = vmul.f32 %v4897_v35, %v10732_v25  ;;  %v4909_v9 = vmul.f32 %v4895_v50, %v10733_v54  ;;  %5914 = vmatmul.msk.f32.gmra.mxu2 %vm550_vm1, %v5908_v18  ;;  %v9687_v45 = vpop.permute.xlu1 %4870 }
 0x3dd   : > { %5916 = vmatmul.msk.f32.gmra.mxu3 %vm550_vm1, %v5908_v18  ;;  %v4891_v53 = vsel %vm2344_vm7, %v4867_v20, %v9687_v45 }
 0x3de   : > { %4962 = vmatpush.msra.mxu1 %v4909_v9  ;;  %4939 = vmatpush.msra.mxu0 %v4908_v11  ;;  %v4911_v37 = vmul.f32 %v4891_v53, %v10734_v32  ;;  %v3713_v39 = vpop.f32.mrf.mxu3  ;;  %v9708_v22 = vpop.f32.mrf.mxu1 }
 0x3df   : > { %v3690_v21 = vpop.f32.mrf.mxu2  ;;  %v9700_v27 = vadd.f32 %v3713_v39, %v9550_v3  ;;  %v9702_v28 = vpop.f32.mrf.mxu0 }
 0x3e0   : > { %4963 = vmatpush.msra.mxu1 %v4901_v4  ;;  %v9697_v12 = vadd.f32 %v3690_v21, %v9547_v51  ;;  %5008 = vmatpush.msra.mxu3 %v4911_v37  ;;  %v10737_v21 = vld [vmem:[#allocation64_spill] sm:$0xff] }
 0x3e1   : > { %5919 = vmatmul.msk.f32.vlgmr.msrb.gmra.mxu1 %vm550_vm1, %v9617_v17 }
 0x3e2   : > { %v9706_v20 = vpop.permute.xlu0 %4878 }
 0x3e3   : > { %5910 = vmatmul.msk.f32.gmra.mxu0 %vm550_vm1, %v5908_v18  ;;  %v9725_v2 = vpop.permute.xlu2 %5143 }
 0x3e4   : > { %5921 = vmatmul.msk.f32.vlgmr.msrb.gmra.mxu2 %vm550_vm1, %v9617_v17  ;;  %v4869_v51 = vpop.permute.xlu1 %4868 }
 0x3e5   : > { %5923 = vmatmul.msk.f32.vlgmr.msrb.gmra.mxu3 %vm550_vm1, %v9617_v17  ;;  %v4890_v3 = vsel %vm2344_vm7, %v4865_v5, %v4869_v51 }
 0x3e6   : > { %v4903_v41 = vmul.f32 %v4890_v3, %v10734_v32  ;;  %v9720_v14 = vpop.f32.mrf.mxu3  ;;  %v10736_v32 = vld [vmem:[#allocation73_spill] sm:$0xff] }
 0x3e7   : > { %v9718_v6 = vpop.f32.mrf.mxu2  ;;  %v9722_v43 = vpop.f32.mrf.mxu0  ;;  %v9777_v3 = vld [vmem:[%s10333_s5 + $0x78] sm:$0xff] }
 0x3e8   : > { %10735 = vst [vmem:[#allocation53_spill] sm:$0xff] %v9722_v43  ;;  %5009 = vmatpush.msra.mxu3 %v4903_v41 }
 0x3e9   : > { %5920 = vmatmul.msk.f32.gmra.mxu1 %vm550_vm1, %v5908_v18 }
 0x3ea   : > { %v4881_v57 = vpop.permute.xlu0 %4880 }
 0x3eb   : > { %5917 = vmatmul.msk.f32.vlgmr.msrb.gmra.mxu0 %vm550_vm1, %v9617_v17  ;;  %v9758_v54 = vpop.permute.xlu2 %5141 }
 0x3ec   : > { %v9729_v10 = vpop.f32.mrf.mxu1  ;;  %5922 = vmatmul.msk.f32.gmra.mxu2 %vm550_vm1, %v5908_v18  ;;  %v4853_v5 = vpop.permute.xlu1 %4852 }
 0x3ed   : > { %5924 = vmatmul.msk.f32.gmra.mxu3 %vm550_vm1, %v5908_v18  ;;  %v4896_v48 = vsel %vm2344_vm7, %v4853_v5, %v9609_v63  ;;  %v4898_v53 = vsel %vm2344_vm7, %v4881_v57, %v4853_v5 }
 0x3ee   : > { %v4900_v47 = vmul.f32 %v4896_v48, %v10732_v25  ;;  %v9744_v17 = vpop.f32.mrf.mxu3  ;;  %v4884_v25 = vsel %vm2344_vm7, %v9655_v40, %v4881_v57  ;;  %v4907_v48 = vmul.f32 %v4898_v53, %v10737_v21  ;;  %v4888_v53 = vsel %vm2344_vm7, %v4869_v51, %v9694_v56 }
 0x3ef   : > { %v9742_v50 = vpop.f32.mrf.mxu2  ;;  %v9746_v35 = vpop.f32.mrf.mxu0  ;;  %v4906_v41 = vmul.f32 %v4884_v25, %v10736_v32 }
 0x3f0   : > { %4940 = vmatpush.msra.mxu0 %v4900_v47 }
 0x3f1   : > { %5929 = vmatmul.msk.f32.vlgmr.msra.gmra.mxu1 %vm550_vm1, %v9740_v31 }
 0x3f2   : > { %v9750_v11 = vpop.permute.xlu0 %5135 }
 0x3f3   : > { %5918 = vmatmul.msk.f32.gmra.mxu0 %vm550_vm1, %v5908_v18 }
 0x3f4   : > { %v9753_v63 = vpop.f32.mrf.mxu1  ;;  %5931 = vmatmul.msk.f32.vlgmr.msra.gmra.mxu2 %vm550_vm1, %v9740_v31  ;;  %v4883_v9 = vpop.permute.xlu1 %4882 }
 0x3f5   : > { %5933 = vmatmul.msk.f32.vlgmr.msra.gmra.mxu3 %vm550_vm1, %v9740_v31  ;;  %v4885_v18 = vsel %vm2344_vm7, %v9706_v20, %v4883_v9  ;;  %v4899_v4 = vsel %vm2344_vm7, %v4883_v9, %v9563_v44 }
 0x3f6   : > { %v4914_v37 = vmul.f32 %v4885_v18, %v10736_v32  ;;  %v4915_v39 = vmul.f32 %v4899_v4, %v10737_v21  ;;  %v3983_v5 = vpop.f32.mrf.mxu3 }
 0x3f7   : > { %v3960_v57 = vpop.f32.mrf.mxu2  ;;  %v9785_v44 = vadd.f32 %v3983_v5, %v9661_v42  ;;  %v9787_v9 = vpop.f32.mrf.mxu0 }
 0x3f8   : > { %v9782_v47 = vadd.f32 %v3960_v57, %v9659_v34  ;;  %5077 = vmatpush.msrb.mxu2 %v4914_v37  ;;  %5100 = vmatpush.msrb.mxu3 %v4915_v39  ;;  %v4886_v34 = vsel %vm2344_vm7, %v9694_v56, %v9655_v40  ;;  %v9814_v40 = vpop.permute.xlu2 %5125  ;;  %v10738_v37 = vld [vmem:[#allocation70_spill] sm:$0xff]  ;;  %v10739_v39 = vld [vmem:[#allocation72_spill] sm:$0xff] }
 0x3f9   : > { %5930 = vmatmul.msk.f32.gmra.mxu1 %vm550_vm1, %v9777_v3  ;;  %v4905_v57 = vmul.f32 %v4886_v34, %v10739_v39  ;;  %v4904_v56 = vmul.f32 %v4888_v53, %v10738_v37  ;;  %v3814_v53 = vadd.f32 %v9718_v6, %v9587_v0 }
 0x3fa   : > { %5078 = vmatpush.msrb.mxu2 %v4906_v41  ;;  %5101 = vmatpush.msrb.mxu3 %v4907_v48 }
 0x3fb   : > { %v9791_v18 = vpop.permute.xlu0 %5133  ;;  %5927 = vmatmul.msk.f32.vlgmr.msra.gmra.mxu0 %vm550_vm1, %v9740_v31 }
 0x3fc   : > { %v9795_v25 = vpop.f32.mrf.mxu1  ;;  %5932 = vmatmul.msk.f32.gmra.mxu2 %vm550_vm1, %v9777_v3 }
 0x3fd   : > { %5934 = vmatmul.msk.f32.gmra.mxu3 %vm550_vm1, %v9777_v3  ;;  %v4875_v42 = vpop.permute.xlu1 %4874 }
 0x3fe   : > { %v4887_v4 = vsel %vm2344_vm7, %v4875_v42, %v9706_v20  ;;  %v4889_v32 = vsel %vm2344_vm7, %v9687_v45, %v4875_v42  ;;  %v3986_v48 = vpop.f32.mrf.mxu3 }
 0x3ff   : > { %v4912_v21 = vmul.f32 %v4889_v32, %v10738_v37  ;;  %v4913_v41 = vmul.f32 %v4887_v4, %v10739_v39  ;;  %v3963_v5 = vpop.f32.mrf.mxu2  ;;  %v9824_v20 = vadd.f32 %v3986_v48, %v9700_v27  ;;  %v3815_v4 = vadd.f32 %v9720_v14, %v9590_v30  ;;  %v10740_v32 = vld [vmem:[#allocation77_spill] sm:$0xff] }
 0x400   : > { %v9821_v51 = vadd.f32 %v3963_v5, %v9697_v12  ;;  %v9826_v43 = vpop.f32.mrf.mxu0  ;;  %v9864_v14 = vpop.permute.xlu2 %5155 }
 0x401   : > { %5031 = vmatpush.msrb.mxu0 %v4912_v21  ;;  %5054 = vmatpush.msrb.mxu1 %v4913_v41  ;;  %v10741_v21 = vld [vmem:[#allocation78_spill] sm:$0xff] }
 0x402   : > { %v5398_v41 = vld [vmem:[%s10334_s6] sm:$0xff] }
 0x403   : > { %v9828_v45 = vpop.permute.xlu0 %5127  ;;  %5032 = vmatpush.msrb.mxu0 %v4904_v56  ;;  %5055 = vmatpush.msrb.mxu1 %v4905_v57  ;;  %v3408_v57 = vadd.f32 %v9401_v52, %v9218_v58 }
 0x404   : > { %5928 = vmatmul.msk.f32.gmra.mxu0 %vm550_vm1, %v9777_v3  ;;  %5937 = vmatmul.msk.f32.vlgmr.msrb.gmra.mxu1 %vm550_vm1, %v9740_v31  ;;  %v9838_v27 = vpop.f32.mrf.mxu1  ;;  %v5172_v58 = vsel %vm2637_vm8, %v9864_v14, %v9828_v45 }
 0x405   : > { %5939 = vmatmul.msk.f32.vlgmr.msrb.gmra.mxu2 %vm550_vm1, %v9740_v31  ;;  %5941 = vmatmul.msk.f32.vlgmr.msrb.gmra.mxu3 %vm550_vm1, %v9740_v31  ;;  %v5140_v12 = vpop.permute.xlu1 %5139  ;;  %v3809_v30 = vadd.f32 %v9595_v29, %v3408_v57 }
 0x406   : > { %v5164_v34 = vsel %vm2637_vm8, %v5140_v12, %v9725_v2  ;;  %v5166_v42 = vsel %vm2637_vm8, %v9750_v11, %v5140_v12  ;;  %5402 = vperm.xlu1 %6240, %v5398_v41   ;;  %v10742_v41 = vld [vmem:[#allocation90_spill] sm:$0xff] }
 0x407   : > { %v5183_v37 = vmul.f32 %v5166_v42, %v10740_v32  ;;  %v5184_v39 = vmul.f32 %v5164_v34, %v10741_v21  ;;  %v4052_v5 = vpop.f32.mrf.mxu2  ;;  %v4082_v34 = vadd.f32 %v9729_v10, %v3809_v30  ;;  %v3480_v10 = vadd.f32 %v9626_v49, %v9470_v46 }
 0x408   : > { %v4075_v48 = vpop.f32.mrf.mxu3  ;;  %v9857_v56 = vadd.f32 %v4052_v5, %v3814_v53  ;;  %v9861_v6 = vpop.f32.mrf.mxu0  ;;  %v5188_v57 = vmul.f32 %v5172_v58, %v10742_v41  ;;  %v3411_v30 = vadd.f32 %v9449_v16, %v9268_v62  ;;  %v3385_v62 = vadd.f32 %v9530_v23, %v9302_v33 }
 0x409   : > { %v9859_v0 = vadd.f32 %v4075_v48, %v3815_v4  ;;  %5258 = vmatpush.msra.mxu2 %v5183_v37  ;;  %5281 = vmatpush.msra.mxu3 %v5184_v39  ;;  %v3822_v4 = vadd.f32 %v9742_v50, %v9621_v19  ;;  %v3823_v37 = vadd.f32 %v9744_v17, %v9624_v36  ;;  %v9908_v50 = vld [vmem:[%s10333_s5 + $0x80] sm:$0xff] }
 0x40a   : > { %v3820_v49 = vadd.f32 %v9746_v35, %v3480_v10  ;;  %v3817_v17 = vadd.f32 %v9633_v1, %v3411_v30  ;;  %v3808_v58 = vadd.f32 %v9666_v26, %v3385_v62  ;;  %v3500_v26 = vadd.f32 %v9521_v8, %v9305_v60  ;;  %v9958_v8 = vld [vmem:[%s10333_s5 + $0x88] sm:$0xff] }
 0x40b   : > { %v5130_v12 = vpop.permute.xlu0 %5129 }
 0x40c   : > { %5935 = vmatmul.msk.f32.vlgmr.msrb.gmra.mxu0 %vm550_vm1, %v9740_v31  ;;  %5938 = vmatmul.msk.f32.gmra.mxu1 %vm550_vm1, %v9777_v3  ;;  %v4146_v29 = vpop.f32.mrf.mxu1  ;;  %v4090_v16 = vadd.f32 %v9753_v63, %v3817_v17  ;;  %v5167_v33 = vsel %vm2637_vm8, %v5130_v12, %v9791_v18  ;;  %v10746_v17 = vld [vmem:[#allocation101_spill] sm:$0xff] }
 0x40d   : > { %5940 = vmatmul.msk.f32.gmra.mxu2 %vm550_vm1, %v9777_v3  ;;  %5942 = vmatmul.msk.f32.gmra.mxu3 %vm550_vm1, %v9777_v3  ;;  %v5138_v52 = vpop.permute.xlu1 %5137  ;;  %v9887_v53 = vadd.f32 %v4146_v29, %v4082_v34  ;;  %v10743_v29 = vld [vmem:[#allocation86_spill] sm:$0xff] }
 0x40e   : > { %v5163_v31 = vsel %vm2637_vm8, %v5138_v52, %v9758_v54  ;;  %v5165_v42 = vsel %vm2637_vm8, %v9791_v18, %v5138_v52  ;;  %v4081_v18 = vadd.f32 %v9787_v9, %v3808_v58  ;;  %v3813_v9 = vadd.f32 %v9668_v59, %v3500_v26 }
 0x40f   : > { %v5175_v39 = vmul.f32 %v5165_v42, %v10740_v32  ;;  %v5176_v46 = vmul.f32 %v5163_v31, %v10741_v21  ;;  %v4055_v5 = vpop.f32.mrf.mxu2  ;;  %v5169_v32 = vsel %vm2637_vm8, %v9814_v40, %v5130_v12  ;;  %v5148_v21 = vpop.permute.xlu2 %5147  ;;  %v10744_v31 = vld [vmem:[#allocation76_spill] sm:$0xff]  ;;  %v3503_v58 = vadd.f32 %v9554_v24, %v9361_v55 }
 0x410   : > { %v4078_v48 = vpop.f32.mrf.mxu3  ;;  %v9899_v34 = vadd.f32 %v4055_v5, %v3822_v4  ;;  %v4009_v19 = vpop.f32.mrf.mxu0  ;;  %v5173_v12 = vmul.f32 %v5169_v32, %v10743_v29  ;;  %v3477_v55 = vadd.f32 %v9592_v13, %v9399_v38 }
 0x411   : > { %v9901_v52 = vadd.f32 %v4078_v48, %v3823_v37  ;;  %5259 = vmatpush.msra.mxu2 %v5175_v39  ;;  %5282 = vmatpush.msra.mxu3 %v5176_v46  ;;  %v9903_v36 = vadd.f32 %v4009_v19, %v3820_v49  ;;  %v5174_v39 = vmul.f32 %v5167_v33, %v10744_v31 }
 0x413   : > { %5373 = vmatpush.msrb.mxu3 %v5188_v57  ;;  %v9911_v35 = vpop.permute.xlu0 %5149 }
 0x414   : > { %5936 = vmatmul.msk.f32.gmra.mxu0 %vm550_vm1, %v9777_v3  ;;  %v4149_v3 = vpop.f32.mrf.mxu1 }
 0x415   : > { %5949 = vmatmul.msk.f32.vlgmr.msra.gmra.mxu2 %vm550_vm1, %v9908_v50  ;;  %5951 = vmatmul.msk.f32.vlgmr.msra.gmra.mxu3 %vm550_vm1, %v9908_v50  ;;  %v5132_v1 = vpop.permute.xlu1 %5131  ;;  %v9937_v4 = vadd.f32 %v4149_v3, %v4090_v16  ;;  %v10747_v16 = vld [vmem:[#allocation95_spill] sm:$0xff] }
 0x416   : > { %v5168_v23 = vsel %vm2637_vm8, %v5132_v1, %v9750_v11  ;;  %v5170_v63 = vsel %vm2637_vm8, %v9828_v45, %v5132_v1  ;;  %v5162_v11 = vsel %vm2637_vm8, %v9725_v2, %v5148_v21  ;;  %v3388_v2 = vadd.f32 %v9552_v7, %v9358_v15 }
 0x417   : > { %v5181_v10 = vmul.f32 %v5170_v63, %v10743_v29  ;;  %v5182_v42 = vmul.f32 %v5168_v23, %v10744_v31  ;;  %v4169_v37 = vpop.f32.mrf.mxu2  ;;  %v4086_v15 = vadd.f32 %v9795_v25, %v3813_v9  ;;  %v3821_v31 = vadd.f32 %v9708_v22, %v3503_v58 }
 0x418   : > { %v4192_v45 = vpop.f32.mrf.mxu3  ;;  %v9948_v46 = vadd.f32 %v4169_v37, %v9782_v47  ;;  %v4123_v57 = vpop.f32.mrf.mxu0  ;;  %v3816_v30 = vadd.f32 %v9702_v28, %v3388_v2 }
 0x419   : > { %v9951_v49 = vadd.f32 %v4192_v45, %v9785_v44  ;;  %5212 = vmatpush.msra.mxu0 %v5181_v10  ;;  %5235 = vmatpush.msra.mxu1 %v5182_v42  ;;  %v9953_v60 = vadd.f32 %v4123_v57, %v4081_v18  ;;  %v10745_v44 = vld [vmem:[#allocation100_spill] sm:$0xff]  ;;  %v4094_v24 = vadd.f32 %v9838_v27, %v3821_v31 }
 0x41a   : > { %v5185_v5 = vmul.f32 %v5162_v11, %v10745_v44  ;;  %v4089_v33 = vadd.f32 %v9826_v43, %v3816_v30 }
 0x41b   : > { %v5146_v47 = vpop.permute.xlu0 %5145  ;;  %5213 = vmatpush.msra.mxu0 %v5173_v12  ;;  %5236 = vmatpush.msra.mxu1 %v5174_v39 }
 0x41c   : > { %v5161_v48 = vsel %vm2637_vm8, %v9758_v54, %v5146_v47  ;;  %5945 = vmatmul.msk.f32.vlgmr.msra.gmra.mxu0 %vm550_vm1, %v9908_v50  ;;  %5947 = vmatmul.msk.f32.vlgmr.msra.gmra.mxu1 %vm550_vm1, %v9908_v50  ;;  %v5159_v59 = vsel %vm2637_vm8, %v5146_v47, %v9911_v35  ;;  %v4238_v19 = vpop.f32.mrf.mxu1 }
 0x41d   : > { %5950 = vmatmul.msk.f32.gmra.mxu2 %vm550_vm1, %v9958_v8  ;;  %5952 = vmatmul.msk.f32.gmra.mxu3 %vm550_vm1, %v9958_v8  ;;  %v5152_v7 = vpop.permute.xlu1 %5151  ;;  %v5177_v54 = vmul.f32 %v5161_v48, %v10745_v44  ;;  %v4295_v1 = vadd.f32 %v4238_v19, %v4086_v15  ;;  %v5178_v3 = vmul.f32 %v5159_v59, %v10746_v17 }
 0x41e   : > { %5304 = vmatpush.msrb.mxu0 %v5185_v5  ;;  %v5158_v28 = vsel %vm2637_vm8, %v5152_v7, %v9864_v14  ;;  %v5160_v25 = vsel %vm2637_vm8, %v5148_v21, %v5152_v7 }
 0x41f   : > { %v5186_v62 = vmul.f32 %v5160_v25, %v10746_v17  ;;  %v5187_v32 = vmul.f32 %v5158_v28, %v10747_v16  ;;  %v4172_v23 = vpop.f32.mrf.mxu2 }
 0x420   : > { %5305 = vmatpush.msrb.mxu0 %v5177_v54  ;;  %v4195_v63 = vpop.f32.mrf.mxu3  ;;  %v4300_v14 = vadd.f32 %v4172_v23, %v9821_v51  ;;  %v4126_v29 = vpop.f32.mrf.mxu0  ;;  %v10748_v51 = vld [vmem:[#allocation53_spill] sm:$0xff] }
 0x421   : > { %v4301_v21 = vadd.f32 %v4195_v63, %v9824_v20  ;;  %5327 = vmatpush.msrb.mxu1 %v5186_v62  ;;  %5350 = vmatpush.msrb.mxu2 %v5187_v32  ;;  %v4298_v10 = vadd.f32 %v4126_v29, %v4089_v33  ;;  %v3812_v20 = vadd.f32 %v10748_v51, %v3477_v55 }
 0x423   : > { %5328 = vmatpush.msrb.mxu1 %v5178_v3  ;;  %v4085_v12 = vadd.f32 %v9861_v6, %v3812_v20 }
 0x424   : > { %5946 = vmatmul.msk.f32.gmra.mxu0 %vm550_vm1, %v9958_v8  ;;  %5948 = vmatmul.msk.f32.gmra.mxu1 %vm550_vm1, %v9958_v8  ;;  %v4241_v38 = vpop.f32.mrf.mxu1 }
 0x425   : > { %v5154_v43 = vpop.permute.xlu1 %5153  ;;  %v4303_v18 = vadd.f32 %v4241_v38, %v4094_v24 }
 0x426   : > { %v5157_v42 = vsel %vm2637_vm8, %v9911_v35, %v5154_v43  ;;  %v5171_v22 = vsel %vm2637_vm8, %v5154_v43, %v9814_v40 }
 0x427   : > { %v5179_v13 = vmul.f32 %v5157_v42, %v10747_v16  ;;  %v5180_v26 = vmul.f32 %v5171_v22, %v10742_v41  ;;  %v4261_v27 = vpop.f32.mrf.mxu2 }
 0x428   : > { %v4284_v11 = vpop.f32.mrf.mxu3  ;;  %v4296_v37 = vadd.f32 %v4261_v27, %v9857_v56  ;;  %v4215_v39 = vpop.f32.mrf.mxu0 }
 0x429   : > { %v4297_v45 = vadd.f32 %v4284_v11, %v9859_v0  ;;  %5351 = vmatpush.msrb.mxu2 %v5179_v13  ;;  %5374 = vmatpush.msrb.mxu3 %v5180_v26  ;;  %v4294_v35 = vadd.f32 %v4215_v39, %v4085_v12 }
 0x42a   : > { %5957 = vmatmul.msk.f32.vlgmr.msrb.gmra.mxu2 %vm550_vm1, %v9908_v50  ;;  %5959 = vmatmul.msk.f32.vlgmr.msrb.gmra.mxu3 %vm550_vm1, %v9908_v50 }
 0x42c   : > { %5953 = vmatmul.msk.f32.vlgmr.msrb.gmra.mxu0 %vm550_vm1, %v9908_v50  ;;  %5955 = vmatmul.msk.f32.vlgmr.msrb.gmra.mxu1 %vm550_vm1, %v9908_v50  ;;  %v4419_v61 = vpop.f32.mrf.mxu1 }
 0x42d   : > { %v10023_v40 = vadd.f32 %v4419_v61, %v9887_v53 }
 0x42f   : > { %v4264_v56 = vpop.f32.mrf.mxu2 }
 0x430   : > { %v4287_v0 = vpop.f32.mrf.mxu3  ;;  %v4304_v6 = vadd.f32 %v4264_v56, %v9899_v34  ;;  %v4218_v57 = vpop.f32.mrf.mxu0 }
 0x431   : > { %v4305_v41 = vadd.f32 %v4287_v0, %v9901_v52  ;;  %v4302_v2 = vadd.f32 %v4218_v57, %v9903_v36 }
 0x432   : > { %5958 = vmatmul.msk.f32.gmra.mxu2 %vm550_vm1, %v9958_v8  ;;  %5960 = vmatmul.msk.f32.gmra.mxu3 %vm550_vm1, %v9958_v8 }
 0x434   : > { %5954 = vmatmul.msk.f32.gmra.mxu0 %vm550_vm1, %v9958_v8  ;;  %5956 = vmatmul.msk.f32.gmra.mxu1 %vm550_vm1, %v9958_v8  ;;  %v4422_v53 = vpop.f32.mrf.mxu1 }
 0x435   : > { %v4572_v34 = vadd.f32 %v4422_v53, %v9937_v4 }
 0x437   : > { %v4442_v50 = vpop.f32.mrf.mxu2 }
 0x438   : > { %v4465_v52 = vpop.f32.mrf.mxu3  ;;  %v10038_v9 = vadd.f32 %v4442_v50, %v9948_v46  ;;  %v4396_v47 = vpop.f32.mrf.mxu0 }
 0x439   : > { %v10041_v36 = vadd.f32 %v4465_v52, %v9951_v49  ;;  %v10044_v44 = vadd.f32 %v4396_v47, %v9953_v60 }
 0x43c   : > { %v4511_v5 = vpop.f32.mrf.mxu1 }
 0x43d   : > { %v4568_v48 = vadd.f32 %v4511_v5, %v4295_v1 }
 0x43f   : > { %v4445_v30 = vpop.f32.mrf.mxu2 }
 0x440   : > { %v4468_v15 = vpop.f32.mrf.mxu3  ;;  %v4573_v8 = vadd.f32 %v4445_v30, %v4300_v14  ;;  %v4399_v4 = vpop.f32.mrf.mxu0 }
 0x441   : > { %v10046_v7 = vadd.f32 %v4468_v15, %v4301_v21  ;;  %v4571_v59 = vadd.f32 %v4399_v4, %v4298_v10 }
 0x445   : > { %v4514_v54 = vpop.f32.mrf.mxu1 }
 0x446   : > { %v4576_v28 = vadd.f32 %v4514_v54, %v4303_v18 }
 0x447   : > { %v4534_v46 = vpop.f32.mrf.mxu2 }
 0x448   : > { %v4557_v25 = vpop.f32.mrf.mxu3  ;;  %v4569_v19 = vadd.f32 %v4534_v46, %v4296_v37  ;;  %v4488_v17 = vpop.f32.mrf.mxu0 }
 0x449   : > { %v4570_v49 = vadd.f32 %v4557_v25, %v4297_v45  ;;  %v4567_v62 = vadd.f32 %v4488_v17, %v4294_v35 }
 0x44d   : > { %v4692_v16 = vpop.f32.mrf.mxu1 }
 0x44e   : > { %v4837_v54 = vadd.f32 %v4692_v16, %v10023_v40 }
 0x44f   : > { %v4537_v60 = vpop.f32.mrf.mxu2 }
 0x450   : > { %v4560_v32 = vpop.f32.mrf.mxu3  ;;  %v4577_v58 = vadd.f32 %v4537_v60, %v4304_v6  ;;  %v4491_v33 = vpop.f32.mrf.mxu0 }
 0x451   : > { %v4578_v1 = vadd.f32 %v4560_v32, %v4305_v41  ;;  %v4575_v23 = vadd.f32 %v4491_v33, %v4302_v2 }
 0x456   : > { %v4695_v63 = vpop.f32.mrf.mxu1 }
 0x457   : > { %v4845_v3 = vadd.f32 %v4695_v63, %v4572_v34  ;;  %v4715_v14 = vpop.f32.mrf.mxu2 }
 0x458   : > { %v4738_v21 = vpop.f32.mrf.mxu3  ;;  %v4669_v29 = vpop.f32.mrf.mxu0  ;;  %v4838_v4 = vadd.f32 %v4715_v14, %v10038_v9  ;;  %v5444_v14 = vld [vmem:[%s10335_s7 + $0x10] sm:$0xff] }
 0x45e   : > { %v4784_v10 = vpop.f32.mrf.mxu1 }
 0x45f   : > { %v4718_v31 = vpop.f32.mrf.mxu2  ;;  %v10048_v24 = vadd.f32 %v4784_v10, %v4568_v48 }
 0x460   : > { %v4741_v55 = vpop.f32.mrf.mxu3  ;;  %v4846_v43 = vadd.f32 %v4718_v31, %v4573_v8  ;;  %v4672_v51 = vpop.f32.mrf.mxu0 }
 0x461   : > { %v4844_v20 = vadd.f32 %v4672_v51, %v4571_v59  ;;  %v4839_v59 = vadd.f32 %v4738_v21, %v10041_v36  ;;  %v4847_v40 = vadd.f32 %v4741_v55, %v10046_v7  ;;  %v5445_v21 = vld [vmem:[%s10335_s7 + $0x18] sm:$0xff]  ;;  %v5443_v55 = vld [vmem:[%s10335_s7 + $0x8] sm:$0xff] }
 0x466   : > { %v4787_v42 = vpop.f32.mrf.mxu1 }
 0x467   : > { %v10050_v22 = vadd.f32 %v4787_v42, %v4576_v28  ;;  %v4807_v38 = vpop.f32.mrf.mxu2  ;;  %v4836_v28 = vadd.f32 %v4669_v29, %v10044_v44  ;;  %v6258_v42 = vld [vmem:[%s6361_s18 + $0x18] sm:$0xff] }
 0x468   : > { %v4830_v13 = vpop.f32.mrf.mxu3  ;;  %v4842_v26 = vadd.f32 %v4807_v38, %v4569_v19  ;;  %v4761_v12 = vpop.f32.mrf.mxu0 }
 0x469   : > { %v10052_v18 = vadd.f32 %v4830_v13, %v4570_v49  ;;  %v10054_v27 = vadd.f32 %v4761_v12, %v4567_v62 }
 0x46e   : > { %v4965_v56 = vpop.f32.mrf.mxu1 }
 0x46f   : > { %v4810_v11 = vpop.f32.mrf.mxu2  ;;  %v5110_v49 = vadd.f32 %v4965_v56, %v4837_v54 }
 0x470   : > { %v4833_v37 = vpop.f32.mrf.mxu3  ;;  %v10056_v45 = vadd.f32 %v4810_v11, %v4577_v58  ;;  %v4764_v35 = vpop.f32.mrf.mxu0  ;;  %v6259_v11 = vld [vmem:[%s6361_s18] sm:$0xff] }
 0x471   : > { %v10058_v39 = vadd.f32 %v4833_v37, %v4578_v1  ;;  %v10060_v61 = vadd.f32 %v4764_v35, %v4575_v23 }
 0x476   : > { %v4968_v57 = vpop.f32.mrf.mxu1 }
 0x477   : > { %v4988_v0 = vpop.f32.mrf.mxu2  ;;  %v5118_v16 = vadd.f32 %v4968_v57, %v4845_v3  ;;  %v5442_v3 = vld [vmem:[%s10335_s7] sm:$0xff] }
 0x478   : > { %v5011_v6 = vpop.f32.mrf.mxu3  ;;  %v4942_v41 = vpop.f32.mrf.mxu0  ;;  %v5111_v46 = vadd.f32 %v4988_v0, %v4838_v4 }
 0x479   : > { %v5112_v25 = vadd.f32 %v5011_v6, %v4839_v59  ;;  %v10068_v19 = vpop.permute.xlu1 %5402  ;;  %v5109_v17 = vadd.f32 %v4942_v41, %v4836_v28 }
 0x47f   : > { %v4991_v2 = vpop.f32.mrf.mxu2 }
 0x480   : > { %v5014_v53 = vpop.f32.mrf.mxu3  ;;  %v5119_v63 = vadd.f32 %v4991_v2, %v4846_v43  ;;  %v6257_v43 = vld [vmem:[%s6361_s18 + $0x10] sm:$0xff] }
 0x481   : > { %v4945_v34 = vpop.f32.mrf.mxu0  ;;  %v5057_v50 = vpop.f32.mrf.mxu1  ;;  %v5120_v10 = vadd.f32 %v5014_v53, %v4847_v40 }
 0x482   : > { %v5117_v31 = vadd.f32 %v4945_v34, %v4844_v20  ;;  %v10090_v13 = vadd.f32 %v5057_v50, %v10048_v24  ;;  %v6260_v20 = vld [vmem:[%s6361_s18 + $0x8] sm:$0xff] }
 0x488   : > { %v5080_v52 = vpop.f32.mrf.mxu2  ;;  %v5103_v47 = vpop.f32.mrf.mxu3 }
 0x489   : > { %v5034_v5 = vpop.f32.mrf.mxu0  ;;  %v5060_v15 = vpop.f32.mrf.mxu1  ;;  %v10092_v12 = vadd.f32 %v5080_v52, %v4842_v26  ;;  %v10097_v56 = vadd.f32 %v5103_v47, %v10052_v18 }
 0x48a   : > { %v10100_v0 = vadd.f32 %v5034_v5, %v10054_v27  ;;  %v10103_v57 = vadd.f32 %v5060_v15, %v10050_v22  ;;  %v10108_v27 = vpop.permute.xlu2 %5407 }
 0x490   : > { %v5083_v48 = vpop.f32.mrf.mxu2  ;;  %v10062_v30 = vpop.f32.mrf.mxu3 }
 0x491   : > { %v5037_v8 = vpop.f32.mrf.mxu0  ;;  %v10106_v24 = vadd.f32 %v5083_v48, %v10056_v45 }
 0x492   : > { %v10111_v15 = vadd.f32 %v5037_v8, %v10060_v61 }
 0x498   : > { %v5261_v62 = vpop.f32.mrf.mxu2  ;;  %v5284_v60 = vpop.f32.mrf.mxu3 }
 0x499   : > { %v5384_v32 = vadd.f32 %v5261_v62, %v5111_v46  ;;  %v5385_v58 = vadd.f32 %v5284_v60, %v5112_v25  ;;  %v5215_v1 = vpop.f32.mrf.mxu0  ;;  %v5238_v33 = vpop.f32.mrf.mxu1 }
 0x49a   : > { %v5382_v9 = vadd.f32 %v5215_v1, %v5109_v17  ;;  %v5383_v23 = vadd.f32 %v5238_v33, %v5110_v49 }
 0x49b   : > { %v5412_v36 = vadd.f32 %v10068_v19, %v5384_v32  ;;  %v5413_v44 = vadd.f32 %v10068_v19, %v5385_v58 }
 0x49c   : > { %v5410_v29 = vadd.f32 %v10068_v19, %v5382_v9  ;;  %v5411_v7 = vadd.f32 %v10068_v19, %v5383_v23 }
 0x49d   : > { %v5428_v51 = vadd.f32 %v6257_v43, %v5412_v36  ;;  %v5429_v38 = vadd.f32 %v6258_v42, %v5413_v44  ;;  %v5450_v43 = vld [vmem:[%s10335_s7 + $0x40] sm:$0xff]  ;;  %v6261_v42 = vld [vmem:[%s6361_s18 + $0x50] sm:$0xff] }
 0x49e   : > { %v5426_v37 = vadd.f32 %v6259_v11, %v5410_v29  ;;  %v5427_v35 = vadd.f32 %v6260_v20, %v5411_v7  ;;  %v6262_v11 = vld [vmem:[%s6361_s18 + $0x58] sm:$0xff]  ;;  %v6263_v20 = vld [vmem:[%s6361_s18 + $0x40] sm:$0xff] }
 0x49f   : > { %v5460_v6 = vmul.f32 %v5444_v14, %v5428_v51  ;;  %v5461_v41 = vmul.f32 %v5445_v21, %v5429_v38 }
 0x4a0   : > { %v5458_v26 = vmul.f32 %v5442_v3, %v5426_v37  ;;  %v5459_v2 = vmul.f32 %v5443_v55, %v5427_v35  ;;  %v5264_v53 = vpop.f32.mrf.mxu2  ;;  %v5287_v34 = vpop.f32.mrf.mxu3  ;;  %v5452_v3 = vld [vmem:[%s10335_s7 + $0x50] sm:$0xff]  ;;  %v5453_v55 = vld [vmem:[%s10335_s7 + $0x58] sm:$0xff] }
 0x4a1   : > { %v5476_v50 = vmax.f32 %v5460_v6, 0.0  ;;  %v5477_v52 = vmax.f32 %v5461_v41, 0.0  ;;  %v5392_v4 = vadd.f32 %v5264_v53, %v5119_v63  ;;  %v5393_v18 = vadd.f32 %v5287_v34, %v5120_v10  ;;  %v5218_v47 = vpop.f32.mrf.mxu0  ;;  %v5241_v59 = vpop.f32.mrf.mxu1  ;;  %v5451_v6 = vld [vmem:[%s10335_s7 + $0x48] sm:$0xff]  ;;  %v5524_v41 = vld [vmem:[%s10336_s8 + $0x10] sm:$0xff] }
 0x4a2   : > { %v5474_v5 = vmax.f32 %v5458_v26, 0.0  ;;  %v5475_v54 = vmax.f32 %v5459_v2, 0.0  ;;  %v5390_v28 = vadd.f32 %v5218_v47, %v5117_v31  ;;  %v5391_v22 = vadd.f32 %v5241_v59, %v5118_v16  ;;  %v6264_v34 = vld [vmem:[%s6361_s18 + $0x48] sm:$0xff] }
 0x4a3   : > { %v5492_v45 = vmin.f32 %v5476_v50, 15.0  ;;  %v10113_v48 = vmin.f32 %v5477_v52, 15.0  ;;  %v5420_v46 = vadd.f32 %v10108_v27, %v5392_v4  ;;  %v5421_v17 = vadd.f32 %v10108_v27, %v5393_v18  ;;  %v5522_v52 = vld [vmem:[%s10336_s8] sm:$0xff] }
 0x4a4   : > { %v5490_v25 = vmin.f32 %v5474_v5, 15.0  ;;  %v10116_v49 = vmin.f32 %v5475_v54, 15.0  ;;  %v5418_v62 = vadd.f32 %v10108_v27, %v5390_v28  ;;  %v5419_v1 = vadd.f32 %v10108_v27, %v5391_v22  ;;  %v5523_v5 = vld [vmem:[%s10336_s8 + $0x8] sm:$0xff] }
 0x4a5   : > { %v6109_v60 = vand.u32 2147483647, %v5492_v45  ;;  %v6111_v32 = vcvt.f32.s32 %v5492_v45  ;;  %v6114_v58 = vand.u32 2147483648, %v5492_v45  ;;  %v6117_v9 = vand.u32 2147483647, %v10113_v48 }
 0x4a6   : > { %v6093_v33 = vand.u32 2147483647, %v5490_v25  ;;  %v6095_v61 = vcvt.f32.s32 %v5490_v25  ;;  %v6101_v8 = vand.u32 2147483647, %v10116_v49  ;;  %v6098_v23 = vand.u32 2147483648, %v5490_v25 }
 0x4a7   : > { %v6103_v40 = vcvt.f32.s32 %v10116_v49  ;;  %v6106_v36 = vand.u32 2147483648, %v10116_v49  ;;  %v6112_v44 = vcvt.s32.f32 %v6111_v32  ;;  %vm10133_vm2 = vcmp.lt.f32.partialorder %v6109_v60, 8388608.0 }
 0x4a8   : > { %vm10125_vm0 = vcmp.lt.f32.partialorder %v6093_v33, 8388608.0  ;;  %v6096_v63 = vcvt.s32.f32 %v6095_v61  ;;  %vm10129_vm1 = vcmp.lt.f32.partialorder %v6101_v8, 8388608.0  ;;  %v6119_v10 = vcvt.f32.s32 %v10113_v48 }
 0x4a9   : > { %v6104_v29 = vcvt.s32.f32 %v6103_v40  ;;  %v6113_v7 = vand.u32 2147483647, %v6112_v44  ;;  %v6122_v31 = vand.u32 2147483648, %v10113_v48  ;;  %v5436_v38 = vadd.f32 %v6261_v42, %v5420_v46 }
 0x4aa   : > { %v6097_v51 = vand.u32 2147483647, %v6096_v63  ;;  %v5437_v37 = vadd.f32 %v6262_v11, %v5421_v17  ;;  %v5434_v35 = vadd.f32 %v6263_v20, %v5418_v62  ;;  %v6120_v53 = vcvt.s32.f32 %v6119_v10 }
 0x4ab   : > { %v6105_v26 = vand.u32 2147483647, %v6104_v29  ;;  %v6115_v2 = vor.u32 %v6114_v58, %v6113_v7  ;;  %v5435_v50 = vadd.f32 %v6264_v34, %v5419_v1  ;;  %v5468_v18 = vmul.f32 %v5452_v3, %v5436_v38  ;;  %v5307_v58 = vpop.f32.mrf.mxu0  ;;  %v5525_v1 = vld [vmem:[%s10336_s8 + $0x18] sm:$0xff] }
 0x4ac   : > { %v6099_v4 = vor.u32 %v6098_v23, %v6097_v51  ;;  %v5469_v47 = vmul.f32 %v5453_v55, %v5437_v37  ;;  %v5466_v59 = vmul.f32 %v5450_v43, %v5434_v35  ;;  %v6121_v22 = vand.u32 2147483647, %v6120_v53  ;;  %v5330_v23 = vpop.f32.mrf.mxu1 }
 0x4ad   : > { %v6107_v54 = vor.u32 %v6106_v36, %v6105_v26  ;;  %v6116_v28 = vsel %vm10133_vm2, %v6115_v2, %v5492_v45  ;;  %v5467_v46 = vmul.f32 %v5451_v6, %v5435_v50  ;;  %v5484_v60 = vmax.f32 %v5468_v18, 0.0  ;;  %v5353_v55 = vpop.f32.mrf.mxu2  ;;  %v5446_v6 = vld [vmem:[%s10335_s7 + $0x20] sm:$0xff]  ;;  %v5447_v50 = vld [vmem:[%s10335_s7 + $0x28] sm:$0xff] }
 0x4ae   : > { %v6100_v17 = vsel %vm10125_vm0, %v6099_v4, %v5490_v25  ;;  %v5540_v62 = vmul.f32 %v6116_v28, %v5524_v41  ;;  %v5485_v32 = vmax.f32 %v5469_v47, 0.0  ;;  %v6123_v45 = vor.u32 %v6122_v31, %v6121_v22  ;;  %v5532_v4 = vld [vmem:[%s10336_s8 + $0x50] sm:$0xff]  ;;  %v6265_v47 = vld [vmem:[%s6361_s18 + $0x20] sm:$0xff]  ;;  %v5533_v22 = vld [vmem:[%s10336_s8 + $0x58] sm:$0xff] }
 0x4af   : > { %v6108_v33 = vsel %vm10129_vm1, %v6107_v54, %v10116_v49  ;;  %v5538_v61 = vmul.f32 %v6100_v17, %v5522_v52  ;;  %v5482_v8 = vmax.f32 %v5466_v59, 0.0  ;;  %vm6118_vm3 = vcmp.lt.f32.partialorder %v6117_v9, 8388608.0 }
 0x4b0   : > { %v5539_v25 = vmul.f32 %v6108_v33, %v5523_v5  ;;  %5556 = vst [vmem:[%s10166_s19 + $0x10] sm:$0xff] %v5540_v62  ;;  %v5500_v40 = vmin.f32 %v5484_v60, 15.0  ;;  %v5501_v36 = vmin.f32 %v5485_v32, 15.0  ;;  %v6124_v44 = vsel %vm6118_vm3, %v6123_v45, %v10113_v48  ;;  %v6266_v5 = vld [vmem:[%s6361_s18 + $0x28] sm:$0xff]  ;;  %v5376_v45 = vpop.f32.mrf.mxu3 }
 0x4b1   : > { %5554 = vst [vmem:[%s10166_s19] sm:$0xff] %v5538_v61  ;;  %v10184_v16 = vmin.f32 %v5482_v8, 15.0  ;;  %v5483_v63 = vmax.f32 %v5467_v46, 0.0  ;;  %v5386_v14 = vadd.f32 %v5307_v58, %v10100_v0  ;;  %v5541_v49 = vmul.f32 %v6124_v44, %v5525_v1  ;;  %v5530_v58 = vld [vmem:[%s10336_s8 + $0x40] sm:$0xff] }
 0x4b2   : > { %5555 = vst [vmem:[%s10166_s19 + $0x8] sm:$0xff] %v5539_v25  ;;  %v6173_v21 = vand.u32 2147483647, %v5500_v40  ;;  %v6175_v29 = vcvt.f32.s32 %v5500_v40  ;;  %v5387_v7 = vadd.f32 %v5330_v23, %v10090_v13  ;;  %v6178_v9 = vand.u32 2147483648, %v5500_v40 }
 0x4b3   : > { %v6181_v10 = vand.u32 2147483647, %v5501_v36  ;;  %v6183_v31 = vcvt.f32.s32 %v5501_v36  ;;  %v6157_v3 = vand.u32 2147483647, %v10184_v16  ;;  %5557 = vst [vmem:[%s10166_s19 + $0x18] sm:$0xff] %v5541_v49  ;;  %v6186_v51 = vand.u32 2147483648, %v5501_v36  ;;  %v5310_v25 = vpop.f32.mrf.mxu0 }
 0x4b4   : > { %vm10191_vm4 = vcmp.lt.f32.partialorder %v6173_v21, 8388608.0  ;;  %v6176_v43 = vcvt.s32.f32 %v6175_v29  ;;  %v6159_v0 = vcvt.f32.s32 %v10184_v16  ;;  %v6162_v38 = vand.u32 2147483648, %v10184_v16  ;;  %v5448_v49 = vld [vmem:[%s10335_s7 + $0x30] sm:$0xff]  ;;  %v5333_v21 = vpop.f32.mrf.mxu1 }
 0x4b5   : > { %vm10196_vm5 = vcmp.lt.f32.partialorder %v6181_v10, 8388608.0  ;;  %v6184_v13 = vcvt.s32.f32 %v6183_v31  ;;  %v5499_v11 = vmin.f32 %v5483_v63, 15.0  ;;  %v5414_v35 = vadd.f32 %v10068_v19, %v5386_v14 }
 0x4b6   : > { %v6177_v37 = vand.u32 2147483647, %v6176_v43  ;;  %v6160_v20 = vcvt.s32.f32 %v6159_v0  ;;  %v5415_v41 = vadd.f32 %v10068_v19, %v5387_v7  ;;  %vm10206_vm6 = vcmp.lt.f32.partialorder %v6157_v3, 8388608.0  ;;  %v5531_v7 = vld [vmem:[%s10336_s8 + $0x48] sm:$0xff] }
 0x4b7   : > { %v6185_v26 = vand.u32 2147483647, %v6184_v13  ;;  %v6165_v53 = vand.u32 2147483647, %v5499_v11  ;;  %v6167_v34 = vcvt.f32.s32 %v5499_v11  ;;  %v5430_v59 = vadd.f32 %v6265_v47, %v5414_v35  ;;  %v6269_v47 = vld [vmem:[%s6361_s18 + $0x60] sm:$0xff] }
 0x4b8   : > { %v6179_v52 = vor.u32 %v6178_v9, %v6177_v37  ;;  %v6161_v18 = vand.u32 2147483647, %v6160_v20  ;;  %v5431_v54 = vadd.f32 %v6266_v5, %v5415_v41  ;;  %v6170_v17 = vand.u32 2147483648, %v5499_v11  ;;  %v6267_v9 = vld [vmem:[%s6361_s18 + $0x30] sm:$0xff] }
 0x4b9   : > { %v6187_v28 = vor.u32 %v6186_v51, %v6185_v26  ;;  %v6168_v46 = vcvt.s32.f32 %v6167_v34  ;;  %v5388_v62 = vadd.f32 %v5353_v55, %v10092_v12  ;;  %v5462_v1 = vmul.f32 %v5446_v6, %v5430_v59 }
 0x4ba   : > { %v6180_v60 = vsel %vm10191_vm4, %v6179_v52, %v5500_v40  ;;  %v6163_v32 = vor.u32 %v6162_v38, %v6161_v18  ;;  %v5463_v33 = vmul.f32 %v5447_v50, %v5431_v54  ;;  %v5389_v31 = vadd.f32 %v5376_v45, %v10097_v56  ;;  %v5454_v50 = vld [vmem:[%s10335_s7 + $0x60] sm:$0xff]  ;;  %v5456_v45 = vld [vmem:[%s10335_s7 + $0x70] sm:$0xff] }
 0x4bb   : > { %v5548_v61 = vmul.f32 %v6180_v60, %v5532_v4  ;;  %v6188_v8 = vsel %vm10196_vm5, %v6187_v28, %v5501_v36  ;;  %v6169_v23 = vand.u32 2147483647, %v6168_v46  ;;  %v5416_v12 = vadd.f32 %v10068_v19, %v5388_v62  ;;  %v5526_v60 = vld [vmem:[%s10336_s8 + $0x20] sm:$0xff] }
 0x4bc   : > { %v5549_v40 = vmul.f32 %v6188_v8, %v5533_v22  ;;  %v6164_v44 = vsel %vm10206_vm6, %v6163_v32, %v10184_v16  ;;  %v5478_v63 = vmax.f32 %v5462_v1, 0.0  ;;  %v5479_v14 = vmax.f32 %v5463_v33, 0.0  ;;  %v5356_v16 = vpop.f32.mrf.mxu2  ;;  %v6270_v1 = vld [vmem:[%s6361_s18 + $0x68] sm:$0xff] }
 0x4bd   : > { %5564 = vst [vmem:[%s10166_s19 + $0x50] sm:$0xff] %v5548_v61  ;;  %v5546_v36 = vmul.f32 %v6164_v44, %v5530_v58  ;;  %v6171_v29 = vor.u32 %v6170_v17, %v6169_v23  ;;  %v5432_v10 = vadd.f32 %v6267_v9, %v5416_v12  ;;  %vm6166_vm7 = vcmp.lt.f32.partialorder %v6165_v53, 8388608.0  ;;  %v5455_v17 = vld [vmem:[%s10335_s7 + $0x68] sm:$0xff]  ;;  %v5379_v9 = vpop.f32.mrf.mxu3 }
 0x4be   : > { %5565 = vst [vmem:[%s10166_s19 + $0x58] sm:$0xff] %v5549_v40  ;;  %v5494_v3 = vmin.f32 %v5478_v63, 15.0  ;;  %v5495_v55 = vmin.f32 %v5479_v14, 15.0  ;;  %v5394_v48 = vadd.f32 %v5310_v25, %v10111_v15  ;;  %v5417_v0 = vadd.f32 %v10068_v19, %v5389_v31  ;;  %v5449_v15 = vld [vmem:[%s10335_s7 + $0x38] sm:$0xff]  ;;  %v5527_v8 = vld [vmem:[%s10336_s8 + $0x28] sm:$0xff]  ;;  %v6271_v25 = vld [vmem:[%s6361_s18 + $0x70] sm:$0xff] }
 0x4bf   : > { %5562 = vst [vmem:[%s10166_s19 + $0x40] sm:$0xff] %v5546_v36  ;;  %v6172_v43 = vsel %vm6166_vm7, %v6171_v29, %v5499_v11  ;;  %v5464_v51 = vmul.f32 %v5448_v49, %v5432_v10  ;;  %v5395_v42 = vadd.f32 %v5333_v21, %v10103_v57  ;;  %v5396_v56 = vadd.f32 %v5356_v16, %v10106_v24  ;;  %v6268_v19 = vld [vmem:[%s6361_s18 + $0x38] sm:$0xff] }
 0x4c0   : > { %v5547_v13 = vmul.f32 %v6172_v43, %v5531_v7  ;;  %v6125_v38 = vand.u32 2147483647, %v5494_v3  ;;  %v6127_v37 = vcvt.f32.s32 %v5494_v3  ;;  %v6130_v20 = vand.u32 2147483648, %v5494_v3 }
 0x4c1   : > { %v6133_v35 = vand.u32 2147483647, %v5495_v55  ;;  %v6135_v6 = vcvt.f32.s32 %v5495_v55  ;;  %v5480_v41 = vmax.f32 %v5464_v51, 0.0  ;;  %v6138_v26 = vand.u32 2147483648, %v5495_v55 }
 0x4c2   : > { %5563 = vst [vmem:[%s10166_s19 + $0x48] sm:$0xff] %v5547_v13  ;;  %v6128_v11 = vcvt.s32.f32 %v6127_v37  ;;  %v5433_v2 = vadd.f32 %v6268_v19, %v5417_v0  ;;  %v5422_v57 = vadd.f32 %v10108_v27, %v5394_v48  ;;  %vm10254_vm8 = vcmp.lt.f32.partialorder %v6125_v38, 8388608.0 }
 0x4c3   : > { %v6136_v24 = vcvt.s32.f32 %v6135_v6  ;;  %v5496_v34 = vmin.f32 %v5480_v41, 15.0  ;;  %v5423_v52 = vadd.f32 %v10108_v27, %v5395_v42  ;;  %v5424_v5 = vadd.f32 %v10108_v27, %v5396_v56 }
 0x4c4   : > { %v6129_v4 = vand.u32 2147483647, %v6128_v11  ;;  %v5465_v18 = vmul.f32 %v5449_v15, %v5433_v2  ;;  %v5438_v59 = vadd.f32 %v6269_v47, %v5422_v57  ;;  %vm10264_vm11 = vcmp.lt.f32.partialorder %v6133_v35, 8388608.0 }
 0x4c5   : > { %v6137_v28 = vand.u32 2147483647, %v6136_v24  ;;  %v6141_v22 = vand.u32 2147483647, %v5496_v34  ;;  %v6143_v46 = vcvt.f32.s32 %v5496_v34  ;;  %v5439_v33 = vadd.f32 %v6270_v1, %v5423_v52  ;;  %v5457_v24 = vld [vmem:[%s10335_s7 + $0x78] sm:$0xff] }
 0x4c6   : > { %v6131_v62 = vor.u32 %v6130_v20, %v6129_v4  ;;  %v5481_v32 = vmax.f32 %v5465_v18, 0.0  ;;  %v5470_v58 = vmul.f32 %v5454_v50, %v5438_v59  ;;  %v6146_v12 = vand.u32 2147483648, %v5496_v34  ;;  %v6272_v52 = vld [vmem:[%s6361_s18 + $0x78] sm:$0xff]  ;;  %v5534_v59 = vld [vmem:[%s10336_s8 + $0x60] sm:$0xff] }
 0x4c7   : > { %v6139_v61 = vor.u32 %v6138_v26, %v6137_v28  ;;  %v6144_v23 = vcvt.s32.f32 %v6143_v46  ;;  %v5440_v40 = vadd.f32 %v6271_v25, %v5424_v5  ;;  %v5471_v49 = vmul.f32 %v5455_v17, %v5439_v33  ;;  %v5529_v26 = vld [vmem:[%s10336_s8 + $0x38] sm:$0xff]  ;;  %v5535_v33 = vld [vmem:[%s10336_s8 + $0x68] sm:$0xff] }
 0x4c8   : > { %v6132_v44 = vsel %vm10254_vm8, %v6131_v62, %v5494_v3  ;;  %v5497_v63 = vmin.f32 %v5481_v32, 15.0  ;;  %v5486_v14 = vmax.f32 %v5470_v58, 0.0  ;;  %v5124_v10 = vadd.f32 %v10062_v30, %v10058_v39  ;;  %v5528_v3 = vld [vmem:[%s10336_s8 + $0x30] sm:$0xff] }
 0x4c9   : > { %v5542_v21 = vmul.f32 %v6132_v44, %v5526_v60  ;;  %v6140_v36 = vsel %vm10264_vm11, %v6139_v61, %v5495_v55  ;;  %v6145_v29 = vand.u32 2147483647, %v6144_v23  ;;  %v5472_v7 = vmul.f32 %v5456_v45, %v5440_v40 }
 0x4ca   : > { %v5543_v31 = vmul.f32 %v6140_v36, %v5527_v8  ;;  %v6151_v16 = vcvt.f32.s32 %v5497_v63  ;;  %v5502_v43 = vmin.f32 %v5486_v14, 15.0  ;;  %v5487_v51 = vmax.f32 %v5471_v49, 0.0  ;;  %v5536_v8 = vld [vmem:[%s10336_s8 + $0x70] sm:$0xff] }
 0x4cb   : > { %5558 = vst [vmem:[%s10166_s19 + $0x20] sm:$0xff] %v5542_v21  ;;  %v6147_v48 = vor.u32 %v6146_v12, %v6145_v29  ;;  %v5488_v0 = vmax.f32 %v5472_v7, 0.0  ;;  %vm6142_vm12 = vcmp.lt.f32.partialorder %v6141_v22, 8388608.0  ;;  %v6149_v55 = vand.u32 2147483647, %v5497_v63  ;;  %v5537_v7 = vld [vmem:[%s10336_s8 + $0x78] sm:$0xff] }
 0x4cc   : > { %5559 = vst [vmem:[%s10166_s19 + $0x28] sm:$0xff] %v5543_v31  ;;  %v6152_v42 = vcvt.s32.f32 %v6151_v16  ;;  %v5397_v13 = vadd.f32 %v5379_v9, %v5124_v10  ;;  %v6154_v37 = vand.u32 2147483648, %v5497_v63  ;;  %v6189_v39 = vand.u32 2147483647, %v5502_v43 }
 0x4cd   : > { %v6148_v38 = vsel %vm6142_vm12, %v6147_v48, %v5496_v34  ;;  %v6191_v30 = vcvt.f32.s32 %v5502_v43  ;;  %v5503_v35 = vmin.f32 %v5487_v51, 15.0  ;;  %v5504_v6 = vmin.f32 %v5488_v0, 15.0 }
 0x4ce   : > { %v5544_v56 = vmul.f32 %v6148_v38, %v5528_v3  ;;  %v6153_v20 = vand.u32 2147483647, %v6152_v42  ;;  %v5425_v15 = vadd.f32 %v10108_v27, %v5397_v13  ;;  %vm6150_vm13 = vcmp.lt.f32.partialorder %v6149_v55, 8388608.0 }
 0x4cf   : > { %v6192_v41 = vcvt.s32.f32 %v6191_v30  ;;  %v6199_v19 = vcvt.f32.s32 %v5503_v35  ;;  %v6194_v57 = vand.u32 2147483648, %v5502_v43  ;;  %v6207_v53 = vcvt.f32.s32 %v5504_v6 }
 0x4d0   : > { %5560 = vst [vmem:[%s10166_s19 + $0x30] sm:$0xff] %v5544_v56  ;;  %v6155_v11 = vor.u32 %v6154_v37, %v6153_v20  ;;  %vm10301_vm14 = vcmp.lt.f32.partialorder %v6189_v39, 8388608.0  ;;  %v5441_v4 = vadd.f32 %v6272_v52, %v5425_v15  ;;  %v6197_v5 = vand.u32 2147483647, %v5503_v35 }
 0x4d1   : > { %v6193_v2 = vand.u32 2147483647, %v6192_v41  ;;  %v6200_v27 = vcvt.s32.f32 %v6199_v19  ;;  %v6208_v54 = vcvt.s32.f32 %v6207_v53  ;;  %v6202_v22 = vand.u32 2147483648, %v5503_v35 }
 0x4d2   : > { %v6156_v34 = vsel %vm6150_vm13, %v6155_v11, %v5497_v63  ;;  %v6205_v46 = vand.u32 2147483647, %v5504_v6  ;;  %v5473_v17 = vmul.f32 %v5457_v24, %v5441_v4  ;;  %v6210_v32 = vand.u32 2147483648, %v5504_v6 }
 0x4d3   : > { %v5545_v18 = vmul.f32 %v6156_v34, %v5529_v26  ;;  %v6195_v47 = vor.u32 %v6194_v57, %v6193_v2  ;;  %v6201_v28 = vand.u32 2147483647, %v6200_v27  ;;  %v6209_v60 = vand.u32 2147483647, %v6208_v54 }
 0x4d4   : > { %v5489_v45 = vmax.f32 %v5473_v17, 0.0  ;;  %vm6198_vm15 = vcmp.lt.f32.partialorder %v6197_v5, 8388608.0  ;;  %vm6206_vm9 = vcmp.lt.f32.partialorder %v6205_v46, 8388608.0 }
 0x4d5   : > { %5561 = vst [vmem:[%s10166_s19 + $0x38] sm:$0xff] %v5545_v18  ;;  %v6196_v62 = vsel %vm10301_vm14, %v6195_v47, %v5502_v43  ;;  %v6203_v1 = vor.u32 %v6202_v22, %v6201_v28  ;;  %v6211_v61 = vor.u32 %v6210_v32, %v6209_v60 }
 0x4d6   : > { %v5550_v58 = vmul.f32 %v6196_v62, %v5534_v59  ;;  %v5505_v12 = vmin.f32 %v5489_v45, 15.0 }
 0x4d7   : > { %v6204_v23 = vsel %vm6198_vm15, %v6203_v1, %v5503_v35  ;;  %v6212_v40 = vsel %vm6206_vm9, %v6211_v61, %v5504_v6 }
 0x4d8   : > { %5566 = vst [vmem:[%s10166_s19 + $0x60] sm:$0xff] %v5550_v58  ;;  %v5551_v25 = vmul.f32 %v6204_v23, %v5535_v33  ;;  %v5552_v44 = vmul.f32 %v6212_v40, %v5536_v8  ;;  %v6215_v63 = vcvt.f32.s32 %v5505_v12  ;;  %v6213_v49 = vand.u32 2147483647, %v5505_v12 }
 0x4d9   : > { %v6218_v36 = vand.u32 2147483648, %v5505_v12 }
 0x4da   : > { %5567 = vst [vmem:[%s10166_s19 + $0x68] sm:$0xff] %v5551_v25  ;;  %v6216_v14 = vcvt.s32.f32 %v6215_v63  ;;  %vm6214_vm10 = vcmp.lt.f32.partialorder %v6213_v49, 8388608.0 }
 0x4db   : > { %5568 = vst [vmem:[%s10166_s19 + $0x70] sm:$0xff] %v5552_v44 }
 0x4dc   : > { %v6217_v21 = vand.u32 2147483647, %v6216_v14 }
 0x4de   : > { %v6219_v29 = vor.u32 %v6218_v36, %v6217_v21 }
 0x4e0   : > { %v6220_v9 = vsel %vm6214_vm10, %v6219_v29, %v5505_v12 }
 0x4e1   : > { %v5553_v10 = vmul.f32 %v6220_v9, %v5537_v7 }
 0x4e3   : > { %5569 = vst [vmem:[%s10166_s19 + $0x78] sm:$0xff] %v5553_v10 }
 0x4e4 PF: > { %s20_s13 = sadd.s32 1, %s6279_s13  }
 0x4e5   : > { %p17_p4 = scmp.ge.s32.totalorder %s20_s13, 4  }
 0x4e7   :  { %19 = sbr.rel (!%p17_p4) target bundleno = 1 (0x1), region = 113 }

</bundles_post_ra>
